<compile_context>
chip_gen: v7x
topology: tpu7x:2x2x1
jax: 0.10.0
libtpu: 0.0.40
codegen_flags: <defaults>
</compile_context>

<pallas_src>
import functools

import jax
import jax.numpy as jnp
from jax.experimental import pallas as pl
from jax.experimental.pallas import tpu as pltpu


# ----------------------------------------------------------------------------
# Fused Pallas kernel
# ----------------------------------------------------------------------------
def effnet_fused_kernel(patches_ref, ws_ref, bs_ref, wh_ref, bh_ref,
                        wf_ref, bf_ref, o_ref, acc_ref, *,
                        s_true, tile_s, f_chunk, use_bf16_silu):
    """One (batch b, spatial-tile s) grid step.

    patches_ref: (tile_s, Kp)      bf16  im2col'd stem input for this tile
    ws_ref:      (Kp, C_stem)      bf16  stem conv weight (K padded)
    bs_ref:      (1, C_stem)       f32   stem bias
    wh_ref:      (C_stem, F)       bf16  1x1 head conv weight
    bh_ref:      (1, F)            f32   head bias
    wf_ref:      (F, NCp)          bf16  classifier weight (lane-padded)
    bf_ref:      (1, NCp)          f32   classifier bias (lane-padded)
    o_ref:       (8, NCp)          f32   padded logits block for batch b
    acc_ref:     (8, F)            f32   sublane partial-sum accumulator (VMEM)
    """
    s_idx = pl.program_id(1)
    n_s = pl.num_programs(1)
    feat_dim = wh_ref.shape[1]

    @pl.when(s_idx == 0)
    def _():
        acc_ref[...] = jnp.zeros_like(acc_ref)

    # ---- Stem 3x3/s2 conv as im2col matmul (bf16 MXU, f32 acc) + bias + SiLU.
    h0 = jnp.dot(patches_ref[...], ws_ref[...],
                 preferred_element_type=jnp.float32)
    h0 = h0 + bs_ref[...]
    if use_bf16_silu:
        sig0 = jax.nn.sigmoid(h0.astype(jnp.bfloat16)).astype(jnp.float32)
    else:
        sig0 = jax.nn.sigmoid(h0)
    h0 = (h0 * sig0).astype(jnp.bfloat16)               # (tile_s, C_stem)

    # ---- 1x1 head conv -> SiLU -> sublane-friendly pooled-sum accumulation.
    def accum_all(masked):
        if masked:
            row = s_idx * tile_s + jax.lax.broadcasted_iota(
                jnp.int32, (tile_s, 1), 0)
            keep = row < s_true
        for c0 in range(0, feat_dim, f_chunk):
            hc = jnp.dot(h0, wh_ref[:, c0:c0 + f_chunk],
                         preferred_element_type=jnp.float32)
            hc = hc + bh_ref[:, c0:c0 + f_chunk]
            if use_bf16_silu:
                sg = jax.nn.sigmoid(hc.astype(jnp.bfloat16)).astype(jnp.float32)
            else:
                sg = jax.nn.sigmoid(hc)
            hc = hc * sg                                 # SiLU, (tile_s, f_chunk) f32
            if masked:
                hc = jnp.where(keep, hc, 0.0)
            # Partial sums stay on the 8-sublane axis: plain VPU adds per tile;
            # the cross-sublane 8->1 reduce is deferred to the epilogue.
            acc_ref[:, c0:c0 + f_chunk] += hc.reshape(
                tile_s // 8, 8, f_chunk).sum(axis=0)

    if s_true % tile_s != 0:
        # Padding rows only exist in the last spatial tile: mask only there.
        @pl.when(s_idx == n_s - 1)
        def _():
            accum_all(True)

        @pl.when(s_idx != n_s - 1)
        def _():
            accum_all(False)
    else:
        accum_all(False)

    # ---- Epilogue: global average pool -> Dropout (eval identity) -> Linear.
    @pl.when(s_idx == n_s - 1)
    def _():
        pooled = jnp.sum(acc_ref[...], axis=0, keepdims=True) * (1.0 / s_true)
        logits = jnp.dot(pooled.astype(jnp.bfloat16), wf_ref[...],
                         preferred_element_type=jnp.float32)
        logits = logits + bf_ref[...]                    # (1, NCp) f32
        o_ref[...] = jnp.broadcast_to(logits, o_ref.shape)


# ----------------------------------------------------------------------------
# Glue: im2col + parameter packing + pallas_call wrapper
# ----------------------------------------------------------------------------
def _im2col_3x3_s2(x, k_pad):
    """x: (B, C, H, W) NCHW, pad=1, stride=2 -> (B, Ho*Wo, k_pad) patches."""
    B, C, H, W = x.shape
    Ho, Wo = H // 2, W // 2
    xp = jnp.pad(x, ((0, 0), (0, 0), (1, 1), (1, 1)))
    cols = []
    for kh in range(3):
        for kw in range(3):
            cols.append(xp[:, :, kh:kh + 2 * Ho:2, kw:kw + 2 * Wo:2])
    p = jnp.stack(cols, axis=-1)                 # (B, C, Ho, Wo, 9)  (kh, kw) minor
    p = p.transpose(0, 2, 3, 1, 4)               # (B, Ho, Wo, C, 9)
    p = p.reshape(B, Ho * Wo, C * 9)             # (B, S, K), row order = (c, kh, kw)
    if k_pad > C * 9:
        p = jnp.pad(p, ((0, 0), (0, 0), (0, k_pad - C * 9)))
    return p, (Ho, Wo)


def _device_tuning():
    """Chip-dependent knobs: bf16 SiLU (not on v5e) and F-chunking (v5e only)."""
    kind = ""
    try:
        kind = jax.devices()[0].device_kind.lower()
    except Exception:
        pass
    is_v5 = "v5" in kind
    use_bf16_silu = not is_v5
    f_chunk = 768 if is_v5 else 0       # 0 -> no chunking (full F)
    return use_bf16_silu, f_chunk


def effnet_forward(x, params, tile_s_max=512):
    """x: (B, in_c, H, W) float32 NCHW. Returns logits (B, num_class)."""
    w_stem, b_stem, w_head, b_head, w_fc, b_fc = params
    B, C_in, H, W = x.shape
    C_stem = w_stem.shape[0]
    F = w_head.shape[1]
    num_class = w_fc.shape[1]

    use_bf16_silu, f_chunk = _device_tuning()
    if f_chunk <= 0 or F % f_chunk != 0:
        f_chunk = F

    K = C_in * 9
    Kp = max(32, ((K + 7) // 8) * 8)                     # pad contraction dim (27 -> 32)
    NCp = ((num_class + 127) // 128) * 128               # lane-pad classifier output

    # im2col patches, spatial-padded to a whole number of tiles, cast to bf16.
    patches, (Ho, Wo) = _im2col_3x3_s2(x, Kp)
    S = Ho * Wo
    tile_s = min(tile_s_max, S)
    tile_s = max(16, ((tile_s + 15) // 16) * 16)         # bf16 sublane-friendly
    n_s = pl.cdiv(S, tile_s)
    S_pad = n_s * tile_s
    if S_pad > S:
        patches = jnp.pad(patches, ((0, 0), (0, S_pad - S), (0, 0)))
    patches = patches.astype(jnp.bfloat16)

    # Pack weights: bf16 for MXU matmuls, f32 for bias math.
    ws = w_stem.reshape(C_stem, K).T                     # (K, C_stem), matches patch order
    ws = jnp.pad(ws, ((0, Kp - K), (0, 0))).astype(jnp.bfloat16)
    bs = b_stem.reshape(1, C_stem).astype(jnp.float32)
    wh = w_head.astype(jnp.bfloat16)                     # (C_stem, F)
    bh = b_head.reshape(1, F).astype(jnp.float32)
    # Classifier weight: lane-padded but kept bf16 (98% zeros; halve VMEM cost).
    wf = jnp.pad(w_fc, ((0, 0), (0, NCp - num_class))).astype(jnp.bfloat16)
    bf = jnp.pad(b_fc, (0, NCp - num_class)).reshape(1, NCp).astype(jnp.float32)

    kernel = functools.partial(effnet_fused_kernel, s_true=S, tile_s=tile_s,
                               f_chunk=f_chunk, use_bf16_silu=use_bf16_silu)

    out = pl.pallas_call(
        kernel,
        out_shape=jax.ShapeDtypeStruct((B, 8, NCp), jnp.float32),
        grid_spec=pltpu.PrefetchScalarGridSpec(
            num_scalar_prefetch=0,
            grid=(B, n_s),
            in_specs=[
                pl.BlockSpec((None, tile_s, Kp), lambda b, s: (b, s, 0)),
                pl.BlockSpec((Kp, C_stem), lambda b, s: (0, 0)),
                pl.BlockSpec((1, C_stem), lambda b, s: (0, 0)),
                pl.BlockSpec((C_stem, F), lambda b, s: (0, 0)),
                pl.BlockSpec((1, F), lambda b, s: (0, 0)),
                pl.BlockSpec((F, NCp), lambda b, s: (0, 0)),
                pl.BlockSpec((1, NCp), lambda b, s: (0, 0)),
            ],
            out_specs=pl.BlockSpec((None, 8, NCp), lambda b, s: (b, 0, 0)),
            scratch_shapes=[pltpu.VMEM((8, F), jnp.float32)],
        ),
        compiler_params=pltpu.CompilerParams(
            dimension_semantics=("parallel", "arbitrary"),
            vmem_limit_bytes=48 * 1024 * 1024,
        ),
    )(patches, ws, bs, wh, bh, wf, bf)

    return out[:, 0, :num_class]                         # un-pad logits -> (B, num_class)


def init_params(key, in_c=3, c_stem=32, feat_dim=2304, num_class=2):
    k1, k2, k3, k4, k5, k6 = jax.random.split(key, 6)
    w_stem = 0.1 * jax.random.normal(k1, (c_stem, in_c, 3, 3), jnp.float32)
    b_stem = 0.01 * jax.random.normal(k2, (c_stem,), jnp.float32)
    w_head = 0.05 * jax.random.normal(k3, (c_stem, feat_dim), jnp.float32)
    b_head = 0.01 * jax.random.normal(k4, (feat_dim,), jnp.float32)
    # Exact replaced head: nn.Linear(in_features=2304, out_features=2, bias=True)
    w_fc = 0.02 * jax.random.normal(k5, (feat_dim, num_class), jnp.float32)
    b_fc = 0.01 * jax.random.normal(k6, (num_class,), jnp.float32)
    return (w_stem, b_stem, w_head, b_head, w_fc, b_fc)


if __name__ == "__main__":
    key = jax.random.PRNGKey(0)
    pkey, xkey = jax.random.split(key)
    params = init_params(pkey, in_c=3, c_stem=32, feat_dim=2304, num_class=2)

    # Small NCHW input consistent with an image classifier: (batch=2, 3, 16, 16)
    x = jax.random.normal(xkey, (2, 3, 16, 16), jnp.float32)

    logits = jax.jit(effnet_forward)(x, params)
    jax.block_until_ready(logits)
    assert logits.shape == (2, 2) and logits.dtype == jnp.float32
    print("KERNEL_OK")
</pallas_src>

<mosaic_0001>
module attributes {stable_mosaic.version = 11 : i64} {
  func.func @effnet_fused_kernel(%arg0: i32, %arg1: i32, %arg2: memref<1x64x32xbf16, #tpu.memory_space<vmem>>, %arg3: memref<32x32xbf16, #tpu.memory_space<vmem>>, %arg4: memref<1x32xf32, #tpu.memory_space<vmem>>, %arg5: memref<32x2304xbf16, #tpu.memory_space<vmem>>, %arg6: memref<1x2304xf32, #tpu.memory_space<vmem>>, %arg7: memref<2304x128xbf16, #tpu.memory_space<vmem>>, %arg8: memref<1x128xf32, #tpu.memory_space<vmem>>, %arg9: memref<1x8x128xf32, #tpu.memory_space<vmem>>, %arg10: memref<8x2304xf32, #tpu.memory_space<vmem>>) attributes {dimension_semantics = [#tpu.dimension_semantics<parallel>, #tpu.dimension_semantics<arbitrary>], iteration_bounds = array<i64: 2, 1>, scalar_prefetch = 0 : i64, scratch_operands = 1 : i64, tpu.core_type = #tpu.core_type<tc>, window_params = [{transform_indices = @transform_0, window_bounds = array<i64: 1, 64, 32>}, {pipeline_mode = #tpu.pipeline_mode<synchronous>, transform_indices = @transform_1, window_bounds = array<i64: 32, 32>}, {pipeline_mode = #tpu.pipeline_mode<synchronous>, transform_indices = @transform_2, window_bounds = array<i64: 1, 32>}, {pipeline_mode = #tpu.pipeline_mode<synchronous>, transform_indices = @transform_3, window_bounds = array<i64: 32, 2304>}, {pipeline_mode = #tpu.pipeline_mode<synchronous>, transform_indices = @transform_4, window_bounds = array<i64: 1, 2304>}, {pipeline_mode = #tpu.pipeline_mode<synchronous>, transform_indices = @transform_5, window_bounds = array<i64: 2304, 128>}, {pipeline_mode = #tpu.pipeline_mode<synchronous>, transform_indices = @transform_6, window_bounds = array<i64: 1, 128>}, {transform_indices = @transform_7, window_bounds = array<i64: 1, 8, 128>}]} {
    %c0_i32 = arith.constant 0 : i32
    %0 = arith.cmpi eq, %arg1, %c0_i32 : i32
    %1 = arith.extui %0 : i1 to i32
    %c0_i32_0 = arith.constant 0 : i32
    %2 = arith.cmpi ne, %1, %c0_i32_0 : i32
    scf.if %2 {
      %cst_21 = arith.constant 0.000000e+00 : f32
      %40 = vector.broadcast %cst_21 : f32 to vector<8x2304xf32>
      %c0_22 = arith.constant 0 : index
      %c0_23 = arith.constant 0 : index
      %41 = vector.load %arg10[%c0_22, %c0_23] : memref<8x2304xf32, #tpu.memory_space<vmem>>, vector<8x2304xf32>
      tpu.vector_store %arg10[%c0_22, %c0_23], %40 {strides = array<i32>} : memref<8x2304xf32, #tpu.memory_space<vmem>>, vector<8x2304xf32>,
    } else {
    }
    %c0 = arith.constant 0 : index
    %c0_1 = arith.constant 0 : index
    %c0_2 = arith.constant 0 : index
    %3 = vector.load %arg2[%c0, %c0_1, %c0_2] : memref<1x64x32xbf16, #tpu.memory_space<vmem>>, vector<1x64x32xbf16>
    %4 = vector.shape_cast %3 : vector<1x64x32xbf16> to vector<64x32xbf16>
    %c0_3 = arith.constant 0 : index
    %c0_4 = arith.constant 0 : index
    %5 = vector.load %arg3[%c0_3, %c0_4] : memref<32x32xbf16, #tpu.memory_space<vmem>>, vector<32x32xbf16>
    %cst = arith.constant dense<0.000000e+00> : vector<64x32xf32>
    %6 = tpu.matmul %4, %5, %cst {dimension_numbers = #tpu.dot_dimension_numbers<[1], [0], [0], [1], [0, 0, 1, 1], [], []>} : vector<64x32xbf16>, vector<32x32xbf16>, vector<64x32xf32> -> vector<64x32xf32>
    %c0_5 = arith.constant 0 : index
    %c0_6 = arith.constant 0 : index
    %7 = vector.load %arg4[%c0_5, %c0_6] : memref<1x32xf32, #tpu.memory_space<vmem>>, vector<1x32xf32>
    %8 = vector.broadcast %7 : vector<1x32xf32> to vector<64x32xf32>
    %9 = arith.addf %6, %8 : vector<64x32xf32>
    %10 = arith.truncf %9 : vector<64x32xf32> to vector<64x32xbf16>
    %11 = arith.negf %10 : vector<64x32xbf16>
    %12 = math.exp %11 : vector<64x32xbf16>
    %cst_7 = arith.constant 1.000000e+00 : bf16
    %13 = vector.broadcast %cst_7 : bf16 to vector<64x32xbf16>
    %14 = arith.addf %13, %12 : vector<64x32xbf16>
    %15 = arith.divf %13, %14 : vector<64x32xbf16>
    %16 = arith.extf %15 : vector<64x32xbf16> to vector<64x32xf32>
    %17 = arith.mulf %9, %16 : vector<64x32xf32>
    %18 = arith.truncf %17 : vector<64x32xf32> to vector<64x32xbf16>
    %c0_8 = arith.constant 0 : index
    %c0_9 = arith.constant 0 : index
    %19 = vector.load %arg5[%c0_8, %c0_9] : memref<32x2304xbf16, #tpu.memory_space<vmem>>, vector<32x2304xbf16>
    %cst_10 = arith.constant dense<0.000000e+00> : vector<64x2304xf32>
    %20 = tpu.matmul %18, %19, %cst_10 {dimension_numbers = #tpu.dot_dimension_numbers<[1], [0], [0], [1], [0, 0, 1, 1], [], []>} : vector<64x32xbf16>, vector<32x2304xbf16>, vector<64x2304xf32> -> vector<64x2304xf32>
    %c0_11 = arith.constant 0 : index
    %c0_12 = arith.constant 0 : index
    %21 = vector.load %arg6[%c0_11, %c0_12] : memref<1x2304xf32, #tpu.memory_space<vmem>>, vector<1x2304xf32>
    %22 = vector.broadcast %21 : vector<1x2304xf32> to vector<64x2304xf32>
    %23 = arith.addf %20, %22 : vector<64x2304xf32>
    %24 = arith.truncf %23 : vector<64x2304xf32> to vector<64x2304xbf16>
    %25 = arith.negf %24 : vector<64x2304xbf16>
    %26 = math.exp %25 : vector<64x2304xbf16>
    %cst_13 = arith.constant 1.000000e+00 : bf16
    %27 = vector.broadcast %cst_13 : bf16 to vector<64x2304xbf16>
    %28 = arith.addf %27, %26 : vector<64x2304xbf16>
    %29 = arith.divf %27, %28 : vector<64x2304xbf16>
    %30 = arith.extf %29 : vector<64x2304xbf16> to vector<64x2304xf32>
    %31 = arith.mulf %23, %30 : vector<64x2304xf32>
    %c0_14 = arith.constant 0 : index
    %c0_15 = arith.constant 0 : index
    %32 = vector.load %arg10[%c0_14, %c0_15] : memref<8x2304xf32, #tpu.memory_space<vmem>>, vector<8x2304xf32>
    %33 = vector.shape_cast %31 : vector<64x2304xf32> to vector<8x8x2304xf32>
    %cst_16 = arith.constant dense<0.000000e+00> : vector<8x2304xf32>
    %34 = vector.multi_reduction <add>, %33, %cst_16 [0] : vector<8x8x2304xf32> to vector<8x2304xf32>
    %35 = arith.addf %32, %34 : vector<8x2304xf32>
    %c0_17 = arith.constant 0 : index
    %c0_18 = arith.constant 0 : index
    %36 = vector.load %arg10[%c0_17, %c0_18] : memref<8x2304xf32, #tpu.memory_space<vmem>>, vector<8x2304xf32>
    tpu.vector_store %arg10[%c0_17, %c0_18], %35 {strides = array<i32>} : memref<8x2304xf32, #tpu.memory_space<vmem>>, vector<8x2304xf32>,
    %c0_i32_19 = arith.constant 0 : i32
    %37 = arith.cmpi eq, %arg1, %c0_i32_19 : i32
    %38 = arith.extui %37 : i1 to i32
    %c0_i32_20 = arith.constant 0 : i32
    %39 = arith.cmpi ne, %38, %c0_i32_20 : i32
    scf.if %39 {
      %c0_21 = arith.constant 0 : index
      %c0_22 = arith.constant 0 : index
      %40 = vector.load %arg10[%c0_21, %c0_22] : memref<8x2304xf32, #tpu.memory_space<vmem>>, vector<8x2304xf32>
      %cst_23 = arith.constant dense<0.000000e+00> : vector<2304xf32>
      %41 = vector.multi_reduction <add>, %40, %cst_23 [0] : vector<8x2304xf32> to vector<2304xf32>
      %42 = vector.shape_cast %41 : vector<2304xf32> to vector<1x2304xf32>
      %cst_24 = arith.constant 1.562500e-02 : f32
      %43 = vector.broadcast %cst_24 : f32 to vector<1x2304xf32>
      %44 = arith.mulf %42, %43 : vector<1x2304xf32>
      %45 = arith.truncf %44 : vector<1x2304xf32> to vector<1x2304xbf16>
      %c0_25 = arith.constant 0 : index
      %c0_26 = arith.constant 0 : index
      %46 = vector.load %arg7[%c0_25, %c0_26] : memref<2304x128xbf16, #tpu.memory_space<vmem>>, vector<2304x128xbf16>
      %cst_27 = arith.constant dense<0.000000e+00> : vector<1x128xf32>
      %47 = tpu.matmul %45, %46, %cst_27 {dimension_numbers = #tpu.dot_dimension_numbers<[1], [0], [0], [1], [0, 0, 1, 1], [], []>} : vector<1x2304xbf16>, vector<2304x128xbf16>, vector<1x128xf32> -> vector<1x128xf32>
      %c0_28 = arith.constant 0 : index
      %c0_29 = arith.constant 0 : index
      %48 = vector.load %arg8[%c0_28, %c0_29] : memref<1x128xf32, #tpu.memory_space<vmem>>, vector<1x128xf32>
      %49 = arith.addf %47, %48 : vector<1x128xf32>
      %50 = vector.shape_cast %49 : vector<1x128xf32> to vector<1x128xf32>
      %51 = vector.broadcast %50 : vector<1x128xf32> to vector<8x128xf32>
      %c0_30 = arith.constant 0 : index
      %c0_31 = arith.constant 0 : index
      %c0_32 = arith.constant 0 : index
      %52 = vector.load %arg9[%c0_30, %c0_31, %c0_32] : memref<1x8x128xf32, #tpu.memory_space<vmem>>, vector<1x8x128xf32>
      %53 = vector.shape_cast %52 : vector<1x8x128xf32> to vector<8x128xf32>
      %54 = vector.shape_cast %51 : vector<8x128xf32> to vector<1x8x128xf32>
      tpu.vector_store %arg9[%c0_30, %c0_31, %c0_32], %54 {strides = array<i32>} : memref<1x8x128xf32, #tpu.memory_space<vmem>>, vector<1x8x128xf32>,
    } else {
    }
    return
  }
  func.func @transform_0(%arg0: i32, %arg1: i32) -> (i32, i32, i32) {
    %c0_i32 = arith.constant 0 : i32
    %c0_i32_0 = arith.constant 0 : i32
    return %arg0, %arg1, %c0_i32 : i32, i32, i32
  }
  func.func @transform_1(%arg0: i32, %arg1: i32) -> (i32, i32) {
    %c0_i32 = arith.constant 0 : i32
    %c0_i32_0 = arith.constant 0 : i32
    %c0_i32_1 = arith.constant 0 : i32
    return %c0_i32, %c0_i32_0 : i32, i32
  }
  func.func @transform_2(%arg0: i32, %arg1: i32) -> (i32, i32) {
    %c0_i32 = arith.constant 0 : i32
    %c0_i32_0 = arith.constant 0 : i32
    %c0_i32_1 = arith.constant 0 : i32
    return %c0_i32, %c0_i32_0 : i32, i32
  }
  func.func @transform_3(%arg0: i32, %arg1: i32) -> (i32, i32) {
    %c0_i32 = arith.constant 0 : i32
    %c0_i32_0 = arith.constant 0 : i32
    %c0_i32_1 = arith.constant 0 : i32
    return %c0_i32, %c0_i32_0 : i32, i32
  }
  func.func @transform_4(%arg0: i32, %arg1: i32) -> (i32, i32) {
    %c0_i32 = arith.constant 0 : i32
    %c0_i32_0 = arith.constant 0 : i32
    %c0_i32_1 = arith.constant 0 : i32
    return %c0_i32, %c0_i32_0 : i32, i32
  }
  func.func @transform_5(%arg0: i32, %arg1: i32) -> (i32, i32) {
    %c0_i32 = arith.constant 0 : i32
    %c0_i32_0 = arith.constant 0 : i32
    %c0_i32_1 = arith.constant 0 : i32
    return %c0_i32, %c0_i32_0 : i32, i32
  }
  func.func @transform_6(%arg0: i32, %arg1: i32) -> (i32, i32) {
    %c0_i32 = arith.constant 0 : i32
    %c0_i32_0 = arith.constant 0 : i32
    %c0_i32_1 = arith.constant 0 : i32
    return %c0_i32, %c0_i32_0 : i32, i32
  }
  func.func @transform_7(%arg0: i32, %arg1: i32) -> (i32, i32, i32) {
    %c0_i32 = arith.constant 0 : i32
    %c0_i32_0 = arith.constant 0 : i32
    %c0_i32_1 = arith.constant 0 : i32
    return %arg0, %c0_i32, %c0_i32_0 : i32, i32, i32
  }
}

</mosaic_0001>

<bundles_post_ra>
// kernel: effnet_forward.1
= control target key start
LH: loop header
LB: loop body
LE: loop exit
PB: predicated region body
PF: predicated region fallthrough
CT: control target
= control target key end

     0   :  { %s5418_s24 = smov 0   ;;  %s5420_s25 = smov 0   ;;  %s7409_s0 = inlined_call_operand.vmem [shape: bf16[2,64,32], index: 0, kind: input, shape index: {}]   ;;  %s7410_s1 = inlined_call_operand.vmem [shape: bf16[32,32], index: 1, kind: input, shape index: {}]   ;;  %s7411_s2 = inlined_call_operand.vmem [shape: f32[1,32], index: 2, kind: input, shape index: {}]   ;;  %s7412_s3 = inlined_call_operand.vmem [shape: bf16[32,2304], index: 3, kind: input, shape index: {}]   ;;  %s7413_s4 = inlined_call_operand.vmem [shape: f32[1,2304], index: 4, kind: input, shape index: {}]   ;;  %s7414_s5 = inlined_call_operand.vmem [shape: bf16[2304,128], index: 5, kind: input, shape index: {}]   ;;  %s7415_s6 = inlined_call_operand.vmem [shape: f32[1,128], index: 6, kind: input, shape index: {}]   ;;  %s7416_s7 = inlined_call_operand.vmem [shape: f32[2,8,128], index: 7, kind: output, shape index: {}]  }
   0x1   :  { %s5422_s26 = smov 0  }
   0x2 LB: > { %s29_s27 = sadd.s32 1, %s5371_s25  ;;  %p4289_p0 = scmp.ge.s32.totalorder %s5375_s26, 1  ;;  %s5375_s26 = sphi %s5422_s26, %s17_s26   ;;  %s5371_s25 = sphi %s5420_s25, %s7681_s25   ;;  %s5367_s24 = sphi %s5418_s24, %s7680_s24  }
   0x3   : > { %p31_p1 = scmp.ge.s32.totalorder %s29_s27, 2  ;;  %p256_p2 = scmp.lt.s32.totalorder %s5375_s26, 3 }
   0x5   : > { %s7683_s27 = smov (%p31_p1, %s29_s27), 0  ;;  %p257_p3 = pnand %p4289_p0, %p256_p2 }
   0x7   : > { %260 = sbr.rel (%p257_p3) target bundleno = 1043 (0x413), region = 48 }
   0xe   : > { %v4844_v0 = vld [vmem:[%s7410_s1] sm:$0xff]   ;;  %p292_p4 = scmp.lt.s32.totalorder %s5367_s24, 1  ;;  %v4845_v1 = vld [vmem:[%s7410_s1 + $0x8] sm:$0xff]   ;;  %vm380_vm0 = vcmask 261120   ;;  %v4858_v10 = vld [vmem:[%s7412_s3 + $0x94] ss:$72 sps:$4 sm:$0xff]  }
   0xf   : > { %4803 = vmatprep.subr.bf16.mxu0 %v4844_v0  ;;  %4815 = vmatprep.subr.bf16.mxu1 %v4844_v0  ;;  %v4852_v6 = vld [vmem:[%s7412_s3 + $0x4] ss:$72 sps:$4 sm:$0xff]   ;;  %v4850_v8 = vld [vmem:[%s7412_s3] ss:$72 sps:$4 sm:$0xff]   ;;  %v4856_v12 = vld [vmem:[%s7412_s3 + $0x90] ss:$72 sps:$4 sm:$0xff]  }
  0x10   : > { %s7685_s24 = smov (!%p292_p4, %s5367_s24), 1  ;;  %4804 = vmatpush3.bf16.msra.mxu0 %v4844_v0  ;;  %4817 = vmatpush3.bf16.msra.mxu1 %v4844_v0  ;;  %v4855_v7 = vld [vmem:[%s7412_s3 + $0xc] ss:$72 sps:$4 sm:$0xff]   ;;  %v4853_v9 = vld [vmem:[%s7412_s3 + $0x8] ss:$72 sps:$4 sm:$0xff]   ;;  %v5377_v15 = vmov 0  }
  0x11   : > { %4805 = vmatprep.subr.bf16.mxu0 %v4845_v1  ;;  %4816 = vmatprep.subr.bf16.mxu1 %v4845_v1  ;;  %s4598_s9 = sshll.u32 %s7685_s24, 5  ;;  %v4861_v11 = vld [vmem:[%s7412_s3 + $0x9c] ss:$72 sps:$4 sm:$0xff]   ;;  %v4859_v13 = vld [vmem:[%s7412_s3 + $0x98] ss:$72 sps:$4 sm:$0xff]   ;;  %s4292_s28 = sshll.u32 %s7685_s24, 3 }
  0x12   : > { %s299_s12 = scalar_lea.vmem %s7409_s0, %s4598_s9  ;;  %v4864_v14 = vld [vmem:[%s7412_s3 + $0x14] ss:$72 sps:$4 sm:$0xff]   ;;  %v4293_v18 = vld [vmem:[%s7411_s2] ss:$0 sm:$0xff]  ;;  %s304_s8 = scalar_lea.vmem %s7416_s7, %s4292_s28 }
  0x13   : > { %v4846_v2 = vld [vmem:[%s299_s12] sm:$0xff]   ;;  %v4847_v3 = vld [vmem:[%s299_s12 + $0x10] sm:$0xff]   ;;  %v4848_v4 = vld [vmem:[%s299_s12 + $0x8] sm:$0xff]  }
  0x14   : > { %4806 = vmatpush3.bf16.msra.mxu0 %v4845_v1  ;;  %4818 = vmatpush3.bf16.msra.mxu1 %v4845_v1  ;;  %v4849_v5 = vld [vmem:[%s299_s12 + $0x18] sm:$0xff]  }
  0x15   : > { %4807 = vmatprep.mubr.msk.bf16.mxu0 %vm380_vm0, %v4846_v2  ;;  %4811 = vmatprep.mubr.msk.bf16.mxu1 %vm380_vm0, %v4847_v3  ;;  %v4870_v16 = vld [vmem:[%s7412_s3 + $0x1c] ss:$72 sps:$4 sm:$0xff]  }
  0x16   : > { %834 = vmatprep.subr.bf16.mxu1 %v4852_v6  ;;  %907 = vmatprep.subr.bf16.mxu0 %v4855_v7 }
  0x17   : > { %4808 = vmatmul.mubr.msk.bf16.vlgmr.msra.gmra.mrb[0].mxu0 %vm380_vm0, %v4848_v4  ;;  %4812 = vmatmul.mubr.msk.bf16.vlgmr.msra.gmra.mrb[0].mxu1 %vm380_vm0, %v4849_v5 }
  0x18   : > { %835 = vmatpush1.bf16.msra.mxu1 %v4850_v8  ;;  %908 = vmatpush1.bf16.msra.mxu0 %v4853_v9 }
  0x19   : > { %836 = vmatprep.subr.bf16.mxu1 %v4858_v10  ;;  %909 = vmatprep.subr.bf16.mxu0 %v4861_v11 }
  0x1a   : > { %866 = vmatprep.mubr.bf16.mxu1 %v5377_v15  ;;  %939 = vmatprep.mubr.bf16.mxu0 %v5377_v15 }
  0x1c   : > { %837 = vmatpush1.bf16.msra.mxu1 %v4856_v12  ;;  %910 = vmatpush1.bf16.msra.mxu0 %v4859_v13  ;;  %v4862_v12 = vld [vmem:[%s7412_s3 + $0x10] ss:$72 sps:$4 sm:$0xff]  }
  0x1d   : > { %980 = vmatprep.subr.bf16.mxu1 %v4864_v14  ;;  %1053 = vmatprep.subr.bf16.mxu0 %v4870_v16  ;;  %v4867_v14 = vld [vmem:[%s7412_s3 + $0xa4] ss:$72 sps:$4 sm:$0xff]  }
  0xea   : > { %v4809_v17 = vpop.f32.mrb[0].mxu0  ;;  %v4813_v19 = vpop.f32.mrb[0].mxu1 }
  0xeb   : > { %v427_v20 = vpop.f32.mrb[1].mxu0  ;;  %v452_v21 = vadd.f32 %v4813_v19, %v4293_v18  ;;  %v443_v22 = vpop.f32.mrb[1].mxu1  ;;  %v436_v24 = vadd.f32 %v4809_v17, %v4293_v18  ;;  %v4868_v17 = vld [vmem:[%s7412_s3 + $0x18] ss:$72 sps:$4 sm:$0xff]  }
  0xec   : > { %v4810_v23 = vpop.f32.mrb[2].mxu0  ;;  %v444_v25 = vadd.f32 %v4293_v18, %v443_v22  ;;  %v4814_v27 = vpop.f32.mrb[2].mxu1  ;;  %v428_v29 = vadd.f32 %v4293_v18, %v427_v20  ;;  %v4865_v19 = vld [vmem:[%s7412_s3 + $0xa0] ss:$72 sps:$4 sm:$0xff]   ;;  %v4876_v20 = vld [vmem:[%s7412_s3 + $0x24] ss:$72 sps:$4 sm:$0xff]  }
  0xed   : > { %v439_v26 = vadd.f32 %v4810_v23, %v4293_v18  ;;  %v430_v28 = vpop.f32.mrb[3].mxu0  ;;  %v455_v30 = vadd.f32 %v4814_v27, %v4293_v18  ;;  %v446_v32 = vpop.f32.mrb[3].mxu1  ;;  %v4882_v22 = vld [vmem:[%s7412_s3 + $0x2c] ss:$72 sps:$4 sm:$0xff]   ;;  %v4874_v23 = vld [vmem:[%s7412_s3 + $0x20] ss:$72 sps:$4 sm:$0xff]  }
  0xee   : > { %v431_v31 = vadd.f32 %v4293_v18, %v430_v28  ;;  %v447_v34 = vadd.f32 %v4293_v18, %v446_v32  ;;  %v4873_v18 = vld [vmem:[%s7412_s3 + $0xac] ss:$72 sps:$4 sm:$0xff]   ;;  %v4877_v27 = vld [vmem:[%s7412_s3 + $0xb0] ss:$72 sps:$4 sm:$0xff]  }
  0xef   : > { %v459_v33 = vpack.c.bf16 %v439_v26, %v436_v24  ;;  %v461_v35 = vpack.c.bf16 %v455_v30, %v452_v21  ;;  %v4888_v28 = vld [vmem:[%s7412_s3 + $0x34] ss:$72 sps:$4 sm:$0xff]   ;;  %v4891_v32 = vld [vmem:[%s7412_s3 + $0xc4] ss:$72 sps:$4 sm:$0xff]  }
  0xf0   : > { %v458_v36 = vpack.c.bf16 %v431_v31, %v428_v29  ;;  %v460_v38 = vpack.c.bf16 %v447_v34, %v444_v25 }
  0xf1   : > { %v4305_v37 = vmul.bf16 3216621497, %v459_v33  ;;  %v4307_v39 = vmul.bf16 3216621497, %v461_v35  ;;  %v4892_v33 = vld [vmem:[%s7412_s3 + $0x38] ss:$72 sps:$4 sm:$0xff]  }
  0xf2   : > { %v4304_v40 = vmul.bf16 3216621497, %v458_v36  ;;  %v4306_v41 = vmul.bf16 3216621497, %v460_v38  ;;  %v4889_v35 = vld [vmem:[%s7412_s3 + $0xc0] ss:$72 sps:$4 sm:$0xff]  }
  0xf3   : > { %5048 = vpow.bf16 %v4305_v37  ;;  %v4900_v36 = vld [vmem:[%s7412_s3 + $0x44] ss:$72 sps:$4 sm:$0xff]   ;;  %v4895_v37 = vld [vmem:[%s7412_s3 + $0xc8] ss:$72 sps:$4 sm:$0xff]  }
  0xf4   : > { %5050 = vpow.bf16 %v4307_v39  ;;  %v4898_v38 = vld [vmem:[%s7412_s3 + $0x40] ss:$72 sps:$4 sm:$0xff]   ;;  %v4903_v39 = vld [vmem:[%s7412_s3 + $0xd4] ss:$72 sps:$4 sm:$0xff]  }
  0xf5   : > { %5052 = vpow.bf16 %v4304_v40  ;;  %v4901_v40 = vld [vmem:[%s7412_s3 + $0xd0] ss:$72 sps:$4 sm:$0xff]  }
  0xf6   : > { %5054 = vpow.bf16 %v4306_v41  ;;  %v4904_v41 = vld [vmem:[%s7414_s5 + $0x40] sm:$0xff]  }
  0xfe   : > { %v5049_v42 = vpop.eup %5048 }
  0xff   : > { %v5051_v43 = vpop.eup %5050  ;;  %v479_v44 = vadd.bf16 1065369472, %v5049_v42  ;;  %v4905_v42 = vld [vmem:[%s7414_s5 + $0xc0] sm:$0xff]  }
 0x100   : > { %v5053_v45 = vpop.eup %5052  ;;  %v481_v46 = vadd.bf16 1065369472, %v5051_v43  ;;  %v4906_v43 = vld [vmem:[%s7414_s5] sm:$0xff]  }
 0x101   : > { %v5055_v47 = vpop.eup %5054  ;;  %5056 = vrcp.bf16 %v479_v44  ;;  %v478_v48 = vadd.bf16 1065369472, %v5053_v45  ;;  %v4908_v44 = vld [vmem:[%s7414_s5 + $0x48] sm:$0xff]  }
 0x102   : > { %5058 = vrcp.bf16 %v481_v46  ;;  %v480_v49 = vadd.bf16 1065369472, %v5055_v47  ;;  %v4909_v45 = vld [vmem:[%s7414_s5 + $0xc8] sm:$0xff]  }
 0x103   : > { %5060 = vrcp.bf16 %v478_v48  ;;  %v4910_v46 = vld [vmem:[%s7414_s5 + $0x8] sm:$0xff]   ;;  %v4912_v48 = vld [vmem:[%s7414_s5 + $0x50] sm:$0xff]  }
 0x104   : > { %5062 = vrcp.bf16 %v480_v49  ;;  %v4911_v47 = vld [vmem:[%s7414_s5 + $0x88] sm:$0xff]   ;;  %v4913_v49 = vld [vmem:[%s7414_s5 + $0xd0] sm:$0xff]  }
 0x10c   : > { %v5057_v50 = vpop.eup %5056 }
 0x10d   : > { %v5059_v51 = vpop.eup %5058  ;;  %v485_v52 = vmul.bf16 1065369472, %v5057_v50  ;;  %v4914_v50 = vld [vmem:[%s7414_s5 + $0x10] sm:$0xff]  }
 0x10e   : > { %v5061_v53 = vpop.eup %5060  ;;  %v489_v54 = vmul.bf16 1065369472, %v5059_v51  ;;  %v4915_v51 = vld [vmem:[%s7414_s5 + $0x90] sm:$0xff]  }
 0x10f   : > { %v5063_v55 = vpop.eup %5062  ;;  %v492_v56 = vunpack.c.l.bf16 %v485_v52  ;;  %v493_v57 = vunpack.c.h.bf16 %v485_v52  ;;  %v483_v58 = vmul.bf16 1065369472, %v5061_v53  ;;  %v4916_v52 = vld [vmem:[%s7414_s5 + $0x58] sm:$0xff]  }
 0x110   : > { %v496_v59 = vunpack.c.l.bf16 %v489_v54  ;;  %v497_v60 = vunpack.c.h.bf16 %v489_v54  ;;  %v487_v61 = vmul.bf16 1065369472, %v5063_v55  ;;  %v4917_v53 = vld [vmem:[%s7414_s5 + $0xd8] sm:$0xff]  }
 0x111   : > { %v500_v62 = vmul.f32 %v492_v56, %v436_v24  ;;  %v501_v63 = vmul.f32 %v493_v57, %v439_v26  ;;  %v490_v0 = vunpack.c.l.bf16 %v483_v58  ;;  %v491_v1 = vunpack.c.h.bf16 %v483_v58  ;;  %v4879_v24 = vld [vmem:[%s7412_s3 + $0xb4] ss:$72 sps:$4 sm:$0xff]   ;;  %v4920_v56 = vld [vmem:[%s7414_s5 + $0x60] sm:$0xff]  }
 0x112   : > { %v504_v2 = vmul.f32 %v496_v59, %v452_v21  ;;  %v505_v3 = vmul.f32 %v497_v60, %v455_v30  ;;  %v494_v4 = vunpack.c.l.bf16 %v487_v61  ;;  %v495_v5 = vunpack.c.h.bf16 %v487_v61  ;;  %v4871_v21 = vld [vmem:[%s7412_s3 + $0xa8] ss:$72 sps:$4 sm:$0xff]   ;;  %v4885_v26 = vld [vmem:[%s7412_s3 + $0xbc] ss:$72 sps:$4 sm:$0xff]  }
 0x113   : > { %v5487_v6 = vpack.c.bf16 %v501_v63, %v500_v62  ;;  %v498_v7 = vmul.f32 %v490_v0, %v428_v29  ;;  %v499_v8 = vmul.f32 %v491_v1, %v431_v31  ;;  %v4883_v29 = vld [vmem:[%s7412_s3 + $0xb8] ss:$72 sps:$4 sm:$0xff]   ;;  %v4894_v30 = vld [vmem:[%s7412_s3 + $0x3c] ss:$72 sps:$4 sm:$0xff]   ;;  %v552_v60 = vlaneseq }
 0x114   : > { %v5489_v9 = vpack.c.bf16 %v505_v3, %v504_v2  ;;  %v502_v10 = vmul.f32 %v494_v4, %v444_v25  ;;  %v503_v11 = vmul.f32 %v495_v5, %v447_v34  ;;  %v4880_v25 = vld [vmem:[%s7412_s3 + $0x28] ss:$72 sps:$4 sm:$0xff]   ;;  %v4897_v34 = vld [vmem:[%s7412_s3 + $0xcc] ss:$72 sps:$4 sm:$0xff]   ;;  %v4918_v54 = vld [vmem:[%s7414_s5 + $0x18] sm:$0xff]  }
 0x115   : > { %v5494_v13 = vpack.c.bf16 %v499_v8, %v498_v7  ;;  %v4886_v31 = vld [vmem:[%s7412_s3 + $0x30] ss:$72 sps:$4 sm:$0xff]   ;;  %v4921_v57 = vld [vmem:[%s7414_s5 + $0xe0] sm:$0xff]   ;;  %v5739_v61 = vshrl.u32 %v552_v60, 7 }
 0x116   : > { %v5499_v16 = vpack.c.bf16 %v503_v11, %v502_v10  ;;  %v4919_v55 = vld [vmem:[%s7414_s5 + $0x98] sm:$0xff]   ;;  %v4922_v58 = vld [vmem:[%s7414_s5 + $0x20] sm:$0xff]  }
 0x117   : > { %4344 = vmatmul.mubr.msk.bf16.vlgmr.msra.gmra.mrb[4].mxu1 %vm380_vm0, %v5494_v13  ;;  %4348 = vmatmul.mubr.msk.bf16.vlgmr.msra.gmra.mrb[4].mxu0 %vm380_vm0, %v5494_v13  ;;  %v4923_v59 = vld [vmem:[%s7414_s5 + $0xa0] sm:$0xff]   ;;  %7463 = vst [vmem:[#allocation3_spill] sm:$0xff] %v5739_v61  ;;  %v5742_v62 = vsub.s32 0, %v5739_v61  ;;  %v562_v63 = vsub.s32 2, %v5739_v61  ;;  %v5751_v1 = vsub.s32 1, %v5739_v61  ;;  %v566_v2 = vsub.s32 3, %v5739_v61 }
 0x118   : > { %981 = vmatpush1.bf16.msra.mxu1 %v4862_v12  ;;  %876 = vmatprep.mubr.bf16.mxu1 %v5377_v15  ;;  %v5748_v0 = vld [vmem:[%s7413_s4] sm:$0xff] }
 0x119   : > { %949 = vmatprep.mubr.bf16.mxu0 %v5377_v15  ;;  %982 = vmatprep.subr.bf16.mxu1 %v4867_v14  ;;  %7464 = vst [vmem:[#allocation4_spill] sm:$0xff] %v5742_v62  ;;  %7465 = vst [vmem:[#allocation5_spill] sm:$0xff] %v5751_v1  ;;  %v5756_v3 = vrot.slane %v5748_v0, %v5742_v62  ;;  %v5761_v4 = vrot.slane %v5748_v0, %v562_v63 }
 0x11a   : > { %1054 = vmatpush1.bf16.msra.mxu0 %v4868_v17  ;;  %v5765_v7 = vrot.slane %v5748_v0, %v5751_v1  ;;  %v5770_v8 = vrot.slane %v5748_v0, %v566_v2 }
 0x11b   : > { %1055 = vmatprep.subr.bf16.mxu0 %v4873_v18 }
 0x11c   : > { %983 = vmatpush1.bf16.msra.mxu1 %v4865_v19 }
 0x11d   : > { %1126 = vmatprep.subr.bf16.mxu1 %v4876_v20  ;;  %v4924_v20 = vld [vmem:[%s7414_s5 + $0x68] sm:$0xff]  }
 0x11e   : > { %1056 = vmatpush1.bf16.msra.mxu0 %v4871_v21  ;;  %v4925_v21 = vld [vmem:[%s7414_s5 + $0xe8] sm:$0xff]  }
 0x11f   : > { %4345 = vmatmul.mubr.msk.bf16.gmra.mrb[8].mxu1 %vm380_vm0, %v5487_v6  ;;  %4349 = vmatmul.mubr.msk.bf16.gmra.mrb[8].mxu0 %vm380_vm0, %v5487_v6 }
 0x120   : > { %886 = vmatprep.mubr.bf16.mxu1 %v5377_v15  ;;  %959 = vmatprep.mubr.bf16.mxu0 %v5377_v15 }
 0x121   : > { %1199 = vmatprep.subr.bf16.mxu0 %v4882_v22 }
 0x127   : > { %4346 = vmatmul.mubr.msk.bf16.gmra.mrb[12].mxu1 %vm380_vm0, %v5499_v16  ;;  %4350 = vmatmul.mubr.msk.bf16.gmra.mrb[12].mxu0 %vm380_vm0, %v5499_v16 }
 0x128   : > { %896 = vmatprep.mubr.bf16.mxu1 %v5377_v15  ;;  %969 = vmatprep.mubr.bf16.mxu0 %v5377_v15 }
 0x12f   : > { %4347 = vmatmul.mubr.msk.bf16.gmra.mrb[16].mxu1 %vm380_vm0, %v5489_v9  ;;  %4351 = vmatmul.mubr.msk.bf16.gmra.mrb[16].mxu0 %vm380_vm0, %v5489_v9 }
 0x130   : > { %1012 = vmatprep.mubr.bf16.mxu1 %v5377_v15  ;;  %1085 = vmatprep.mubr.bf16.mxu0 %v5377_v15 }
 0x137   : > { %4352 = vmatmul.mubr.msk.bf16.vlgmr.msra.gmra.mrb[20].mxu1 %vm380_vm0, %v5494_v13  ;;  %4356 = vmatmul.mubr.msk.bf16.vlgmr.msra.gmra.mrb[20].mxu0 %vm380_vm0, %v5494_v13 }
 0x138   : > { %1127 = vmatpush1.bf16.msra.mxu1 %v4874_v23  ;;  %1022 = vmatprep.mubr.bf16.mxu1 %v5377_v15 }
 0x139   : > { %1095 = vmatprep.mubr.bf16.mxu0 %v5377_v15  ;;  %1128 = vmatprep.subr.bf16.mxu1 %v4879_v24 }
 0x13a   : > { %1200 = vmatpush1.bf16.msra.mxu0 %v4880_v25 }
 0x13b   : > { %1201 = vmatprep.subr.bf16.mxu0 %v4885_v26  ;;  %v4926_v26 = vld [vmem:[%s7414_s5 + $0x28] sm:$0xff]  }
 0x13c   : > { %1129 = vmatpush1.bf16.msra.mxu1 %v4877_v27  ;;  %v4927_v27 = vld [vmem:[%s7414_s5 + $0xa8] sm:$0xff]  }
 0x13d   : > { %1272 = vmatprep.subr.bf16.mxu1 %v4888_v28 }
 0x13e   : > { %1202 = vmatpush1.bf16.msra.mxu0 %v4883_v29 }
 0x13f   : > { %4353 = vmatmul.mubr.msk.bf16.gmra.mrb[24].mxu1 %vm380_vm0, %v5487_v6  ;;  %4357 = vmatmul.mubr.msk.bf16.gmra.mrb[24].mxu0 %vm380_vm0, %v5487_v6 }
 0x140   : > { %1032 = vmatprep.mubr.bf16.mxu1 %v5377_v15  ;;  %1105 = vmatprep.mubr.bf16.mxu0 %v5377_v15 }
 0x141   : > { %1345 = vmatprep.subr.bf16.mxu0 %v4894_v30 }
 0x147   : > { %4354 = vmatmul.mubr.msk.bf16.gmra.mrb[28].mxu1 %vm380_vm0, %v5499_v16  ;;  %4358 = vmatmul.mubr.msk.bf16.gmra.mrb[28].mxu0 %vm380_vm0, %v5499_v16 }
 0x148   : > { %1042 = vmatprep.mubr.bf16.mxu1 %v5377_v15  ;;  %1115 = vmatprep.mubr.bf16.mxu0 %v5377_v15 }
 0x14f   : > { %4355 = vmatmul.mubr.msk.bf16.gmra.mrb[32].mxu1 %vm380_vm0, %v5489_v9  ;;  %4359 = vmatmul.mubr.msk.bf16.gmra.mrb[32].mxu0 %vm380_vm0, %v5489_v9 }
 0x150   : > { %1158 = vmatprep.mubr.bf16.mxu1 %v5377_v15  ;;  %1231 = vmatprep.mubr.bf16.mxu0 %v5377_v15 }
 0x157   : > { %4360 = vmatmul.mubr.msk.bf16.vlgmr.msra.gmra.mrb[36].mxu1 %vm380_vm0, %v5494_v13  ;;  %4364 = vmatmul.mubr.msk.bf16.vlgmr.msra.gmra.mrb[36].mxu0 %vm380_vm0, %v5494_v13 }
 0x158   : > { %1273 = vmatpush1.bf16.msra.mxu1 %v4886_v31  ;;  %1168 = vmatprep.mubr.bf16.mxu1 %v5377_v15 }
 0x159   : > { %1241 = vmatprep.mubr.bf16.mxu0 %v5377_v15  ;;  %1274 = vmatprep.subr.bf16.mxu1 %v4891_v32 }
 0x15a   : > { %1346 = vmatpush1.bf16.msra.mxu0 %v4892_v33 }
 0x15b   : > { %1347 = vmatprep.subr.bf16.mxu0 %v4897_v34  ;;  %v4928_v34 = vld [vmem:[%s7414_s5 + $0x70] sm:$0xff]  }
 0x15c   : > { %1275 = vmatpush1.bf16.msra.mxu1 %v4889_v35  ;;  %v4929_v35 = vld [vmem:[%s7414_s5 + $0xf0] sm:$0xff]  }
 0x15d   : > { %1418 = vmatprep.subr.bf16.mxu1 %v4900_v36 }
 0x15e   : > { %1348 = vmatpush1.bf16.msra.mxu0 %v4895_v37 }
 0x15f   : > { %4361 = vmatmul.mubr.msk.bf16.gmra.mrb[40].mxu1 %vm380_vm0, %v5487_v6  ;;  %4365 = vmatmul.mubr.msk.bf16.gmra.mrb[40].mxu0 %vm380_vm0, %v5487_v6 }
 0x160   : > { %1178 = vmatprep.mubr.bf16.mxu1 %v5377_v15  ;;  %1251 = vmatprep.mubr.bf16.mxu0 %v5377_v15 }
 0x161   : > { %4605 = vmatprep.subr.bf16.mxu0 %v4904_v41 }
 0x167   : > { %4362 = vmatmul.mubr.msk.bf16.gmra.mrb[44].mxu1 %vm380_vm0, %v5499_v16  ;;  %4366 = vmatmul.mubr.msk.bf16.gmra.mrb[44].mxu0 %vm380_vm0, %v5499_v16 }
 0x168   : > { %1188 = vmatprep.mubr.bf16.mxu1 %v5377_v15  ;;  %1261 = vmatprep.mubr.bf16.mxu0 %v5377_v15 }
 0x16f   : > { %4363 = vmatmul.mubr.msk.bf16.gmra.mrb[48].mxu1 %vm380_vm0, %v5489_v9  ;;  %4367 = vmatmul.mubr.msk.bf16.gmra.mrb[48].mxu0 %vm380_vm0, %v5489_v9 }
 0x170   : > { %1304 = vmatprep.mubr.bf16.mxu1 %v5377_v15  ;;  %1377 = vmatprep.mubr.bf16.mxu0 %v5377_v15 }
 0x177   : > { %4368 = vmatmul.mubr.msk.bf16.vlgmr.msra.gmra.mrb[52].mxu1 %vm380_vm0, %v5494_v13  ;;  %4372 = vmatmul.mubr.msk.bf16.vlgmr.msra.gmra.mrb[52].mxu0 %vm380_vm0, %v5494_v13 }
 0x178   : > { %1419 = vmatpush1.bf16.msra.mxu1 %v4898_v38  ;;  %1314 = vmatprep.mubr.bf16.mxu1 %v5377_v15 }
 0x179   : > { %1387 = vmatprep.mubr.bf16.mxu0 %v5377_v15  ;;  %1420 = vmatprep.subr.bf16.mxu1 %v4903_v39 }
 0x17a   : > { %4606 = vmatpush3.bf16.msra.mxu0 %v4906_v43  ;;  %v4931_v43 = vld [vmem:[%s7414_s5 + $0xb0] sm:$0xff]  }
 0x17b   : > { %4607 = vmatprep.subr.bf16.mxu0 %v4908_v44 }
 0x17c   : > { %1421 = vmatpush1.bf16.msra.mxu1 %v4901_v40 }
 0x17d   : > { %4627 = vmatprep.subr.bf16.mxu1 %v4905_v42  ;;  %v4930_v42 = vld [vmem:[%s7414_s5 + $0x30] sm:$0xff]  }
 0x17e   : > { %4608 = vmatpush3.bf16.msra.mxu0 %v4910_v46 }
 0x17f   : > { %4369 = vmatmul.mubr.msk.bf16.gmra.mrb[56].mxu1 %vm380_vm0, %v5487_v6  ;;  %4373 = vmatmul.mubr.msk.bf16.gmra.mrb[56].mxu0 %vm380_vm0, %v5487_v6 }
 0x180   : > { %1324 = vmatprep.mubr.bf16.mxu1 %v5377_v15  ;;  %1397 = vmatprep.mubr.bf16.mxu0 %v5377_v15 }
 0x181   : > { %4609 = vmatprep.subr.bf16.mxu0 %v4912_v48 }
 0x182   : > { %4610 = vmatpush3.bf16.msra.mxu0 %v4914_v50 }
 0x183   : > { %4611 = vmatprep.subr.bf16.mxu0 %v4916_v52 }
 0x186   : > { %4612 = vmatpush3.bf16.msra.mxu0 %v4918_v54 }
 0x187   : > { %4370 = vmatmul.mubr.msk.bf16.gmra.mrb[60].mxu1 %vm380_vm0, %v5499_v16  ;;  %4374 = vmatmul.mubr.msk.bf16.gmra.mrb[60].mxu0 %vm380_vm0, %v5499_v16 }
 0x188   : > { %1334 = vmatprep.mubr.bf16.mxu1 %v5377_v15  ;;  %1407 = vmatprep.mubr.bf16.mxu0 %v5377_v15 }
 0x189   : > { %4613 = vmatprep.subr.bf16.mxu0 %v4920_v56 }
 0x18a   : > { %4614 = vmatpush3.bf16.msra.mxu0 %v4922_v58 }
 0x18b   : > { %4615 = vmatprep.subr.bf16.mxu0 %v4924_v20 }
 0x18e   : > { %4616 = vmatpush3.bf16.msra.mxu0 %v4926_v26 }
 0x18f   : > { %4371 = vmatmul.mubr.msk.bf16.gmra.mrb[64].mxu1 %vm380_vm0, %v5489_v9  ;;  %4375 = vmatmul.mubr.msk.bf16.gmra.mrb[64].mxu0 %vm380_vm0, %v5489_v9 }
 0x190   : > { %1450 = vmatprep.mubr.bf16.mxu1 %v5377_v15  ;;  %4617 = vmatprep.subr.bf16.mxu0 %v4928_v34 }
 0x192   : > { %4618 = vmatpush3.bf16.msra.mxu0 %v4930_v42  ;;  %v7417_v42 = vsub.s32 7, %v5739_v61 }
 0x197   : > { %4376 = vmatmul.mubr.msk.bf16.vlgmr.msra.gmra.mrb[68].mxu1 %vm380_vm0, %v5494_v13 }
 0x198   : > { %1460 = vmatprep.mubr.bf16.mxu1 %v5377_v15 }
 0x19f   : > { %4377 = vmatmul.mubr.msk.bf16.gmra.mrb[72].mxu1 %vm380_vm0, %v5487_v6 }
 0x1a0   : > { %1470 = vmatprep.mubr.bf16.mxu1 %v5377_v15 }
 0x1a7   : > { %4378 = vmatmul.mubr.msk.bf16.gmra.mrb[76].mxu1 %vm380_vm0, %v5499_v16 }
 0x1a8   : > { %1480 = vmatprep.mubr.bf16.mxu1 %v5377_v15  ;;  %v4907_v15 = vld [vmem:[%s7414_s5 + $0x80] sm:$0xff]  }
 0x1a9   : > { %4628 = vmatpush3.bf16.msra.mxu1 %v4907_v15 }
 0x1aa   : > { %4629 = vmatprep.subr.bf16.mxu1 %v4909_v45 }
 0x1ad   : > { %4630 = vmatpush3.bf16.msra.mxu1 %v4911_v47 }
 0x1ae   : > { %4631 = vmatprep.subr.bf16.mxu1 %v4913_v49 }
 0x1af   : > { %4379 = vmatmul.mubr.msk.bf16.gmra.mrb[80].mxu1 %vm380_vm0, %v5489_v9 }
 0x1b1   : > { %4632 = vmatpush3.bf16.msra.mxu1 %v4915_v51 }
 0x1b2   : > { %4633 = vmatprep.subr.bf16.mxu1 %v4917_v53 }
 0x1b5   : > { %4634 = vmatpush3.bf16.msra.mxu1 %v4919_v55 }
 0x1b6   : > { %4635 = vmatprep.subr.bf16.mxu1 %v4921_v57 }
 0x1b9   : > { %4636 = vmatpush3.bf16.msra.mxu1 %v4923_v59 }
 0x1ba   : > { %4637 = vmatprep.subr.bf16.mxu1 %v4925_v21 }
 0x1bd   : > { %4638 = vmatpush3.bf16.msra.mxu1 %v4927_v27 }
 0x1be   : > { %4639 = vmatprep.subr.bf16.mxu1 %v4929_v35 }
 0x1c1   : > { %4640 = vmatpush3.bf16.msra.mxu1 %v4931_v43 }
 0x1ea   : > { %v868_v5 = vpop.f32.mrb[4].mxu1  ;;  %v941_v6 = vpop.f32.mrb[4].mxu0 }
 0x1eb   : > { %v870_v9 = vpop.f32.mrb[5].mxu1  ;;  %v943_v10 = vpop.f32.mrb[5].mxu0  ;;  %v5773_v13 = vadd.f32 %v868_v5, %v5756_v3  ;;  %v5776_v14 = vadd.f32 %v941_v6, %v5761_v4 }
 0x1ec   : > { %v872_v11 = vpop.f32.mrb[6].mxu1  ;;  %v945_v12 = vpop.f32.mrb[6].mxu0  ;;  %v5791_v22 = vadd.f32 %v870_v9, %v5765_v7  ;;  %v5794_v23 = vadd.f32 %v943_v10, %v5770_v8 }
 0x1ed   : > { %v5779_v16 = vadd.f32 %v872_v11, %v5756_v3  ;;  %v5782_v17 = vadd.f32 %v945_v12, %v5761_v4  ;;  %v874_v18 = vpop.f32.mrb[7].mxu1  ;;  %v947_v19 = vpop.f32.mrb[7].mxu0 }
 0x1ee   : > { %v5797_v24 = vadd.f32 %v874_v18, %v5765_v7  ;;  %v5800_v25 = vadd.f32 %v947_v19, %v5770_v8  ;;  %v7420_v18 = vsub.s32 4, %v5739_v61  ;;  %v7419_v19 = vsub.s32 6, %v5739_v61 }
 0x1ef   : > { %v1491_v28 = vpack.c.bf16 %v5779_v16, %v5773_v13  ;;  %v1493_v29 = vpack.c.bf16 %v5782_v17, %v5776_v14 }
 0x1f0   : > { %v1492_v30 = vpack.c.bf16 %v5797_v24, %v5791_v22  ;;  %v1494_v31 = vpack.c.bf16 %v5800_v25, %v5794_v23 }
 0x1f1   : > { %v4380_v32 = vmul.bf16 3216621497, %v1491_v28  ;;  %v4382_v33 = vmul.bf16 3216621497, %v1493_v29  ;;  %v7418_v28 = vsub.s32 5, %v5739_v61 }
 0x1f2   : > { %v4381_v36 = vmul.bf16 3216621497, %v1492_v30  ;;  %v4383_v37 = vmul.bf16 3216621497, %v1494_v31  ;;  %v878_v38 = vpop.f32.mrb[8].mxu1  ;;  %v951_v39 = vpop.f32.mrb[8].mxu0 }
 0x1f3   : > { %5064 = vpow.bf16 %v4380_v32  ;;  %v880_v40 = vpop.f32.mrb[9].mxu1  ;;  %v953_v41 = vpop.f32.mrb[9].mxu0  ;;  %v5829_v15 = vadd.f32 %v878_v38, %v5756_v3  ;;  %v5832_v44 = vadd.f32 %v951_v39, %v5761_v4 }
 0x1f4   : > { %5066 = vpow.bf16 %v4382_v33  ;;  %v882_v45 = vpop.f32.mrb[10].mxu1  ;;  %v955_v46 = vpop.f32.mrb[10].mxu0  ;;  %v5835_v47 = vadd.f32 %v880_v40, %v5765_v7  ;;  %v5844_v52 = vadd.f32 %v953_v41, %v5770_v8 }
 0x1f5   : > { %5068 = vpow.bf16 %v4381_v36  ;;  %v5838_v48 = vadd.f32 %v882_v45, %v5756_v3  ;;  %v5841_v49 = vadd.f32 %v955_v46, %v5761_v4  ;;  %v884_v50 = vpop.f32.mrb[11].mxu1  ;;  %v957_v51 = vpop.f32.mrb[11].mxu0 }
 0x1f6   : > { %5070 = vpow.bf16 %v4383_v37  ;;  %v5847_v53 = vadd.f32 %v884_v50, %v5765_v7  ;;  %v5850_v54 = vadd.f32 %v957_v51, %v5770_v8 }
 0x1f7   : > { %v1509_v55 = vpack.c.bf16 %v5838_v48, %v5829_v15  ;;  %v1511_v56 = vpack.c.bf16 %v5841_v49, %v5832_v44 }
 0x1f8   : > { %v1510_v57 = vpack.c.bf16 %v5847_v53, %v5835_v47  ;;  %v1512_v58 = vpack.c.bf16 %v5850_v54, %v5844_v52 }
 0x1f9   : > { %v4398_v59 = vmul.bf16 3216621497, %v1509_v55  ;;  %v4400_v60 = vmul.bf16 3216621497, %v1511_v56 }
 0x1fa   : > { %v4399_v5 = vmul.bf16 3216621497, %v1510_v57  ;;  %v4401_v6 = vmul.bf16 3216621497, %v1512_v58  ;;  %v888_v9 = vpop.f32.mrb[12].mxu1  ;;  %v961_v10 = vpop.f32.mrb[12].mxu0  ;;  %v5899_v57 = vrot.slane %v5748_v0, %v7420_v18 }
 0x1fb   : > { %5072 = vpow.bf16 %v4398_v59  ;;  %v890_v11 = vpop.f32.mrb[13].mxu1  ;;  %v963_v12 = vpop.f32.mrb[13].mxu0  ;;  %v5863_v20 = vadd.f32 %v888_v9, %v5756_v3  ;;  %v5866_v21 = vadd.f32 %v961_v10, %v5761_v4  ;;  %v547_v58 = vld [vmem:[%s7413_s4 + $0x8] sm:$0xff]  ;;  %v5907_v10 = vrot.slane %v5748_v0, %v7419_v19 }
 0x1fc   : > { %5074 = vpow.bf16 %v4400_v60  ;;  %v892_v26 = vpop.f32.mrb[14].mxu1  ;;  %v965_v27 = vpop.f32.mrb[14].mxu0  ;;  %v5870_v29 = vadd.f32 %v890_v11, %v5765_v7  ;;  %v5879_v35 = vadd.f32 %v963_v12, %v5770_v8  ;;  %v5912_v11 = vrot.slane %v5748_v0, %v7418_v28 }
 0x1fd   : > { %5076 = vpow.bf16 %v4399_v5  ;;  %v5873_v30 = vadd.f32 %v892_v26, %v5756_v3  ;;  %v5876_v31 = vadd.f32 %v965_v27, %v5761_v4  ;;  %v894_v32 = vpop.f32.mrb[15].mxu1  ;;  %v967_v33 = vpop.f32.mrb[15].mxu0  ;;  %v5917_v12 = vrot.slane %v5748_v0, %v7417_v42  ;;  %v4932_v26 = vld [vmem:[%s7414_s5 + $0x78] sm:$0xff]  }
 0x1fe   : > { %v5065_v34 = vpop.eup %5064  ;;  %5078 = vpow.bf16 %v4401_v6  ;;  %v5882_v36 = vadd.f32 %v894_v32, %v5765_v7  ;;  %v5885_v37 = vadd.f32 %v967_v33, %v5770_v8  ;;  %v4933_v27 = vld [vmem:[%s7414_s5 + $0xf8] sm:$0xff]   ;;  %v5933_v0 = vrot.slane %v547_v58, %v562_v63  ;;  %4619 = vmatprep.subr.bf16.mxu0 %v4932_v26 }
 0x1ff   : > { %v5067_v38 = vpop.eup %5066  ;;  %v1851_v39 = vadd.bf16 1065369472, %v5065_v34  ;;  %v1527_v40 = vpack.c.bf16 %v5873_v30, %v5863_v20  ;;  %v1529_v41 = vpack.c.bf16 %v5876_v31, %v5866_v21  ;;  %v4934_v32 = vld [vmem:[%s7414_s5 + $0x38] sm:$0xff]   ;;  %4641 = vmatprep.subr.bf16.mxu1 %v4933_v27 }
 0x200   : > { %v5069_v43 = vpop.eup %5068  ;;  %v1853_v45 = vadd.bf16 1065369472, %v5067_v38  ;;  %v1528_v46 = vpack.c.bf16 %v5882_v36, %v5870_v29  ;;  %v1530_v50 = vpack.c.bf16 %v5885_v37, %v5879_v35  ;;  %7467 = vst [vmem:[#allocation7_spill] sm:$0xff] %v5933_v0  ;;  %4620 = vmatpush3.bf16.msra.mxu0 %v4934_v32 }
 0x201   : > { %v5071_v51 = vpop.eup %5070  ;;  %5080 = vrcp.bf16 %v1851_v39  ;;  %v1852_v55 = vadd.bf16 1065369472, %v5069_v43  ;;  %v4416_v56 = vmul.bf16 3216621497, %v1527_v40  ;;  %v4418_v60 = vmul.bf16 3216621497, %v1529_v41 }
 0x202   : > { %5082 = vrcp.bf16 %v1853_v45  ;;  %v1854_v59 = vadd.bf16 1065369472, %v5071_v51  ;;  %v4417_v5 = vmul.bf16 3216621497, %v1528_v46  ;;  %v898_v6 = vpop.f32.mrb[16].mxu1  ;;  %v971_v9 = vpop.f32.mrb[16].mxu0  ;;  %v5929_v39 = vrot.slane %v547_v58, %v5742_v62 }
 0x203   : > { %5084 = vrcp.bf16 %v1852_v55  ;;  %v4419_v33 = vmul.bf16 3216621497, %v1530_v50  ;;  %v900_v34 = vpop.f32.mrb[17].mxu1  ;;  %v973_v38 = vpop.f32.mrb[17].mxu0  ;;  %v4935_v40 = vld [vmem:[%s7414_s5 + $0xb8] sm:$0xff]   ;;  %v5939_v41 = vadd.f32 %v898_v6, %v5756_v3  ;;  %v5942_v43 = vadd.f32 %v971_v9, %v5761_v4 }
 0x204   : > { %5086 = vrcp.bf16 %v1854_v59  ;;  %7466 = vst [vmem:[#allocation6_spill] sm:$0xff] %v5929_v39  ;;  %v5945_v45 = vadd.f32 %v900_v34, %v5765_v7  ;;  %v902_v46 = vpop.f32.mrb[18].mxu1  ;;  %v975_v50 = vpop.f32.mrb[18].mxu0  ;;  %v5948_v51 = vadd.f32 %v973_v38, %v5770_v8  ;;  %4642 = vmatpush3.bf16.msra.mxu1 %v4935_v40 }
 0x205   : > { %5088 = vpow.bf16 %v4416_v56  ;;  %v5951_v55 = vadd.f32 %v902_v46, %v5756_v3  ;;  %v5954_v56 = vadd.f32 %v975_v50, %v5761_v4  ;;  %v904_v59 = vpop.f32.mrb[19].mxu1  ;;  %v977_v6 = vpop.f32.mrb[19].mxu0 }
 0x206   : > { %v5073_v63 = vpop.eup %5072  ;;  %5090 = vpow.bf16 %v4418_v60  ;;  %7468 = vst [vmem:[#allocation8_spill] sm:$0xff] %v5948_v51  ;;  %v5957_v26 = vadd.f32 %v904_v59, %v5765_v7  ;;  %v5960_v60 = vadd.f32 %v977_v6, %v5770_v8  ;;  %v5971_v6 = vrot.slane %v547_v58, %v5751_v1 }
 0x207   : > { %v5075_v9 = vpop.eup %5074  ;;  %v1869_v34 = vadd.bf16 1065369472, %v5073_v63  ;;  %5092 = vpow.bf16 %v4417_v5  ;;  %v1545_v3 = vpack.c.bf16 %v5951_v55, %v5939_v41  ;;  %v1547_v4 = vpack.c.bf16 %v5954_v56, %v5942_v43 }
 0x208   : > { %7469 = vst [vmem:[#allocation9_spill] sm:$0xff] %v5957_v26  ;;  %7470 = vst [vmem:[#allocation10_spill] sm:$0xff] %v5960_v60  ;;  %v5077_v27 = vpop.eup %5076  ;;  %v1871_v38 = vadd.bf16 1065369472, %v5075_v9  ;;  %5094 = vpow.bf16 %v4419_v33  ;;  %v1546_v5 = vpack.c.bf16 %v5957_v26, %v5945_v45  ;;  %v1548_v7 = vpack.c.bf16 %v5960_v60, %v5948_v51 }
 0x209   : > { %v5079_v32 = vpop.eup %5078  ;;  %5096 = vrcp.bf16 %v1869_v34  ;;  %v1870_v40 = vadd.bf16 1065369472, %v5077_v27  ;;  %v4434_v46 = vmul.bf16 3216621497, %v1545_v3  ;;  %v4436_v50 = vmul.bf16 3216621497, %v1547_v4 }
 0x20a   : > { %5098 = vrcp.bf16 %v1871_v38  ;;  %v1872_v8 = vadd.bf16 1065369472, %v5079_v32  ;;  %v4435_v33 = vmul.bf16 3216621497, %v1546_v5  ;;  %v1014_v63 = vpop.f32.mrb[20].mxu1  ;;  %v1087_v59 = vpop.f32.mrb[20].mxu0  ;;  %v5975_v9 = vrot.slane %v547_v58, %v566_v2 }
 0x20b   : > { %5100 = vrcp.bf16 %v1870_v40  ;;  %7471 = vst [vmem:[#allocation11_spill] sm:$0xff] %v5971_v6  ;;  %v4437_v27 = vmul.bf16 3216621497, %v1548_v7  ;;  %v5978_v42 = vadd.f32 %v1014_v63, %v5899_v57  ;;  %v5981_v38 = vadd.f32 %v1087_v59, %v5907_v10  ;;  %v1016_v3 = vpop.f32.mrb[21].mxu1  ;;  %v1089_v4 = vpop.f32.mrb[21].mxu0  ;;  %v4936_v32 = vld [vmem:[%s7414_s5 + $0x140] sm:$0xff]  }
 0x20c   : > { %7472 = vst [vmem:[#allocation12_spill] sm:$0xff] %v5975_v9  ;;  %v5081_v34 = vpop.eup %5080  ;;  %5102 = vrcp.bf16 %v1872_v8  ;;  %v4937_v2 = vld [vmem:[%s7414_s5 + $0x1c0] sm:$0xff]   ;;  %v5990_v5 = vadd.f32 %v1016_v3, %v5912_v11  ;;  %v5993_v7 = vadd.f32 %v1089_v4, %v5917_v12  ;;  %v1018_v8 = vpop.f32.mrb[22].mxu1  ;;  %4649 = vmatprep.subr.bf16.mxu0 %v4936_v32 }
 0x20d   : > { %v5083_v58 = vpop.eup %5082  ;;  %v1924_v40 = vmul.bf16 1065369472, %v5081_v34  ;;  %5104 = vpow.bf16 %v4434_v46  ;;  %v1091_v63 = vpop.f32.mrb[22].mxu0  ;;  %v5996_v19 = vadd.f32 %v1018_v8, %v5899_v57  ;;  %4671 = vmatprep.subr.bf16.mxu1 %v4937_v2 }
 0x20e   : > { %v5085_v59 = vpop.eup %5084  ;;  %v1928_v28 = vmul.bf16 1065369472, %v5083_v58  ;;  %5106 = vpow.bf16 %v4436_v50  ;;  %v5999_v18 = vadd.f32 %v1091_v63, %v5907_v10  ;;  %v6001_v1 = vpop.f32.mrb[23].mxu1 }
 0x20f   : > { %v6003_v46 = vpop.f32.mrb[23].mxu0  ;;  %v5087_v34 = vpop.eup %5086  ;;  %v2067_v3 = vunpack.c.l.bf16 %v1924_v40  ;;  %v2085_v4 = vunpack.c.h.bf16 %v1924_v40  ;;  %v1926_v62 = vmul.bf16 1065369472, %v5085_v59  ;;  %5108 = vpow.bf16 %v4435_v33 }
 0x210   : > { %v5089_v61 = vpop.eup %5088  ;;  %v2069_v58 = vunpack.c.l.bf16 %v1928_v28  ;;  %v2087_v50 = vunpack.c.h.bf16 %v1928_v28  ;;  %v1930_v9 = vmul.bf16 1065369472, %v5087_v34  ;;  %5110 = vpow.bf16 %v4437_v27 }
 0x211   : > { %v5091_v8 = vpop.eup %5090  ;;  %v2211_v63 = vmul.f32 %v2067_v3, %v5773_v13  ;;  %v2229_v6 = vmul.f32 %v2085_v4, %v5779_v16  ;;  %v2068_v0 = vunpack.c.l.bf16 %v1926_v62  ;;  %v2086_v39 = vunpack.c.h.bf16 %v1926_v62 }
 0x212   : > { %v5093_v60 = vpop.eup %5092  ;;  %v2213_v32 = vmul.f32 %v2069_v58, %v5776_v14  ;;  %v2231_v2 = vmul.f32 %v2087_v50, %v5782_v17  ;;  %v2070_v40 = vunpack.c.l.bf16 %v1930_v9  ;;  %v2088_v59 = vunpack.c.h.bf16 %v1930_v9  ;;  %v6009_v33 = vpop.f32.mrb[24].mxu1 }
 0x213   : > { %v6011_v51 = vpop.f32.mrb[24].mxu0  ;;  %v5095_v28 = vpop.eup %5094  ;;  %v2373_v27 = vadd.f32 %v2229_v6, %v2211_v63  ;;  %v2212_v34 = vmul.f32 %v2068_v0, %v5791_v22  ;;  %v2230_v13 = vmul.f32 %v2086_v39, %v5797_v24  ;;  %v1887_v16 = vadd.bf16 1065369472, %v5089_v61 }
 0x214   : > { %v6015_v3 = vpop.f32.mrb[25].mxu1  ;;  %v6017_v62 = vpop.f32.mrb[25].mxu0  ;;  %v2387_v4 = vadd.f32 %v2231_v2, %v2213_v32  ;;  %v2214_v17 = vmul.f32 %v2070_v40, %v5794_v23  ;;  %v2232_v9 = vmul.f32 %v2088_v59, %v5800_v25  ;;  %v1889_v58 = vadd.bf16 1065369472, %v5091_v8 }
 0x215   : > { %v5097_v14 = vpop.eup %5096  ;;  %v6021_v50 = vpop.f32.mrb[26].mxu1  ;;  %v2380_v22 = vadd.f32 %v2230_v13, %v2212_v34  ;;  %5112 = vrcp.bf16 %v1887_v16  ;;  %v1888_v61 = vadd.bf16 1065369472, %v5093_v60  ;;  %v1890_v23 = vadd.bf16 1065369472, %v5095_v28 }
 0x216   : > { %7473 = vst [vmem:[#allocation13_spill] sm:$0xff] %v6021_v50  ;;  %v6023_v26 = vpop.f32.mrb[26].mxu0  ;;  %v5099_v6 = vpop.eup %5098  ;;  %v1960_v0 = vmul.bf16 1065369472, %v5097_v14  ;;  %v2394_v32 = vadd.f32 %v2232_v9, %v2214_v17  ;;  %5114 = vrcp.bf16 %v1889_v58 }
 0x217   : > { %7474 = vst [vmem:[#allocation14_spill] sm:$0xff] %v6023_v26  ;;  %v6025_v24 = vpop.f32.mrb[27].mxu1  ;;  %v6027_v39 = vpop.f32.mrb[27].mxu0  ;;  %v1964_v2 = vmul.bf16 1065369472, %v5099_v6  ;;  %5116 = vrcp.bf16 %v1888_v61 }
 0x218   : > { %7475 = vst [vmem:[#allocation15_spill] sm:$0xff] %v6027_v39  ;;  %v5101_v63 = vpop.eup %5100  ;;  %v2103_v8 = vunpack.c.l.bf16 %v1960_v0  ;;  %v2121_v40 = vunpack.c.h.bf16 %v1960_v0  ;;  %5118 = vrcp.bf16 %v1890_v23 }
 0x219   : > { %v5103_v25 = vpop.eup %5102  ;;  %v1962_v59 = vmul.bf16 1065369472, %v5101_v63  ;;  %v2105_v50 = vunpack.c.l.bf16 %v1964_v2  ;;  %v2123_v34 = vunpack.c.h.bf16 %v1964_v2 }
 0x21a   : > { %v5105_v26 = vpop.eup %5104  ;;  %v1966_v13 = vmul.bf16 1065369472, %v5103_v25  ;;  %v2247_v16 = vmul.f32 %v2103_v8, %v5829_v15  ;;  %v2265_v14 = vmul.f32 %v2121_v40, %v5838_v48  ;;  %v6033_v61 = vpop.f32.mrb[28].mxu1 }
 0x21b   : > { %v5107_v60 = vpop.eup %5106  ;;  %v2104_v39 = vunpack.c.l.bf16 %v1962_v59  ;;  %v2122_v17 = vunpack.c.h.bf16 %v1962_v59  ;;  %v2249_v28 = vmul.f32 %v2105_v50, %v5832_v44  ;;  %v2267_v58 = vmul.f32 %v2123_v34, %v5841_v49  ;;  %v6035_v63 = vpop.f32.mrb[28].mxu0 }
 0x21c   : > { %v5109_v9 = vpop.eup %5108  ;;  %v2106_v6 = vunpack.c.l.bf16 %v1966_v13  ;;  %v2124_v0 = vunpack.c.h.bf16 %v1966_v13  ;;  %v2374_v23 = vadd.f32 %v2373_v27, %v2247_v16  ;;  %v1905_v48 = vadd.bf16 1065369472, %v5105_v26  ;;  %v6039_v8 = vpop.f32.mrb[29].mxu1 }
 0x21d   : > { %v5111_v2 = vpop.eup %5110  ;;  %v2248_v25 = vmul.f32 %v2104_v39, %v5835_v47  ;;  %v2266_v15 = vmul.f32 %v2122_v17, %v5847_v53  ;;  %v6041_v40 = vpop.f32.mrb[29].mxu0  ;;  %v2388_v44 = vadd.f32 %v2387_v4, %v2249_v28  ;;  %v1907_v59 = vadd.bf16 1065369472, %v5107_v60 }
 0x21e   : > { %v2250_v49 = vmul.f32 %v2106_v6, %v5844_v52  ;;  %v2268_v50 = vmul.f32 %v2124_v0, %v5850_v54  ;;  %v6045_v34 = vpop.f32.mrb[30].mxu1  ;;  %v6047_v13 = vpop.f32.mrb[30].mxu0  ;;  %v2375_v27 = vadd.f32 %v2374_v23, %v2265_v14  ;;  %5120 = vrcp.bf16 %v1905_v48 }
 0x21f   : > { %v2381_v16 = vadd.f32 %v2380_v22, %v2248_v25  ;;  %v1906_v47 = vadd.bf16 1065369472, %v5109_v9  ;;  %v6049_v53 = vpop.f32.mrb[31].mxu1  ;;  %v6051_v26 = vpop.f32.mrb[31].mxu0  ;;  %v2389_v39 = vadd.f32 %v2388_v44, %v2267_v58  ;;  %5122 = vrcp.bf16 %v1907_v59 }
 0x220   : > { %v2395_v17 = vadd.f32 %v2394_v32, %v2250_v49  ;;  %v1908_v4 = vadd.bf16 1065369472, %v5111_v2  ;;  %v1495_v54 = vpack.c.bf16 %v5996_v19, %v5978_v42  ;;  %v1497_v60 = vpack.c.bf16 %v5999_v18, %v5981_v38  ;;  %v5113_v14 = vpop.eup %5112 }
 0x221   : > { %v2382_v52 = vadd.f32 %v2381_v16, %v2266_v15  ;;  %5124 = vrcp.bf16 %v1906_v47  ;;  %v6059_v9 = vadd.f32 %v6001_v1, %v5912_v11  ;;  %v6063_v32 = vadd.f32 %v6003_v46, %v5917_v12  ;;  %v5115_v28 = vpop.eup %5114 }
 0x222   : > { %v2396_v22 = vadd.f32 %v2395_v17, %v2268_v50  ;;  %5126 = vrcp.bf16 %v1908_v4  ;;  %v1996_v58 = vmul.bf16 1065369472, %v5113_v14  ;;  %v4384_v6 = vmul.bf16 3216621497, %v1495_v54  ;;  %v5117_v23 = vpop.eup %5116  ;;  %v6077_v48 = vpop.f32.mrb[32].mxu1 }
 0x223   : > { %v4386_v0 = vmul.bf16 3216621497, %v1497_v60  ;;  %v6067_v2 = vadd.f32 %v6009_v33, %v5899_v57  ;;  %v2000_v25 = vmul.bf16 1065369472, %v5115_v28  ;;  %v1496_v15 = vpack.c.bf16 %v6059_v9, %v5990_v5  ;;  %7476 = vst [vmem:[#allocation16_spill] sm:$0xff] %v6077_v48  ;;  %v6079_v44 = vpop.f32.mrb[32].mxu0  ;;  %v5119_v49 = vpop.eup %5118 }
 0x224   : > { %v1498_v1 = vpack.c.bf16 %v6063_v32, %v5993_v7  ;;  %v6075_v46 = vadd.f32 %v6011_v51, %v5907_v10  ;;  %7477 = vst [vmem:[#allocation17_spill] sm:$0xff] %v6079_v44  ;;  %v2139_v50 = vunpack.c.l.bf16 %v1996_v58  ;;  %v2157_v33 = vunpack.c.h.bf16 %v1996_v58  ;;  %v6081_v16 = vpop.f32.mrb[33].mxu1  ;;  %v6083_v47 = vpop.f32.mrb[33].mxu0 }
 0x225   : > { %v1998_v59 = vmul.bf16 1065369472, %v5117_v23  ;;  %5128 = vpow.bf16 %v4384_v6  ;;  %7478 = vst [vmem:[#allocation18_spill] sm:$0xff] %v6081_v16  ;;  %7479 = vst [vmem:[#allocation19_spill] sm:$0xff] %v6083_v47  ;;  %v2141_v17 = vunpack.c.l.bf16 %v2000_v25  ;;  %v2159_v4 = vunpack.c.h.bf16 %v2000_v25  ;;  %v6085_v60 = vpop.f32.mrb[34].mxu1  ;;  %v6087_v51 = vpop.f32.mrb[34].mxu0 }
 0x226   : > { %v2002_v54 = vmul.bf16 1065369472, %v5119_v49  ;;  %5130 = vpow.bf16 %v4386_v0  ;;  %7480 = vst [vmem:[#allocation20_spill] sm:$0xff] %v6085_v60  ;;  %7481 = vst [vmem:[#allocation21_spill] sm:$0xff] %v6087_v51  ;;  %v2283_v14 = vmul.f32 %v2139_v50, %v5863_v20  ;;  %v2301_v28 = vmul.f32 %v2157_v33, %v5873_v30  ;;  %v6091_v23 = vpop.f32.mrb[35].mxu1  ;;  %v6093_v6 = vpop.f32.mrb[35].mxu0 }
 0x227   : > { %v2140_v44 = vunpack.c.l.bf16 %v1998_v59  ;;  %v2158_v58 = vunpack.c.h.bf16 %v1998_v59  ;;  %7482 = vst [vmem:[#allocation22_spill] sm:$0xff] %v6091_v23  ;;  %7483 = vst [vmem:[#allocation23_spill] sm:$0xff] %v6093_v6  ;;  %v2285_v47 = vmul.f32 %v2141_v17, %v5866_v21  ;;  %v2303_v25 = vmul.f32 %v2159_v4, %v5876_v31 }
 0x228   : > { %v2142_v49 = vunpack.c.l.bf16 %v2002_v54  ;;  %v2160_v0 = vunpack.c.h.bf16 %v2002_v54  ;;  %v2376_v16 = vadd.f32 %v2375_v27, %v2283_v14  ;;  %v4385_v20 = vmul.bf16 3216621497, %v1496_v15 }
 0x229   : > { %v2284_v60 = vmul.f32 %v2140_v44, %v5870_v29  ;;  %v2302_v51 = vmul.f32 %v2158_v58, %v5882_v36  ;;  %v5121_v50 = vpop.eup %5120  ;;  %v2390_v30 = vadd.f32 %v2389_v39, %v2285_v47  ;;  %v4387_v23 = vmul.bf16 3216621497, %v1498_v1 }
 0x22a   : > { %v2286_v33 = vmul.f32 %v2142_v49, %v5879_v35  ;;  %v2304_v59 = vmul.f32 %v2160_v0, %v5885_v37  ;;  %v5123_v6 = vpop.eup %5122  ;;  %v2377_v48 = vadd.f32 %v2376_v16, %v2301_v28  ;;  %v2032_v17 = vmul.bf16 1065369472, %v5121_v50  ;;  %v6101_v29 = vpop.f32.mrb[36].mxu1 }
 0x22b   : > { %v2383_v21 = vadd.f32 %v2382_v52, %v2284_v60  ;;  %5132 = vpow.bf16 %v4385_v20  ;;  %v2391_v4 = vadd.f32 %v2390_v30, %v2303_v25  ;;  %v2036_v54 = vmul.bf16 1065369472, %v5123_v6  ;;  %v6103_v36 = vpop.f32.mrb[36].mxu0  ;;  %v6105_v1 = vpop.f32.mrb[37].mxu1 }
 0x22c   : > { %v5125_v31 = vpop.eup %5124  ;;  %v2397_v27 = vadd.f32 %v2396_v22, %v2286_v33  ;;  %5134 = vpow.bf16 %v4387_v23  ;;  %v2175_v35 = vunpack.c.l.bf16 %v2032_v17  ;;  %v2193_v44 = vunpack.c.h.bf16 %v2032_v17  ;;  %v6107_v16 = vpop.f32.mrb[37].mxu0 }
 0x22d   : > { %v5127_v39 = vpop.eup %5126  ;;  %v2384_v15 = vadd.f32 %v2383_v21, %v2302_v51  ;;  %v2034_v37 = vmul.bf16 1065369472, %v5125_v31  ;;  %v2177_v47 = vunpack.c.l.bf16 %v2036_v54  ;;  %v2195_v60 = vunpack.c.h.bf16 %v2036_v54  ;;  %v6109_v22 = vpop.f32.mrb[38].mxu1  ;;  %v7487_v54 = vld [vmem:[#allocation8_spill] sm:$0xff] }
 0x22e   : > { %v2398_v52 = vadd.f32 %v2397_v27, %v2304_v59  ;;  %v2038_v14 = vmul.bf16 1065369472, %v5127_v39  ;;  %v6111_v28 = vpop.f32.mrb[38].mxu0  ;;  %v2319_v58 = vmul.f32 %v2175_v35, %v5939_v41  ;;  %v2337_v23 = vmul.f32 %v2193_v44, %v5951_v55  ;;  %v6115_v25 = vpop.f32.mrb[39].mxu1  ;;  %v7486_v41 = vld [vmem:[#allocation9_spill] sm:$0xff]  ;;  %v7488_v35 = vld [vmem:[#allocation10_spill] sm:$0xff] }
 0x22f   : > { %v2176_v51 = vunpack.c.l.bf16 %v2034_v37  ;;  %v2194_v6 = vunpack.c.h.bf16 %v2034_v37  ;;  %7484 = vst [vmem:[#allocation24_spill] sm:$0xff] %v6115_v25  ;;  %v6117_v49 = vpop.f32.mrb[39].mxu0  ;;  %v2321_v20 = vmul.f32 %v2177_v47, %v5942_v43  ;;  %v2339_v50 = vmul.f32 %v2195_v60, %v5954_v56 }
 0x230   : > { %7485 = vst [vmem:[#allocation25_spill] sm:$0xff] %v6117_v49  ;;  %v5129_v0 = vpop.eup %5128  ;;  %v2178_v30 = vunpack.c.l.bf16 %v2038_v14  ;;  %v2196_v33 = vunpack.c.h.bf16 %v2038_v14  ;;  %v2378_v21 = vadd.f32 %v2377_v48, %v2319_v58  ;;  %v6127_v43 = vadd.f32 %v6015_v3, %v5912_v11  ;;  %v7490_v3 = vld [vmem:[#allocation14_spill] sm:$0xff] }
 0x231   : > { %v5131_v59 = vpop.eup %5130  ;;  %v2320_v17 = vmul.f32 %v2176_v51, %v5945_v45  ;;  %v2338_v31 = vmul.f32 %v2194_v6, %v7486_v41  ;;  %v1855_v55 = vadd.bf16 1065369472, %v5129_v0  ;;  %v2392_v27 = vadd.f32 %v2391_v4, %v2321_v20 }
 0x232   : > { %v2322_v39 = vmul.f32 %v2178_v30, %v7487_v54  ;;  %v2340_v44 = vmul.f32 %v2196_v33, %v7488_v35  ;;  %v1857_v37 = vadd.bf16 1065369472, %v5131_v59  ;;  %v2379_v49 = vadd.f32 %v2378_v21, %v2337_v23  ;;  %v6133_v4 = vpop.f32.mrb[40].mxu1  ;;  %v6135_v47 = vpop.f32.mrb[40].mxu0 }
 0x233   : > { %v2385_v25 = vadd.f32 %v2384_v15, %v2320_v17  ;;  %5136 = vrcp.bf16 %v1855_v55  ;;  %v2393_v56 = vadd.f32 %v2392_v27, %v2339_v50  ;;  %v6131_v45 = vadd.f32 %v6017_v62, %v5917_v12  ;;  %v7489_v15 = vld [vmem:[#allocation13_spill] sm:$0xff]  ;;  %v6147_v51 = vpop.f32.mrb[41].mxu0 }
 0x234   : > { %v2399_v48 = vadd.f32 %v2398_v52, %v2322_v39  ;;  %5138 = vrcp.bf16 %v1857_v37  ;;  %v2556_v60 = vrot.slane %v2379_v49, 4  ;;  %v6139_v58 = vadd.f32 %v7489_v15, %v5899_v57  ;;  %v6145_v52 = vpop.f32.mrb[41].mxu1  ;;  %v6159_v33 = vpop.f32.mrb[42].mxu0 }
 0x235   : > { %v2386_v14 = vadd.f32 %v2385_v25, %v2338_v31  ;;  %v6143_v23 = vadd.f32 %v7490_v3, %v5907_v10  ;;  %v2568_v6 = vrot.slane %v2393_v56, 4  ;;  %v6151_v20 = vadd.f32 %v6025_v24, %v5912_v11  ;;  %v7491_v25 = vld [vmem:[#allocation15_spill] sm:$0xff]  ;;  %v6157_v30 = vpop.f32.mrb[42].mxu1  ;;  %v6165_v27 = vpop.f32.mrb[43].mxu0 }
 0x236   : > { %v5133_v62 = vpop.eup %5132  ;;  %v2400_v0 = vadd.f32 %v2399_v48, %v2340_v44  ;;  %v6155_v50 = vadd.f32 %v7491_v25, %v5917_v12  ;;  %v2557_v21 = vadd.f32 %v2556_v60, %v2379_v49  ;;  %v1513_v31 = vpack.c.bf16 %v6139_v58, %v6067_v2  ;;  %v6163_v55 = vpop.f32.mrb[43].mxu1 }
 0x237   : > { %v5135_v59 = vpop.eup %5134  ;;  %v2562_v17 = vrot.slane %v2386_v14, 4  ;;  %v1856_v41 = vadd.bf16 1065369472, %v5133_v62  ;;  %v2569_v24 = vadd.f32 %v2568_v6, %v2393_v56  ;;  %v1515_v35 = vpack.c.bf16 %v6143_v23, %v6075_v46 }
 0x238   : > { %v2574_v54 = vrot.slane %v2400_v0, 4  ;;  %v1858_v39 = vadd.bf16 1065369472, %v5135_v59  ;;  %v2558_v44 = vrot.slane %v2557_v21, 2  ;;  %v4402_v49 = vmul.bf16 3216621497, %v1513_v31 }
 0x239   : > { %v6169_v37 = vadd.f32 %v2562_v17, %v2386_v14  ;;  %5140 = vrcp.bf16 %v1856_v41  ;;  %v2570_v48 = vrot.slane %v2569_v24, 2  ;;  %v4404_v15 = vmul.bf16 3216621497, %v1515_v35 }
 0x23a   : > { %v6171_v60 = vadd.f32 %v2574_v54, %v2400_v0  ;;  %5142 = vrcp.bf16 %v1858_v39  ;;  %v2559_v3 = vadd.f32 %v2558_v44, %v2557_v21  ;;  %v1514_v56 = vpack.c.bf16 %v6151_v20, %v6127_v43  ;;  %v6179_v59 = vpop.f32.mrb[44].mxu1  ;;  %v6181_v0 = vpop.f32.mrb[44].mxu0 }
 0x23b   : > { %7492 = vst [vmem:[#allocation9_spill] sm:$0xff] %v6169_v37  ;;  %5144 = vpow.bf16 %v4402_v49  ;;  %v2571_v6 = vadd.f32 %v2570_v48, %v2569_v24  ;;  %v1516_v14 = vpack.c.bf16 %v6155_v50, %v6131_v45  ;;  %v6185_v21 = vadd.f32 %v6033_v61, %v5899_v57  ;;  %v6191_v24 = vpop.f32.mrb[45].mxu1  ;;  %v6193_v54 = vpop.f32.mrb[45].mxu0 }
 0x23c   : > { %7493 = vst [vmem:[#allocation8_spill] sm:$0xff] %v6171_v60  ;;  %5146 = vpow.bf16 %v4404_v15  ;;  %v2560_v17 = vrot.slane %v2559_v3, 1  ;;  %v4403_v41 = vmul.bf16 3216621497, %v1514_v56  ;;  %v6189_v31 = vadd.f32 %v6035_v63, %v5907_v10  ;;  %7494 = vst [vmem:[#allocation10_spill] sm:$0xff] %v6191_v24  ;;  %v6203_v61 = vpop.f32.mrb[46].mxu1 }
 0x23d   : > { %7495 = vst [vmem:[#allocation13_spill] sm:$0xff] %v6193_v54  ;;  %v2572_v35 = vrot.slane %v2571_v6, 1  ;;  %v4405_v44 = vmul.bf16 3216621497, %v1516_v14  ;;  %v6197_v49 = vadd.f32 %v6039_v8, %v5912_v11  ;;  %v6201_v48 = vadd.f32 %v6041_v40, %v5917_v12  ;;  %7496 = vst [vmem:[#allocation14_spill] sm:$0xff] %v6203_v61  ;;  %v6205_v15 = vpop.f32.mrb[46].mxu0 }
 0x23e   : > { %v5137_v39 = vpop.eup %5136  ;;  %7497 = vst [vmem:[#allocation15_spill] sm:$0xff] %v6205_v15  ;;  %v2561_v56 = vadd.f32 %v2560_v17, %v2559_v3  ;;  %5148 = vpow.bf16 %v4403_v41  ;;  %v6209_v62 = vadd.f32 %v6045_v34, %v5899_v57  ;;  %v6211_v14 = vpop.f32.mrb[47].mxu1  ;;  %v6217_v40 = vadd.f32 %v6047_v13, %v5907_v10 }
 0x23f   : > { %v5139_v63 = vpop.eup %5138  ;;  %v1932_v25 = vmul.bf16 1065369472, %v5137_v39  ;;  %7498 = vst [vmem:[#allocation26_spill] sm:$0xff] %v6211_v14  ;;  %v6213_v8 = vpop.f32.mrb[47].mxu0  ;;  %v2573_v60 = vadd.f32 %v2572_v35, %v2571_v6  ;;  %5150 = vpow.bf16 %v4405_v44 }
 0x240   : > { %7499 = vst [vmem:[#allocation27_spill] sm:$0xff] %v6213_v8  ;;  %v1936_v37 = vmul.bf16 1065369472, %v5139_v63  ;;  %v6219_v15 = vmul.f32 0.015625, %v2561_v56  ;;  %v1531_v41 = vpack.c.bf16 %v6209_v62, %v6185_v21  ;;  %v1533_v6 = vpack.c.bf16 %v6217_v40, %v6189_v31 }
 0x241   : > { %v2071_v3 = vunpack.c.l.bf16 %v1932_v25  ;;  %v2089_v17 = vunpack.c.h.bf16 %v1932_v25  ;;  %v6223_v34 = vmul.f32 0.015625, %v2573_v60 }
 0x242   : > { %7500 = vst [vmem:[#allocation28_spill] sm:$0xff] %v6219_v15  ;;  %v2073_v39 = vunpack.c.l.bf16 %v1936_v37  ;;  %v2091_v14 = vunpack.c.h.bf16 %v1936_v37  ;;  %v4420_v63 = vmul.bf16 3216621497, %v1531_v41  ;;  %v4422_v37 = vmul.bf16 3216621497, %v1533_v6  ;;  %v6235_v61 = vpop.f32.mrb[48].mxu1 }
 0x243   : > { %7501 = vst [vmem:[#allocation29_spill] sm:$0xff] %v6223_v34  ;;  %v2215_v13 = vmul.f32 %v2071_v3, %v5978_v42  ;;  %v2233_v44 = vmul.f32 %v2089_v17, %v5996_v19  ;;  %7502 = vst [vmem:[#allocation30_spill] sm:$0xff] %v6235_v61  ;;  %v6237_v54 = vpop.f32.mrb[48].mxu0  ;;  %v6243_v19 = vadd.f32 %v6049_v53, %v5912_v11  ;;  %v6245_v3 = vpop.f32.mrb[49].mxu1 }
 0x244   : > { %v5141_v56 = vpop.eup %5140  ;;  %v2217_v60 = vmul.f32 %v2073_v39, %v5981_v38  ;;  %v2235_v8 = vmul.f32 %v2091_v14, %v5999_v18  ;;  %7503 = vst [vmem:[#allocation31_spill] sm:$0xff] %v6237_v54  ;;  %5152 = vpow.bf16 %v4420_v63  ;;  %7504 = vst [vmem:[#allocation32_spill] sm:$0xff] %v6245_v3  ;;  %v6247_v17 = vpop.f32.mrb[49].mxu0  ;;  %v6253_v41 = vadd.f32 %v6051_v26, %v5917_v12  ;;  %v7538_v54 = vld [vmem:[#allocation24_spill] sm:$0xff] }
 0x245   : > { %v5143_v24 = vpop.eup %5142  ;;  %v6239_v35 = vadd.f32 %v2233_v44, %v2215_v13  ;;  %v1934_v42 = vmul.bf16 1065369472, %v5141_v56  ;;  %7505 = vst [vmem:[#allocation33_spill] sm:$0xff] %v6247_v17  ;;  %5154 = vpow.bf16 %v4422_v37  ;;  %v6255_v39 = vpop.f32.mrb[50].mxu1  ;;  %v1532_v56 = vpack.c.bf16 %v6243_v19, %v6197_v49 }
 0x246   : > { %v5145_v38 = vpop.eup %5144  ;;  %v6249_v18 = vadd.f32 %v2235_v8, %v2217_v60  ;;  %v1938_v14 = vmul.bf16 1065369472, %v5143_v24  ;;  %7506 = vst [vmem:[#allocation34_spill] sm:$0xff] %v6255_v39  ;;  %v6257_v6 = vpop.f32.mrb[50].mxu0  ;;  %v1534_v26 = vpack.c.bf16 %v6253_v41, %v6201_v48 }
 0x247   : > { %7507 = vst [vmem:[#allocation35_spill] sm:$0xff] %v6257_v6  ;;  %v5147_v13 = vpop.eup %5146  ;;  %v2072_v53 = vunpack.c.l.bf16 %v1934_v42  ;;  %v2090_v44 = vunpack.c.h.bf16 %v1934_v42  ;;  %v1873_v63 = vadd.bf16 1065369472, %v5145_v38  ;;  %v6261_v25 = vpop.f32.mrb[51].mxu1  ;;  %v4421_v42 = vmul.bf16 3216621497, %v1532_v56 }
 0x248   : > { %7508 = vst [vmem:[#allocation36_spill] sm:$0xff] %v6261_v25  ;;  %v6263_v8 = vpop.f32.mrb[51].mxu0  ;;  %v2074_v24 = vunpack.c.l.bf16 %v1938_v14  ;;  %v2092_v60 = vunpack.c.h.bf16 %v1938_v14  ;;  %v1875_v37 = vadd.bf16 1065369472, %v5147_v13  ;;  %v4423_v25 = vmul.bf16 3216621497, %v1534_v26 }
 0x249   : > { %7509 = vst [vmem:[#allocation37_spill] sm:$0xff] %v6263_v8  ;;  %v2216_v34 = vmul.f32 %v2072_v53, %v5990_v5  ;;  %v2234_v15 = vmul.f32 %v2090_v44, %v6059_v9  ;;  %5156 = vrcp.bf16 %v1873_v63  ;;  %v5149_v38 = vpop.eup %5148  ;;  %v7510_v13 = vld [vmem:[#allocation16_spill] sm:$0xff]  ;;  %v7511_v53 = vld [vmem:[#allocation17_spill] sm:$0xff]  ;;  %v7515_v63 = vld [vmem:[#allocation19_spill] sm:$0xff] }
 0x24a   : > { %v2218_v6 = vmul.f32 %v2074_v24, %v5993_v7  ;;  %v2236_v39 = vmul.f32 %v2092_v60, %v6063_v32  ;;  %5158 = vrcp.bf16 %v1875_v37  ;;  %v5151_v8 = vpop.eup %5150  ;;  %v1874_v14 = vadd.bf16 1065369472, %v5149_v38  ;;  %v6283_v32 = vpop.f32.mrb[52].mxu1  ;;  %v7520_v24 = vld [vmem:[#allocation21_spill] sm:$0xff]  ;;  %v7521_v37 = vld [vmem:[#allocation22_spill] sm:$0xff] }
 0x24b   : > { %v6271_v17 = vadd.f32 %v2234_v15, %v2216_v34  ;;  %5160 = vpow.bf16 %v4421_v42  ;;  %v6275_v3 = vadd.f32 %v7510_v13, %v5899_v57  ;;  %v1876_v9 = vadd.bf16 1065369472, %v5151_v8  ;;  %7512 = vst [vmem:[#allocation16_spill] sm:$0xff] %v6283_v32  ;;  %v6285_v44 = vpop.f32.mrb[52].mxu0  ;;  %v7514_v15 = vld [vmem:[#allocation18_spill] sm:$0xff]  ;;  %v7522_v42 = vld [vmem:[#allocation23_spill] sm:$0xff] }
 0x24c   : > { %v6277_v5 = vadd.f32 %v2236_v39, %v2218_v6  ;;  %5162 = vpow.bf16 %v4423_v25  ;;  %v6281_v7 = vadd.f32 %v7511_v53, %v5907_v10  ;;  %7513 = vst [vmem:[#allocation17_spill] sm:$0xff] %v6285_v44  ;;  %v6289_v34 = vadd.f32 %v7514_v15, %v5912_v11  ;;  %v7517_v39 = vld [vmem:[#allocation20_spill] sm:$0xff]  ;;  %v6299_v6 = vpop.f32.mrb[53].mxu1  ;;  %v6301_v8 = vpop.f32.mrb[53].mxu0 }
 0x24d   : > { %5164 = vrcp.bf16 %v1874_v14  ;;  %v6293_v56 = vadd.f32 %v7515_v63, %v5917_v12  ;;  %v6297_v25 = vadd.f32 %v7517_v39, %v5899_v57  ;;  %7518 = vst [vmem:[#allocation19_spill] sm:$0xff] %v6299_v6  ;;  %7519 = vst [vmem:[#allocation20_spill] sm:$0xff] %v6301_v8  ;;  %v6305_v60 = vadd.f32 %v7520_v24, %v5907_v10  ;;  %v6315_v14 = vpop.f32.mrb[54].mxu1  ;;  %v6317_v57 = vpop.f32.mrb[54].mxu0  ;;  %v7528_v10 = vld [vmem:[#allocation7_spill] sm:$0xff] }
 0x24e   : > { %5166 = vrcp.bf16 %v1876_v9  ;;  %v6309_v26 = vadd.f32 %v7521_v37, %v5912_v11  ;;  %v6313_v38 = vadd.f32 %v7522_v42, %v5917_v12  ;;  %7524 = vst [vmem:[#allocation22_spill] sm:$0xff] %v6315_v14  ;;  %7525 = vst [vmem:[#allocation23_spill] sm:$0xff] %v6317_v57  ;;  %v7526_v9 = vld [vmem:[#allocation6_spill] sm:$0xff]  ;;  %v6327_v15 = vadd.f32 %v6103_v36, %v7528_v10  ;;  %v7530_v11 = vld [vmem:[#allocation11_spill] sm:$0xff]  ;;  %v6333_v12 = vpop.f32.mrb[55].mxu1  ;;  %v6335_v39 = vpop.f32.mrb[55].mxu0 }
 0x24f   : > { %7516 = vst [vmem:[#allocation18_spill] sm:$0xff] %v6293_v56  ;;  %v1549_v13 = vpack.c.bf16 %v6297_v25, %v6275_v3  ;;  %v6323_v53 = vadd.f32 %v6101_v29, %v7526_v9  ;;  %v6331_v63 = vadd.f32 %v6105_v1, %v7530_v11  ;;  %7532 = vst [vmem:[#allocation38_spill] sm:$0xff] %v6333_v12  ;;  %v5153_v24 = vpop.eup %5152  ;;  %v7534_v36 = vld [vmem:[#allocation12_spill] sm:$0xff] }
 0x250   : > { %7523 = vst [vmem:[#allocation21_spill] sm:$0xff] %v6313_v38  ;;  %7529 = vst [vmem:[#allocation7_spill] sm:$0xff] %v6327_v15  ;;  %v1551_v37 = vpack.c.bf16 %v6305_v60, %v6281_v7  ;;  %v1550_v29 = vpack.c.bf16 %v6309_v26, %v6289_v34  ;;  %v1552_v42 = vpack.c.bf16 %v6313_v38, %v6293_v56  ;;  %v5155_v1 = vpop.eup %5154  ;;  %v1891_v14 = vadd.bf16 1065369472, %v5153_v24 }
 0x251   : > { %7527 = vst [vmem:[#allocation6_spill] sm:$0xff] %v6323_v53  ;;  %7531 = vst [vmem:[#allocation11_spill] sm:$0xff] %v6331_v63  ;;  %v6345_v57 = vadd.f32 %v6107_v16, %v7534_v36  ;;  %v4438_v8 = vmul.bf16 3216621497, %v1549_v13  ;;  %v6353_v12 = vadd.f32 %v6111_v28, %v7528_v10  ;;  %v1893_v6 = vadd.bf16 1065369472, %v5155_v1 }
 0x252   : > { %7533 = vst [vmem:[#allocation39_spill] sm:$0xff] %v6335_v39  ;;  %v6349_v39 = vadd.f32 %v6109_v22, %v7526_v9  ;;  %v4440_v44 = vmul.bf16 3216621497, %v1551_v37  ;;  %v4439_v32 = vmul.bf16 3216621497, %v1550_v29  ;;  %v6357_v61 = vadd.f32 %v7538_v54, %v7530_v11  ;;  %v7540_v37 = vld [vmem:[#allocation25_spill] sm:$0xff] }
 0x253   : > { %7535 = vst [vmem:[#allocation12_spill] sm:$0xff] %v6345_v57  ;;  %7537 = vst [vmem:[#allocation41_spill] sm:$0xff] %v6353_v12  ;;  %5168 = vrcp.bf16 %v1891_v14  ;;  %v4441_v16 = vmul.bf16 3216621497, %v1552_v42  ;;  %v1501_v22 = vpack.c.bf16 %v6353_v12, %v6327_v15  ;;  %v6367_v29 = vadd.f32 %v7540_v37, %v7534_v36  ;;  %v6373_v14 = vpop.f32.mrb[56].mxu1  ;;  %v6375_v42 = vpop.f32.mrb[56].mxu0 }
 0x254   : > { %7536 = vst [vmem:[#allocation40_spill] sm:$0xff] %v6349_v39  ;;  %7539 = vst [vmem:[#allocation24_spill] sm:$0xff] %v6357_v61  ;;  %v1499_v13 = vpack.c.bf16 %v6349_v39, %v6323_v53  ;;  %v5157_v24 = vpop.eup %5156  ;;  %5170 = vrcp.bf16 %v1893_v6  ;;  %v1500_v28 = vpack.c.bf16 %v6357_v61, %v6331_v63  ;;  %v6371_v54 = vadd.f32 %v6133_v4, %v7526_v9  ;;  %v6379_v63 = vpop.f32.mrb[57].mxu1 }
 0x255   : > { %7541 = vst [vmem:[#allocation25_spill] sm:$0xff] %v6367_v29  ;;  %7542 = vst [vmem:[#allocation42_spill] sm:$0xff] %v6373_v14  ;;  %v5159_v1 = vpop.eup %5158  ;;  %v1968_v39 = vmul.bf16 1065369472, %v5157_v24  ;;  %5172 = vpow.bf16 %v4438_v8  ;;  %v4390_v6 = vmul.bf16 3216621497, %v1501_v22  ;;  %v1502_v37 = vpack.c.bf16 %v6367_v29, %v6345_v57 }
 0x256   : > { %7543 = vst [vmem:[#allocation43_spill] sm:$0xff] %v6375_v42  ;;  %v4388_v12 = vmul.bf16 3216621497, %v1499_v13  ;;  %v5161_v15 = vpop.eup %5160  ;;  %v1972_v53 = vmul.bf16 1065369472, %v5159_v1  ;;  %5174 = vpow.bf16 %v4440_v44  ;;  %7544 = vst [vmem:[#allocation44_spill] sm:$0xff] %v6379_v63 }
 0x257   : > { %v4389_v61 = vmul.bf16 3216621497, %v1500_v28  ;;  %v6381_v4 = vpop.f32.mrb[57].mxu0  ;;  %v5163_v38 = vpop.eup %5162  ;;  %v2107_v14 = vunpack.c.l.bf16 %v1968_v39  ;;  %v2125_v56 = vunpack.c.h.bf16 %v1968_v39  ;;  %v1892_v42 = vadd.bf16 1065369472, %v5161_v15 }
 0x258   : > { %7545 = vst [vmem:[#allocation45_spill] sm:$0xff] %v6381_v4  ;;  %5176 = vpow.bf16 %v4439_v32  ;;  %v6383_v24 = vpop.f32.mrb[58].mxu1  ;;  %v6385_v8 = vpop.f32.mrb[58].mxu0  ;;  %v2109_v22 = vunpack.c.l.bf16 %v1972_v53  ;;  %v2127_v44 = vunpack.c.h.bf16 %v1972_v53  ;;  %v1894_v28 = vadd.bf16 1065369472, %v5163_v38 }
 0x259   : > { %7546 = vst [vmem:[#allocation46_spill] sm:$0xff] %v6383_v24  ;;  %7547 = vst [vmem:[#allocation47_spill] sm:$0xff] %v6385_v8  ;;  %v5165_v13 = vpop.eup %5164  ;;  %5178 = vpow.bf16 %v4441_v16  ;;  %v6387_v1 = vpop.f32.mrb[59].mxu1  ;;  %v2251_v4 = vmul.f32 %v2107_v14, %v6067_v2  ;;  %v2269_v39 = vmul.f32 %v2125_v56, %v6139_v58 }
 0x25a   : > { %7548 = vst [vmem:[#allocation48_spill] sm:$0xff] %v6387_v1  ;;  %v6389_v29 = vpop.f32.mrb[59].mxu0  ;;  %v5167_v63 = vpop.eup %5166  ;;  %v1970_v15 = vmul.bf16 1065369472, %v5165_v13  ;;  %5180 = vrcp.bf16 %v1892_v42  ;;  %v2253_v32 = vmul.f32 %v2109_v22, %v6075_v46  ;;  %v2271_v8 = vmul.f32 %v2127_v44, %v6143_v23 }
 0x25b   : > { %7549 = vst [vmem:[#allocation49_spill] sm:$0xff] %v6389_v29  ;;  %v1974_v24 = vmul.bf16 1065369472, %v5167_v63  ;;  %5182 = vrcp.bf16 %v1894_v28  ;;  %v2402_v38 = vadd.f32 %v6239_v35, %v2251_v4  ;;  %v6397_v2 = vpop.f32.mrb[60].mxu1  ;;  %v6399_v58 = vpop.f32.mrb[60].mxu0 }
 0x25c   : > { %v2108_v53 = vunpack.c.l.bf16 %v1970_v15  ;;  %v2126_v16 = vunpack.c.h.bf16 %v1970_v15  ;;  %5184 = vpow.bf16 %v4388_v12  ;;  %v2416_v29 = vadd.f32 %v6249_v18, %v2253_v32  ;;  %v6403_v63 = vpop.f32.mrb[61].mxu1  ;;  %v6405_v35 = vpop.f32.mrb[61].mxu0 }
 0x25d   : > { %v2110_v1 = vunpack.c.l.bf16 %v1974_v24  ;;  %v2128_v57 = vunpack.c.h.bf16 %v1974_v24  ;;  %5186 = vpow.bf16 %v4390_v6  ;;  %v2403_v56 = vadd.f32 %v2402_v38, %v2269_v39  ;;  %v6409_v4 = vpop.f32.mrb[62].mxu1  ;;  %v6411_v24 = vpop.f32.mrb[62].mxu0 }
 0x25e   : > { %v2252_v46 = vmul.f32 %v2108_v53, %v6127_v43  ;;  %v2270_v23 = vmul.f32 %v2126_v16, %v6151_v20  ;;  %5188 = vpow.bf16 %v4389_v61  ;;  %v5169_v12 = vpop.eup %5168  ;;  %v2417_v14 = vadd.f32 %v2416_v29, %v2271_v8 }
 0x25f   : > { %v2254_v18 = vmul.f32 %v2110_v1, %v6131_v45  ;;  %v2272_v42 = vmul.f32 %v2128_v57, %v6155_v50  ;;  %v4391_v6 = vmul.bf16 3216621497, %v1502_v37  ;;  %v5171_v13 = vpop.eup %5170  ;;  %v2004_v20 = vmul.bf16 1065369472, %v5169_v12  ;;  %v6422_v45 = vpop.f32.mrb[63].mxu1 }
 0x260   : > { %v2409_v43 = vadd.f32 %v6271_v17, %v2252_v46  ;;  %v6416_v61 = vadd.f32 %v6135_v47, %v7528_v10  ;;  %v6420_v29 = vadd.f32 %v6145_v52, %v7530_v11  ;;  %7550 = vst [vmem:[#allocation50_spill] sm:$0xff] %v6422_v45  ;;  %v6424_v50 = vpop.f32.mrb[63].mxu0  ;;  %v5173_v57 = vpop.eup %5172  ;;  %v2008_v8 = vmul.bf16 1065369472, %v5171_v13 }
 0x261   : > { %7551 = vst [vmem:[#allocation51_spill] sm:$0xff] %v6424_v50  ;;  %v2423_v37 = vadd.f32 %v6277_v5, %v2254_v18  ;;  %5190 = vpow.bf16 %v4391_v6  ;;  %v6429_v17 = vadd.f32 %v6147_v51, %v7534_v36  ;;  %v5175_v22 = vpop.eup %5174  ;;  %v2143_v44 = vunpack.c.l.bf16 %v2004_v20 }
 0x262   : > { %v2410_v47 = vadd.f32 %v2409_v43, %v2270_v23  ;;  %v2161_v28 = vunpack.c.h.bf16 %v2004_v20  ;;  %v1909_v1 = vadd.bf16 1065369472, %v5173_v57  ;;  %v2145_v15 = vunpack.c.l.bf16 %v2008_v8  ;;  %v6435_v6 = vpop.f32.mrb[64].mxu1 }
 0x263   : > { %v5177_v52 = vpop.eup %5176  ;;  %v2424_v39 = vadd.f32 %v2423_v37, %v2272_v42  ;;  %v2163_v32 = vunpack.c.h.bf16 %v2008_v8  ;;  %v1911_v38 = vadd.bf16 1065369472, %v5175_v22  ;;  %v2287_v16 = vmul.f32 %v2143_v44, %v6185_v21  ;;  %7552 = vst [vmem:[#allocation52_spill] sm:$0xff] %v6435_v6  ;;  %v6437_v42 = vpop.f32.mrb[64].mxu0 }
 0x264   : > { %v5179_v53 = vpop.eup %5178  ;;  %v2305_v5 = vmul.f32 %v2161_v28, %v6209_v62  ;;  %5192 = vrcp.bf16 %v1909_v1  ;;  %v1910_v46 = vadd.bf16 1065369472, %v5177_v52  ;;  %v2289_v51 = vmul.f32 %v2145_v15, %v6189_v31  ;;  %7553 = vst [vmem:[#allocation53_spill] sm:$0xff] %v6437_v42  ;;  %v6443_v21 = vpop.f32.mrb[65].mxu1 }
 0x265   : > { %v5181_v12 = vpop.eup %5180  ;;  %v2307_v23 = vmul.f32 %v2163_v32, %v6217_v40  ;;  %5194 = vrcp.bf16 %v1911_v38  ;;  %v1912_v18 = vadd.bf16 1065369472, %v5179_v53  ;;  %v2404_v43 = vadd.f32 %v2403_v56, %v2287_v16  ;;  %7554 = vst [vmem:[#allocation54_spill] sm:$0xff] %v6443_v21  ;;  %v6445_v57 = vpop.f32.mrb[65].mxu0  ;;  %v7614_v21 = vld [vmem:[#allocation16_spill] sm:$0xff] }
 0x266   : > { %v5183_v13 = vpop.eup %5182  ;;  %v2006_v20 = vmul.bf16 1065369472, %v5181_v12  ;;  %5196 = vrcp.bf16 %v1910_v46  ;;  %v6441_v62 = vadd.f32 %v6157_v30, %v7526_v9  ;;  %7555 = vst [vmem:[#allocation55_spill] sm:$0xff] %v6445_v57  ;;  %v2418_v40 = vadd.f32 %v2417_v14, %v2289_v51  ;;  %v6451_v22 = vpop.f32.mrb[66].mxu1 }
 0x267   : > { %v5185_v31 = vpop.eup %5184  ;;  %v2010_v37 = vmul.bf16 1065369472, %v5183_v13  ;;  %5198 = vrcp.bf16 %v1912_v18  ;;  %v6449_v8 = vadd.f32 %v6159_v33, %v7528_v10  ;;  %7556 = vst [vmem:[#allocation56_spill] sm:$0xff] %v6451_v22  ;;  %v6453_v56 = vpop.f32.mrb[66].mxu0  ;;  %v6455_v28 = vadd.f32 %v2404_v43, %v2305_v5 }
 0x268   : > { %7557 = vst [vmem:[#allocation57_spill] sm:$0xff] %v6453_v56  ;;  %v5187_v44 = vpop.eup %5186  ;;  %v2144_v30 = vunpack.c.l.bf16 %v2006_v20  ;;  %v2162_v1 = vunpack.c.h.bf16 %v2006_v20  ;;  %v1859_v52 = vadd.bf16 1065369472, %v5185_v31  ;;  %v6457_v15 = vpop.f32.mrb[67].mxu1  ;;  %v6461_v38 = vadd.f32 %v2418_v40, %v2307_v23 }
 0x269   : > { %7558 = vst [vmem:[#allocation58_spill] sm:$0xff] %v6457_v15  ;;  %v6459_v32 = vpop.f32.mrb[67].mxu0  ;;  %v5189_v14 = vpop.eup %5188  ;;  %v2146_v53 = vunpack.c.l.bf16 %v2010_v37  ;;  %v2164_v33 = vunpack.c.h.bf16 %v2010_v37  ;;  %v1861_v16 = vadd.bf16 1065369472, %v5187_v44  ;;  %v1517_v13 = vpack.c.bf16 %v6441_v62, %v6371_v54 }
 0x26a   : > { %7559 = vst [vmem:[#allocation59_spill] sm:$0xff] %v6459_v32  ;;  %v2288_v46 = vmul.f32 %v2144_v30, %v6197_v49  ;;  %v2306_v12 = vmul.f32 %v2162_v1, %v6243_v19  ;;  %5200 = vrcp.bf16 %v1859_v52  ;;  %v1860_v5 = vadd.bf16 1065369472, %v5189_v14  ;;  %v7601_v32 = vld [vmem:[#allocation31_spill] sm:$0xff] }
 0x26b   : > { %v2290_v51 = vmul.f32 %v2146_v53, %v6201_v48  ;;  %v2308_v18 = vmul.f32 %v2164_v33, %v6253_v41  ;;  %5202 = vrcp.bf16 %v1861_v16  ;;  %v1519_v20 = vpack.c.bf16 %v6449_v8, %v6416_v61  ;;  %v6479_v41 = vpop.f32.mrb[68].mxu1 }
 0x26c   : > { %v5191_v43 = vpop.eup %5190  ;;  %v2411_v23 = vadd.f32 %v2410_v47, %v2288_v46  ;;  %5204 = vrcp.bf16 %v1860_v5  ;;  %v6473_v49 = vadd.f32 %v6163_v55, %v7530_v11  ;;  %v4406_v40 = vmul.bf16 3216621497, %v1517_v13  ;;  %7560 = vst [vmem:[#allocation60_spill] sm:$0xff] %v6479_v41  ;;  %v6487_v55 = vpop.f32.mrb[69].mxu1  ;;  %v7565_v13 = vld [vmem:[#allocation13_spill] sm:$0xff] }
 0x26d   : > { %v2425_v19 = vadd.f32 %v2424_v39, %v2290_v51  ;;  %v1862_v31 = vadd.bf16 1065369472, %v5191_v43  ;;  %v6477_v48 = vadd.f32 %v6165_v27, %v7534_v36  ;;  %v4408_v44 = vmul.bf16 3216621497, %v1519_v20  ;;  %7561 = vst [vmem:[#allocation61_spill] sm:$0xff] %v6487_v55  ;;  %v6495_v14 = vpop.f32.mrb[70].mxu1 }
 0x26e   : > { %v2412_v37 = vadd.f32 %v2411_v23, %v2306_v12  ;;  %v1518_v47 = vpack.c.bf16 %v6473_v49, %v6420_v29  ;;  %v6485_v30 = vadd.f32 %v6179_v59, %v7526_v9  ;;  %v6493_v52 = vadd.f32 %v6181_v0, %v7528_v10  ;;  %7562 = vst [vmem:[#allocation62_spill] sm:$0xff] %v6495_v14  ;;  %v7563_v59 = vld [vmem:[#allocation10_spill] sm:$0xff]  ;;  %v6501_v12 = vpop.f32.mrb[71].mxu1 }
 0x26f   : > { %v5193_v39 = vpop.eup %5192  ;;  %v2426_v1 = vadd.f32 %v2425_v19, %v2308_v18  ;;  %5206 = vrcp.bf16 %v1862_v31  ;;  %v1520_v27 = vpack.c.bf16 %v6477_v48, %v6429_v17  ;;  %v6499_v46 = vadd.f32 %v7563_v59, %v7530_v11  ;;  %7564 = vst [vmem:[#allocation10_spill] sm:$0xff] %v6501_v12 }
 0x270   : > { %v5195_v53 = vpop.eup %5194  ;;  %v2040_v33 = vmul.bf16 1065369472, %v5193_v39  ;;  %5208 = vpow.bf16 %v4406_v40  ;;  %v4407_v16 = vmul.bf16 3216621497, %v1518_v47  ;;  %v6505_v0 = vadd.f32 %v7565_v13, %v7534_v36 }
 0x271   : > { %v5197_v5 = vpop.eup %5196  ;;  %v2044_v51 = vmul.bf16 1065369472, %v5195_v53  ;;  %5210 = vpow.bf16 %v4408_v44  ;;  %v4409_v18 = vmul.bf16 3216621497, %v1520_v27 }
 0x272   : > { %v5199_v43 = vpop.eup %5198  ;;  %v2179_v23 = vunpack.c.l.bf16 %v2040_v33  ;;  %v2197_v20 = vunpack.c.h.bf16 %v2040_v33  ;;  %v2042_v19 = vmul.bf16 1065369472, %v5197_v5  ;;  %5212 = vpow.bf16 %v4407_v16  ;;  %v6511_v33 = vpop.f32.mrb[72].mxu1 }
 0x273   : > { %v2181_v31 = vunpack.c.l.bf16 %v2044_v51  ;;  %v2199_v40 = vunpack.c.h.bf16 %v2044_v51  ;;  %v2046_v47 = vmul.bf16 1065369472, %v5199_v43  ;;  %5214 = vpow.bf16 %v4409_v18  ;;  %7566 = vst [vmem:[#allocation13_spill] sm:$0xff] %v6511_v33 }
 0x274   : > { %v2323_v39 = vmul.f32 %v2179_v23, %v6275_v3  ;;  %v2341_v59 = vmul.f32 %v2197_v20, %v6297_v25  ;;  %v2180_v53 = vunpack.c.l.bf16 %v2042_v19  ;;  %v2198_v44 = vunpack.c.h.bf16 %v2042_v19  ;;  %v6516_v25 = vpop.f32.mrb[73].mxu1 }
 0x275   : > { %v5201_v27 = vpop.eup %5200  ;;  %v2325_v12 = vmul.f32 %v2181_v31, %v6281_v7  ;;  %v2343_v13 = vmul.f32 %v2199_v40, %v6305_v60  ;;  %v2182_v55 = vunpack.c.l.bf16 %v2046_v47  ;;  %v2200_v14 = vunpack.c.h.bf16 %v2046_v47  ;;  %7567 = vst [vmem:[#allocation63_spill] sm:$0xff] %v6516_v25  ;;  %v7568_v7 = vld [vmem:[#allocation18_spill] sm:$0xff]  ;;  %v7569_v60 = vld [vmem:[#allocation21_spill] sm:$0xff]  ;;  %v6521_v40 = vpop.f32.mrb[74].mxu1 }
 0x276   : > { %v5203_v16 = vpop.eup %5202  ;;  %v2406_v5 = vadd.f32 %v6455_v28, %v2323_v39  ;;  %v2324_v51 = vmul.f32 %v2180_v53, %v6289_v34  ;;  %v2342_v3 = vmul.f32 %v2198_v44, %v6309_v26  ;;  %v1940_v18 = vmul.bf16 1065369472, %v5201_v27  ;;  %7570 = vst [vmem:[#allocation18_spill] sm:$0xff] %v6521_v40  ;;  %v6523_v34 = vpop.f32.mrb[75].mxu1 }
 0x277   : > { %v5205_v43 = vpop.eup %5204  ;;  %v2420_v23 = vadd.f32 %v6461_v38, %v2325_v12  ;;  %v2326_v20 = vmul.f32 %v2182_v55, %v7568_v7  ;;  %v2344_v19 = vmul.f32 %v2200_v14, %v7569_v60  ;;  %v1944_v31 = vmul.bf16 1065369472, %v5203_v16  ;;  %7571 = vst [vmem:[#allocation21_spill] sm:$0xff] %v6523_v34  ;;  %v7572_v12 = vld [vmem:[#allocation6_spill] sm:$0xff]  ;;  %v7573_v7 = vld [vmem:[#allocation40_spill] sm:$0xff] }
 0x278   : > { %v2407_v47 = vadd.f32 %v2406_v5, %v2341_v59  ;;  %v2413_v33 = vadd.f32 %v2412_v37, %v2324_v51  ;;  %v2075_v28 = vunpack.c.l.bf16 %v1940_v18  ;;  %v2093_v39 = vunpack.c.h.bf16 %v1940_v18  ;;  %v7574_v59 = vld [vmem:[#allocation7_spill] sm:$0xff]  ;;  %v7575_v5 = vld [vmem:[#allocation41_spill] sm:$0xff] }
 0x279   : > { %v2421_v26 = vadd.f32 %v2420_v23, %v2343_v13  ;;  %v2427_v53 = vadd.f32 %v2426_v1, %v2326_v20  ;;  %v2077_v44 = vunpack.c.l.bf16 %v1944_v31  ;;  %v2095_v27 = vunpack.c.h.bf16 %v1944_v31 }
 0x27a   : > { %v5207_v25 = vpop.eup %5206  ;;  %v2580_v41 = vrot.slane %v2407_v47, 4  ;;  %v2414_v38 = vadd.f32 %v2413_v33, %v2342_v3  ;;  %v2219_v55 = vmul.f32 %v2075_v28, %v7572_v12  ;;  %v2237_v14 = vmul.f32 %v2093_v39, %v7573_v7  ;;  %v6533_v39 = vpop.f32.mrb[76].mxu1 }
 0x27b   : > { %v5209_v16 = vpop.eup %5208  ;;  %v2592_v60 = vrot.slane %v2421_v26, 4  ;;  %v2428_v40 = vadd.f32 %v2427_v53, %v2344_v19  ;;  %v2221_v37 = vmul.f32 %v2077_v44, %v7574_v59  ;;  %v2239_v51 = vmul.f32 %v2095_v27, %v7575_v5  ;;  %7576 = vst [vmem:[#allocation6_spill] sm:$0xff] %v6533_v39  ;;  %v6537_v7 = vpop.f32.mrb[77].mxu1 }
 0x27c   : > { %v5211_v18 = vpop.eup %5210  ;;  %v2581_v34 = vadd.f32 %v2580_v41, %v2407_v47  ;;  %v2586_v13 = vrot.slane %v2414_v38, 4  ;;  %v6529_v1 = vadd.f32 %v2237_v14, %v2219_v55  ;;  %v1942_v23 = vmul.bf16 1065369472, %v5205_v43  ;;  %7578 = vst [vmem:[#allocation7_spill] sm:$0xff] %v6537_v7 }
 0x27d   : > { %v5213_v20 = vpop.eup %5212  ;;  %v2593_v31 = vadd.f32 %v2592_v60, %v2421_v26  ;;  %v2598_v33 = vrot.slane %v2428_v40, 4  ;;  %v6531_v3 = vadd.f32 %v2239_v51, %v2221_v37  ;;  %v1946_v28 = vmul.bf16 1065369472, %v5207_v25  ;;  %v6541_v26 = vpop.f32.mrb[78].mxu1  ;;  %v7582_v60 = vld [vmem:[#allocation11_spill] sm:$0xff]  ;;  %v7583_v37 = vld [vmem:[#allocation24_spill] sm:$0xff] }
 0x27e   : > { %v5215_v12 = vpop.eup %5214  ;;  %v2582_v19 = vrot.slane %v2581_v34, 2  ;;  %v6535_v53 = vadd.f32 %v2586_v13, %v2414_v38  ;;  %v2076_v44 = vunpack.c.l.bf16 %v1942_v23  ;;  %v2094_v27 = vunpack.c.h.bf16 %v1942_v23  ;;  %7580 = vst [vmem:[#allocation64_spill] sm:$0xff] %v6541_v26  ;;  %v6548_v5 = vpop.f32.mrb[79].mxu1 }
 0x27f   : > { %v2594_v41 = vrot.slane %v2593_v31, 2  ;;  %v6539_v47 = vadd.f32 %v2598_v33, %v2428_v40  ;;  %v2078_v43 = vunpack.c.l.bf16 %v1946_v28  ;;  %v2096_v55 = vunpack.c.h.bf16 %v1946_v28  ;;  %7584 = vst [vmem:[#allocation11_spill] sm:$0xff] %v6548_v5  ;;  %v7586_v40 = vld [vmem:[#allocation12_spill] sm:$0xff]  ;;  %v7587_v33 = vld [vmem:[#allocation25_spill] sm:$0xff] }
 0x280   : > { %7577 = vst [vmem:[#allocation40_spill] sm:$0xff] %v6535_v53  ;;  %v6543_v14 = vadd.f32 %v2582_v19, %v2581_v34  ;;  %v2220_v59 = vmul.f32 %v2076_v44, %v7582_v60  ;;  %v2238_v38 = vmul.f32 %v2094_v27, %v7583_v37  ;;  %v1877_v34 = vadd.bf16 1065369472, %v5209_v16  ;;  %v7588_v27 = vld [vmem:[#allocation14_spill] sm:$0xff]  ;;  %v7591_v16 = vld [vmem:[#allocation27_spill] sm:$0xff] }
 0x281   : > { %7579 = vst [vmem:[#allocation41_spill] sm:$0xff] %v6539_v47  ;;  %v6550_v51 = vadd.f32 %v2594_v41, %v2593_v31  ;;  %v2222_v23 = vmul.f32 %v2078_v43, %v7586_v40  ;;  %v2240_v28 = vmul.f32 %v2096_v55, %v7587_v33  ;;  %v1879_v19 = vadd.bf16 1065369472, %v5211_v18  ;;  %v7589_v31 = vld [vmem:[#allocation15_spill] sm:$0xff]  ;;  %v7590_v43 = vld [vmem:[#allocation26_spill] sm:$0xff]  ;;  %v7594_v40 = vld [vmem:[#allocation8_spill] sm:$0xff] }
 0x282   : > { %7581 = vst [vmem:[#allocation65_spill] sm:$0xff] %v6543_v14  ;;  %v6555_v7 = vadd.f32 %v2238_v38, %v2220_v59  ;;  %v1878_v26 = vadd.bf16 1065369472, %v5213_v20  ;;  %v1880_v44 = vadd.bf16 1065369472, %v5215_v12  ;;  %v6561_v60 = vadd.f32 %v7588_v27, %v7526_v9  ;;  %v7592_v20 = vld [vmem:[#allocation9_spill] sm:$0xff] }
 0x283   : > { %7585 = vst [vmem:[#allocation24_spill] sm:$0xff] %v6550_v51  ;;  %v6557_v25 = vadd.f32 %v2240_v28, %v2222_v23  ;;  %v6565_v41 = vadd.f32 %v7589_v31, %v7528_v10  ;;  %5216 = vrcp.bf16 %v1877_v34  ;;  %v6569_v55 = vadd.f32 %v7590_v43, %v7530_v11  ;;  %v6585_v28 = vpop.f32.mrb[80].mxu1 }
 0x284   : > { %v6573_v18 = vadd.f32 %v7591_v16, %v7534_v36  ;;  %v7593_v12 = vrot.slane %v7592_v20, 2  ;;  %5218 = vrcp.bf16 %v1879_v19  ;;  %v1535_v37 = vpack.c.bf16 %v6561_v60, %v6485_v30  ;;  %7596 = vst [vmem:[#allocation12_spill] sm:$0xff] %v6585_v28  ;;  %v6591_v31 = vpop.f32.mrb[81].mxu1 }
 0x285   : > { %v1537_v38 = vpack.c.bf16 %v6565_v41, %v6493_v52  ;;  %v7595_v23 = vrot.slane %v7594_v40, 2  ;;  %5220 = vrcp.bf16 %v1878_v26  ;;  %v1536_v34 = vpack.c.bf16 %v6569_v55, %v6499_v46  ;;  %7597 = vst [vmem:[#allocation25_spill] sm:$0xff] %v6591_v31  ;;  %v7599_v26 = vld [vmem:[#allocation30_spill] sm:$0xff] }
 0x286   : > { %v2565_v59 = vadd.f32 %v7593_v12, %v7592_v20  ;;  %v1538_v27 = vpack.c.bf16 %v6573_v18, %v6505_v0  ;;  %5222 = vrcp.bf16 %v1880_v44  ;;  %v4424_v43 = vmul.bf16 3216621497, %v1535_v37  ;;  %v6593_v12 = vpop.f32.mrb[82].mxu1  ;;  %v7602_v44 = vld [vmem:[#allocation32_spill] sm:$0xff] }
 0x287   : > { %v2577_v33 = vadd.f32 %v7595_v23, %v7594_v40  ;;  %v4426_v16 = vmul.bf16 3216621497, %v1537_v38  ;;  %7598 = vst [vmem:[#allocation14_spill] sm:$0xff] %v6593_v12  ;;  %v4425_v13 = vmul.bf16 3216621497, %v1536_v34  ;;  %v6597_v28 = vadd.f32 %v7599_v26, %v7526_v9  ;;  %v6599_v5 = vpop.f32.mrb[83].mxu1 }
 0x288   : > { %v2566_v19 = vrot.slane %v2565_v59, 1  ;;  %v4427_v40 = vmul.bf16 3216621497, %v1538_v27  ;;  %7600 = vst [vmem:[#allocation15_spill] sm:$0xff] %v6599_v5  ;;  %5224 = vpow.bf16 %v4424_v43  ;;  %v6603_v31 = vadd.f32 %v7601_v32, %v7528_v10  ;;  %v7604_v27 = vld [vmem:[#allocation34_spill] sm:$0xff]  ;;  %v7605_v43 = vld [vmem:[#allocation35_spill] sm:$0xff] }
 0x289   : > { %v2578_v20 = vrot.slane %v2577_v33, 1  ;;  %v6607_v37 = vadd.f32 %v7602_v44, %v7530_v11  ;;  %5226 = vpow.bf16 %v4426_v16  ;;  %v6619_v32 = vadd.f32 %v7605_v43, %v7528_v10  ;;  %v4939_v10 = vld [vmem:[%s7414_s5 + $0x180] sm:$0xff]  }
 0x28a   : > { %v2567_v23 = vadd.f32 %v2566_v19, %v2565_v59  ;;  %v7603_v59 = vld [vmem:[#allocation33_spill] sm:$0xff]  ;;  %v6615_v19 = vadd.f32 %v7604_v27, %v7526_v9  ;;  %5228 = vpow.bf16 %v4425_v13 }
 0x28b   : > { %v2579_v39 = vadd.f32 %v2578_v20, %v2577_v33  ;;  %v6611_v34 = vadd.f32 %v7603_v59, %v7534_v36  ;;  %v7606_v20 = vld [vmem:[#allocation36_spill] sm:$0xff]  ;;  %5230 = vpow.bf16 %v4427_v40  ;;  %v7607_v13 = vld [vmem:[#allocation37_spill] sm:$0xff]  ;;  %v7608_v59 = vld [vmem:[#allocation3_spill] sm:$0xff] }
 0x28c   : > { %v2665_v38 = vmul.f32 0.015625, %v2567_v23  ;;  %v6623_v26 = vadd.f32 %v7606_v20, %v7530_v11  ;;  %v4938_v23 = vld [vmem:[%s7414_s5 + $0x100] sm:$0xff]   ;;  %v1553_v9 = vpack.c.bf16 %v6615_v19, %v6597_v28  ;;  %v1555_v11 = vpack.c.bf16 %v6619_v32, %v6603_v31 }
 0x28d   : > { %v2667_v33 = vmul.f32 0.015625, %v2579_v39  ;;  %v6632_v39 = vadd.f32 %v7607_v13, %v7534_v36  ;;  %v5352_v36 = vld [vmem:[%s7413_s4 + $0x8] sm:$0xff]  ;;  %v7609_v27 = vsub.s32 4, %v7608_v59  ;;  %v7610_v5 = vsub.s32 6, %v7608_v59 }
 0x28e   : > { %v2683_v16 = vpack.c.bf16 %v2665_v38, %v2665_v38  ;;  %v1554_v40 = vpack.c.bf16 %v6623_v26, %v6607_v37  ;;  %v4940_v38 = vld [vmem:[%s7414_s5 + $0x148] sm:$0xff]   ;;  %v4442_v43 = vmul.bf16 3216621497, %v1553_v9  ;;  %v7611_v15 = vsub.s32 5, %v7608_v59  ;;  %v5217_v22 = vpop.eup %5216 }
 0x28f   : > { %v2685_v44 = vpack.c.bf16 %v2667_v33, %v2667_v33  ;;  %v6649_v33 = vrot.slane %v5352_v36, %v7609_v27  ;;  %v1556_v20 = vpack.c.bf16 %v6632_v39, %v6611_v34  ;;  %v4941_v13 = vld [vmem:[%s7414_s5 + $0x1c8] sm:$0xff]   ;;  %v6658_v12 = vrot.slane %v5352_v36, %v7610_v5  ;;  %v5219_v51 = vpop.eup %5218 }
 0x290   : > { %3885 = vmatprep.mubr.bf16.mxu0 %v2683_v16  ;;  %v6662_v56 = vrot.slane %v5352_v36, %v7611_v15  ;;  %v7612_v27 = vld [vmem:[#allocation28_spill] sm:$0xff]  ;;  %v4444_v9 = vmul.bf16 3216621497, %v1555_v11  ;;  %v4443_v57 = vmul.bf16 3216621497, %v1554_v40  ;;  %v7615_v6 = vsub.s32 7, %v7608_v59  ;;  %v5221_v59 = vpop.eup %5220 }
 0x291   : > { %3925 = vmatprep.mubr.bf16.mxu1 %v2685_v44  ;;  %v7613_v16 = vpack.c.bf16 %v7612_v27, %v7612_v27  ;;  %v6669_v42 = vadd.f32 %v7614_v21, %v6649_v33  ;;  %v1976_v14 = vmul.bf16 1065369472, %v5217_v22  ;;  %v7616_v15 = vld [vmem:[#allocation29_spill] sm:$0xff]  ;;  %5232 = vpow.bf16 %v4442_v43  ;;  %v4942_v11 = vld [vmem:[%s7414_s5 + $0x108] sm:$0xff]  }
 0x292   : > { %v6673_v5 = vrot.slane %v5352_v36, %v7615_v6  ;;  %v7617_v47 = vpack.c.bf16 %v7616_v15, %v7616_v15  ;;  %v4445_v44 = vmul.bf16 3216621497, %v1556_v20  ;;  %v7618_v21 = vld [vmem:[#allocation17_spill] sm:$0xff]  ;;  %v1980_v6 = vmul.bf16 1065369472, %v5219_v51  ;;  %v4943_v22 = vld [vmem:[%s7414_s5 + $0x188] sm:$0xff]   ;;  %v5223_v51 = vpop.eup %5222 }
 0x293   : > { %3886 = vmatmul.mubr.bf16.vlgmr.msra.gmra.mrb[68].mxu0 %v7613_v16  ;;  %v6683_v40 = vadd.f32 %v7618_v21, %v6658_v12  ;;  %5234 = vpow.bf16 %v4444_v9  ;;  %v7620_v43 = vld [vmem:[#allocation20_spill] sm:$0xff]  ;;  %v2129_v27 = vunpack.c.h.bf16 %v1976_v14  ;;  %v4945_v16 = vld [vmem:[%s7414_s5 + $0x1d0] sm:$0xff]   ;;  %v1982_v21 = vmul.bf16 1065369472, %v5223_v51 }
 0x294   : > { %3926 = vmatmul.mubr.bf16.vlgmr.msra.gmra.mrb[84].mxu1 %v7617_v47  ;;  %4650 = vmatpush3.bf16.msra.mxu0 %v4938_v23  ;;  %v4944_v47 = vld [vmem:[%s7414_s5 + $0x150] sm:$0xff]   ;;  %v7619_v23 = vld [vmem:[#allocation19_spill] sm:$0xff]  ;;  %v6697_v20 = vadd.f32 %v7620_v43, %v6673_v5  ;;  %5236 = vpow.bf16 %v4443_v57  ;;  %v2113_v9 = vunpack.c.l.bf16 %v1980_v6  ;;  %v2131_v15 = vunpack.c.h.bf16 %v1980_v6 }
 0x295   : > { %4672 = vmatpush3.bf16.msra.mxu1 %v4939_v10  ;;  %4651 = vmatprep.subr.bf16.mxu0 %v4940_v38  ;;  %v6693_v36 = vadd.f32 %v7619_v23, %v6662_v56  ;;  %v2111_v10 = vunpack.c.l.bf16 %v1976_v14  ;;  %v1978_v38 = vmul.bf16 1065369472, %v5221_v59  ;;  %5238 = vpow.bf16 %v4445_v44  ;;  %v5225_v23 = vpop.eup %5224  ;;  %v4946_v57 = vld [vmem:[%s7414_s5 + $0x110] sm:$0xff]  }
 0x296   : > { %4673 = vmatprep.subr.bf16.mxu1 %v4941_v13  ;;  %v2273_v43 = vmul.f32 %v2129_v27, %v6441_v62  ;;  %v5227_v14 = vpop.eup %5226  ;;  %v2257_v13 = vmul.f32 %v2113_v9, %v6416_v61  ;;  %v2275_v59 = vmul.f32 %v2131_v15, %v6449_v8  ;;  %v2114_v6 = vunpack.c.l.bf16 %v1982_v21  ;;  %v4948_v62 = vld [vmem:[%s7414_s5 + $0x158] sm:$0xff]  }
 0x297   : > { %v2255_v53 = vmul.f32 %v2111_v10, %v6371_v54  ;;  %v2112_v50 = vunpack.c.l.bf16 %v1978_v38  ;;  %v2130_v45 = vunpack.c.h.bf16 %v1978_v38  ;;  %v2132_v51 = vunpack.c.h.bf16 %v1982_v21  ;;  %v4947_v54 = vld [vmem:[%s7414_s5 + $0x190] sm:$0xff]   ;;  %v5229_v44 = vpop.eup %5228 }
 0x298   : > { %4652 = vmatpush3.bf16.msra.mxu0 %v4942_v11  ;;  %v1895_v8 = vadd.bf16 1065369472, %v5225_v23  ;;  %v2444_v27 = vadd.f32 %v6531_v3, %v2257_v13  ;;  %v2258_v38 = vmul.f32 %v2114_v6, %v6429_v17  ;;  %v1897_v15 = vadd.bf16 1065369472, %v5227_v14  ;;  %v4952_v3 = vld [vmem:[%s7414_s5 + $0x160] sm:$0xff]   ;;  %v7623_v13 = vld [vmem:[#allocation38_spill] sm:$0xff] }
 0x299   : > { %4674 = vmatpush3.bf16.msra.mxu1 %v4943_v22  ;;  %4653 = vmatprep.subr.bf16.mxu0 %v4944_v47  ;;  %v2430_v11 = vadd.f32 %v6529_v1, %v2255_v53  ;;  %v2256_v10 = vmul.f32 %v2112_v50, %v6420_v29  ;;  %v2274_v61 = vmul.f32 %v2130_v45, %v6473_v49  ;;  %v4949_v22 = vld [vmem:[%s7414_s5 + $0x1d8] sm:$0xff]   ;;  %v5231_v47 = vpop.eup %5230  ;;  %v1896_v45 = vadd.bf16 1065369472, %v5229_v44  ;;  %v7624_v6 = vld [vmem:[#allocation39_spill] sm:$0xff] }
 0x29a   : > { %4675 = vmatprep.subr.bf16.mxu1 %v4945_v16  ;;  %v2276_v9 = vmul.f32 %v2132_v51, %v6477_v48  ;;  %5240 = vrcp.bf16 %v1895_v8  ;;  %v4950_v50 = vld [vmem:[%s7414_s5 + $0x118] sm:$0xff]   ;;  %v6730_v49 = vadd.f32 %v2444_v27, %v2275_v59  ;;  %v2451_v1 = vadd.f32 %v6557_v25, %v2258_v38  ;;  %v7622_v25 = vld [vmem:[#allocation23_spill] sm:$0xff] }
 0x29b   : > { %v6724_v21 = vadd.f32 %v2430_v11, %v2273_v43  ;;  %v2437_v29 = vadd.f32 %v6555_v7, %v2256_v10  ;;  %5242 = vrcp.bf16 %v1897_v15  ;;  %v1898_v17 = vadd.bf16 1065369472, %v5231_v47  ;;  %v4951_v48 = vld [vmem:[%s7414_s5 + $0x198] sm:$0xff]   ;;  %v4953_v43 = vld [vmem:[%s7414_s5 + $0x1e0] sm:$0xff]  }
 0x29c   : > { %4654 = vmatpush3.bf16.msra.mxu0 %v4946_v57  ;;  %5244 = vrcp.bf16 %v1896_v45  ;;  %v7621_v7 = vld [vmem:[#allocation22_spill] sm:$0xff]  ;;  %v6747_v23 = vadd.f32 %v7622_v25, %v6658_v12  ;;  %v5233_v57 = vpop.eup %5232  ;;  %v6752_v14 = vadd.f32 %v2451_v1, %v2276_v9  ;;  %v6756_v59 = vadd.f32 %v7623_v13, %v6662_v56  ;;  %v4954_v8 = vld [vmem:[%s7414_s5 + $0x120] sm:$0xff]   ;;  %v4956_v45 = vld [vmem:[%s7414_s5 + $0x168] sm:$0xff]  }
 0x29d   : > { %4676 = vmatpush3.bf16.msra.mxu1 %v4947_v54  ;;  %4655 = vmatprep.subr.bf16.mxu0 %v4948_v62  ;;  %v6739_v53 = vadd.f32 %v2437_v29, %v2274_v61  ;;  %v6743_v16 = vadd.f32 %v7621_v7, %v6649_v33  ;;  %5246 = vrcp.bf16 %v1898_v17  ;;  %v6760_v51 = vadd.f32 %v7624_v6, %v6673_v5  ;;  %v7625_v10 = vld [vmem:[#allocation42_spill] sm:$0xff]  ;;  %v7627_v9 = vld [vmem:[#allocation43_spill] sm:$0xff]  ;;  %v7629_v13 = vld [vmem:[#allocation44_spill] sm:$0xff] }
 0x29e   : > { %4677 = vmatprep.subr.bf16.mxu1 %v4949_v22  ;;  %v5235_v54 = vpop.eup %5234  ;;  %v1913_v62 = vadd.bf16 1065369472, %v5233_v57  ;;  %v1505_v11 = vpack.c.bf16 %v6747_v23, %v6683_v40  ;;  %v6768_v61 = vadd.f32 %v7625_v10, %v6649_v33  ;;  %v1504_v27 = vpack.c.bf16 %v6756_v59, %v6693_v36  ;;  %v4955_v29 = vld [vmem:[%s7414_s5 + $0x1a0] sm:$0xff]  }
 0x29f   : > { %v1503_v44 = vpack.c.bf16 %v6743_v16, %v6669_v42  ;;  %v5237_v22 = vpop.eup %5236  ;;  %v1915_v47 = vadd.bf16 1065369472, %v5235_v54  ;;  %v1506_v38 = vpack.c.bf16 %v6760_v51, %v6697_v20  ;;  %v6779_v15 = vadd.f32 %v7627_v9, %v6658_v12  ;;  %v7631_v54 = vld [vmem:[#allocation45_spill] sm:$0xff]  ;;  %v4959_v9 = vld [vmem:[%s7414_s5 + $0x1a8] sm:$0xff]  }
 0x2a0   : > { %4656 = vmatpush3.bf16.msra.mxu0 %v4950_v50  ;;  %7626 = vst [vmem:[#allocation26_spill] sm:$0xff] %v6768_v61  ;;  %v4957_v50 = vld [vmem:[%s7414_s5 + $0x1e8] sm:$0xff]   ;;  %v5239_v1 = vpop.eup %5238  ;;  %5248 = vrcp.bf16 %v1913_v62  ;;  %v1914_v17 = vadd.bf16 1065369472, %v5237_v22  ;;  %v4393_v25 = vmul.bf16 3216621497, %v1504_v27  ;;  %v6792_v6 = vadd.f32 %v7629_v13, %v6662_v56 }
 0x2a1   : > { %4678 = vmatpush3.bf16.msra.mxu1 %v4951_v48  ;;  %4657 = vmatprep.subr.bf16.mxu0 %v4952_v3  ;;  %7628 = vst [vmem:[#allocation27_spill] sm:$0xff] %v6779_v15  ;;  %v4392_v48 = vmul.bf16 3216621497, %v1503_v44  ;;  %v4394_v3 = vmul.bf16 3216621497, %v1505_v11  ;;  %5250 = vrcp.bf16 %v1915_v47  ;;  %v6796_v10 = vadd.f32 %v7631_v54, %v6673_v5  ;;  %v7632_v62 = vld [vmem:[#allocation46_spill] sm:$0xff] }
 0x2a2   : > { %4679 = vmatprep.subr.bf16.mxu1 %v4953_v43  ;;  %v1916_v7 = vadd.bf16 1065369472, %v5239_v1  ;;  %v4395_v57 = vmul.bf16 3216621497, %v1506_v38  ;;  %5252 = vrcp.bf16 %v1914_v17  ;;  %7630 = vst [vmem:[#allocation9_spill] sm:$0xff] %v6792_v6  ;;  %v6800_v22 = vadd.f32 %v7632_v62, %v6649_v33  ;;  %v4958_v43 = vld [vmem:[%s7414_s5 + $0x128] sm:$0xff]  }
 0x2a3   : > { %v7634_v44 = vld [vmem:[#allocation47_spill] sm:$0xff]  ;;  %v7638_v27 = vld [vmem:[#allocation49_spill] sm:$0xff] }
 0x2a4   : > { %4658 = vmatpush3.bf16.msra.mxu0 %v4954_v8  ;;  %7633 = vst [vmem:[#allocation8_spill] sm:$0xff] %v6800_v22  ;;  %5254 = vrcp.bf16 %v1916_v7  ;;  %v6807_v11 = vadd.f32 %v7634_v44, %v6658_v12  ;;  %v7636_v8 = vld [vmem:[#allocation48_spill] sm:$0xff]  ;;  %v6815_v38 = vadd.f32 %v7638_v27, %v6673_v5  ;;  %v1521_v1 = vpack.c.bf16 %v6800_v22, %v6768_v61  ;;  %v4961_v17 = vld [vmem:[%s7414_s5 + $0x1f0] sm:$0xff]   ;;  %v4964_v27 = vld [vmem:[%s7414_s5 + $0x178] sm:$0xff]  }
 0x2a5   : > { %4680 = vmatpush3.bf16.msra.mxu1 %v4955_v29  ;;  %v6811_v47 = vadd.f32 %v7636_v8, %v6662_v56  ;;  %4659 = vmatprep.subr.bf16.mxu0 %v4956_v45  ;;  %v4960_v29 = vld [vmem:[%s7414_s5 + $0x170] sm:$0xff]   ;;  %5256 = vpow.bf16 %v4392_v48  ;;  %v6830_v45 = vadd.f32 %v6397_v2, %v6649_v33  ;;  %v6834_v7 = vadd.f32 %v6399_v58, %v6658_v12  ;;  %v5241_v13 = vpop.eup %5240 }
 0x2a6   : > { %7635 = vst [vmem:[#allocation30_spill] sm:$0xff] %v6807_v11  ;;  %4681 = vmatprep.subr.bf16.mxu1 %v4957_v50  ;;  %5258 = vpow.bf16 %v4394_v3  ;;  %v1523_v48 = vpack.c.bf16 %v6807_v11, %v6779_v15  ;;  %v4962_v2 = vld [vmem:[%s7414_s5 + $0x130] sm:$0xff]   ;;  %v5243_v62 = vpop.eup %5242  ;;  %v2012_v44 = vmul.bf16 1065369472, %v5241_v13  ;;  %v4410_v58 = vmul.bf16 3216621497, %v1521_v1 }
 0x2a7   : > { %7637 = vst [vmem:[#allocation31_spill] sm:$0xff] %v6811_v47  ;;  %v1522_v50 = vpack.c.bf16 %v6811_v47, %v6792_v6  ;;  %5260 = vpow.bf16 %v4393_v25  ;;  %v4963_v3 = vld [vmem:[%s7414_s5 + $0x1b0] sm:$0xff]   ;;  %v6850_v8 = vadd.f32 %v6403_v63, %v6662_v56  ;;  %v5245_v54 = vpop.eup %5244  ;;  %v2016_v47 = vmul.bf16 1065369472, %v5243_v62  ;;  %v4965_v63 = vld [vmem:[%s7414_s5 + $0x1f8] sm:$0xff]  }
 0x2a8   : > { %4660 = vmatpush3.bf16.msra.mxu0 %v4958_v43  ;;  %5262 = vpow.bf16 %v4395_v57  ;;  %v4412_v6 = vmul.bf16 3216621497, %v1523_v48  ;;  %v5247_v25 = vpop.eup %5246  ;;  %v2147_v43 = vunpack.c.l.bf16 %v2012_v44  ;;  %v2165_v1 = vunpack.c.h.bf16 %v2012_v44 }
 0x2a9   : > { %v6855_v13 = vmul.bf16 3216621497, %v1522_v50  ;;  %4682 = vmatpush3.bf16.msra.mxu1 %v4959_v9  ;;  %4661 = vmatprep.subr.bf16.mxu0 %v4960_v29  ;;  %v2014_v11 = vmul.bf16 1065369472, %v5245_v54  ;;  %5264 = vpow.bf16 %v4410_v58  ;;  %v2149_v15 = vunpack.c.l.bf16 %v2016_v47  ;;  %v4966_v50 = vld [vmem:[%s7414_s5 + $0x138] sm:$0xff]  }
 0x2aa   : > { %4683 = vmatprep.subr.bf16.mxu1 %v4961_v17  ;;  %v2167_v22 = vunpack.c.h.bf16 %v2016_v47  ;;  %v2018_v61 = vmul.bf16 1065369472, %v5247_v25  ;;  %5266 = vpow.bf16 %v4412_v6  ;;  %v2291_v57 = vmul.f32 %v2147_v43, %v6485_v30  ;;  %v4967_v30 = vld [vmem:[%s7414_s5 + $0x1b8] sm:$0xff]  }
 0x2ab   : > { %v2309_v48 = vmul.f32 %v2165_v1, %v6561_v60  ;;  %v2148_v9 = vunpack.c.l.bf16 %v2014_v11  ;;  %v2166_v29 = vunpack.c.h.bf16 %v2014_v11  ;;  %v5249_v17 = vpop.eup %5248  ;;  %v2293_v54 = vmul.f32 %v2149_v15, %v6493_v52  ;;  %v4968_v60 = vld [vmem:[%s7414_s5 + $0x240] sm:$0xff]  }
 0x2ac   : > { %4662 = vmatpush3.bf16.msra.mxu0 %v4962_v2  ;;  %v2311_v62 = vmul.f32 %v2167_v22, %v6565_v41  ;;  %v2150_v44 = vunpack.c.l.bf16 %v2018_v61  ;;  %v2168_v47 = vunpack.c.h.bf16 %v2018_v61  ;;  %v5251_v6 = vpop.eup %5250  ;;  %v2432_v11 = vadd.f32 %v6724_v21, %v2291_v57  ;;  %v4969_v61 = vld [vmem:[%s7414_s5 + $0x2c0] sm:$0xff]  }
 0x2ad   : > { %4684 = vmatpush3.bf16.msra.mxu1 %v4963_v3  ;;  %4663 = vmatprep.subr.bf16.mxu0 %v4964_v27  ;;  %v2292_v2 = vmul.f32 %v2148_v9, %v6499_v46  ;;  %v2310_v52 = vmul.f32 %v2166_v29, %v6569_v55  ;;  %v2048_v41 = vmul.bf16 1065369472, %v5249_v17  ;;  %v5253_v15 = vpop.eup %5252  ;;  %v2446_v22 = vadd.f32 %v6730_v49, %v2293_v54 }
 0x2ae   : > { %4685 = vmatprep.subr.bf16.mxu1 %v4965_v63  ;;  %v2294_v58 = vmul.f32 %v2150_v44, %v6505_v0  ;;  %v2312_v3 = vmul.f32 %v2168_v47, %v6573_v18  ;;  %v2052_v27 = vmul.bf16 1065369472, %v5251_v6  ;;  %v2433_v21 = vadd.f32 %v2432_v11, %v2309_v48 }
 0x2af   : > { %v5255_v25 = vpop.eup %5254  ;;  %v2439_v46 = vadd.f32 %v6739_v53, %v2292_v2  ;;  %v2183_v43 = vunpack.c.l.bf16 %v2048_v41  ;;  %v2201_v55 = vunpack.c.h.bf16 %v2048_v41  ;;  %v2447_v63 = vadd.f32 %v2446_v22, %v2311_v62 }
 0x2b0   : > { %4664 = vmatpush3.bf16.msra.mxu0 %v4966_v50  ;;  %v5257_v1 = vpop.eup %5256  ;;  %v2453_v57 = vadd.f32 %v6752_v14, %v2294_v58  ;;  %v2185_v9 = vunpack.c.l.bf16 %v2052_v27  ;;  %v2203_v29 = vunpack.c.h.bf16 %v2052_v27  ;;  %v2050_v48 = vmul.bf16 1065369472, %v5253_v15 }
 0x2b1   : > { %4686 = vmatpush3.bf16.msra.mxu1 %v4967_v30  ;;  %4693 = vmatprep.subr.bf16.mxu0 %v4968_v60  ;;  %v5259_v49 = vpop.eup %5258  ;;  %v2440_v0 = vadd.f32 %v2439_v46, %v2310_v52  ;;  %v2327_v18 = vmul.f32 %v2183_v43, %v6597_v28  ;;  %v2345_v17 = vmul.f32 %v2201_v55, %v6615_v19  ;;  %v2054_v44 = vmul.bf16 1065369472, %v5255_v25 }
 0x2b2   : > { %4715 = vmatprep.subr.bf16.mxu1 %v4969_v61  ;;  %v5261_v53 = vpop.eup %5260  ;;  %v2454_v54 = vadd.f32 %v2453_v57, %v2312_v3  ;;  %v2329_v50 = vmul.f32 %v2185_v9, %v6603_v31  ;;  %v2347_v62 = vmul.f32 %v2203_v29, %v6619_v32  ;;  %v2184_v6 = vunpack.c.l.bf16 %v2050_v48 }
 0x2b3   : > { %v5263_v14 = vpop.eup %5262  ;;  %v2434_v47 = vadd.f32 %v2433_v21, %v2327_v18  ;;  %v2202_v30 = vunpack.c.h.bf16 %v2050_v48  ;;  %v1863_v60 = vadd.bf16 1065369472, %v5257_v1  ;;  %v2186_v52 = vunpack.c.l.bf16 %v2054_v44 }
 0x2b4   : > { %v5265_v11 = vpop.eup %5264  ;;  %v2448_v2 = vadd.f32 %v2447_v63, %v2329_v50  ;;  %v2204_v28 = vunpack.c.h.bf16 %v2054_v44  ;;  %v1865_v41 = vadd.bf16 1065369472, %v5259_v49  ;;  %v2328_v61 = vmul.f32 %v2184_v6, %v6607_v37 }
 0x2b5   : > { %v5267_v19 = vpop.eup %5266  ;;  %v2435_v15 = vadd.f32 %v2434_v47, %v2345_v17  ;;  %v2346_v22 = vmul.f32 %v2202_v30, %v6623_v26  ;;  %5268 = vrcp.bf16 %v1863_v60  ;;  %v2330_v32 = vmul.f32 %v2186_v52, %v6611_v34 }
 0x2b6   : > { %v2449_v31 = vadd.f32 %v2448_v2, %v2347_v62  ;;  %v2348_v58 = vmul.f32 %v2204_v28, %v6632_v39  ;;  %5270 = vrcp.bf16 %v1865_v41  ;;  %v2441_v27 = vadd.f32 %v2440_v0, %v2328_v61  ;;  %v7642_v2 = vld [vmem:[#allocation40_spill] sm:$0xff]  ;;  %v7644_v41 = vld [vmem:[#allocation41_spill] sm:$0xff] }
 0x2b7   : > { %v2604_v3 = vrot.slane %v2435_v15, 4  ;;  %v1864_v25 = vadd.bf16 1065369472, %v5261_v53  ;;  %v1866_v21 = vadd.bf16 1065369472, %v5263_v14  ;;  %v2455_v43 = vadd.f32 %v2454_v54, %v2330_v32  ;;  %v7640_v14 = vld [vmem:[#allocation50_spill] sm:$0xff] }
 0x2b8   : > { %v2616_v46 = vrot.slane %v2449_v31, 4  ;;  %v1881_v55 = vadd.bf16 1065369472, %v5265_v11  ;;  %v1883_v1 = vadd.bf16 1065369472, %v5267_v19  ;;  %v2442_v57 = vadd.f32 %v2441_v27, %v2346_v22 }
 0x2b9   : > { %v2605_v63 = vadd.f32 %v2604_v3, %v2435_v15  ;;  %5272 = vrcp.bf16 %v1864_v25  ;;  %v7639_v37 = vpack.c.bf16 %v6815_v38, %v6796_v10  ;;  %v2456_v34 = vadd.f32 %v2455_v43, %v2348_v58 }
 0x2ba   : > { %v2617_v9 = vadd.f32 %v2616_v46, %v2449_v31  ;;  %5274 = vrcp.bf16 %v1866_v21  ;;  %v6897_v39 = vadd.f32 %v6405_v35, %v6673_v5  ;;  %v2610_v49 = vrot.slane %v2442_v57, 4 }
 0x2bb   : > { %v4413_v26 = vmul.bf16 3216621497, %v7639_v37  ;;  %v2606_v29 = vrot.slane %v2605_v63, 2  ;;  %5276 = vrcp.bf16 %v1881_v55  ;;  %v6901_v0 = vadd.f32 %v6409_v4, %v6649_v33 }
 0x2bc   : > { %v2618_v18 = vrot.slane %v2617_v9, 2  ;;  %v2622_v17 = vrot.slane %v2456_v34, 4  ;;  %5278 = vrcp.bf16 %v1883_v1  ;;  %v6905_v48 = vadd.f32 %v6411_v24, %v6658_v12 }
 0x2bd   : > { %v6907_v53 = vadd.f32 %v2606_v29, %v2605_v63  ;;  %v6909_v54 = vadd.f32 %v2610_v49, %v2442_v57  ;;  %5280 = vpow.bf16 %v6855_v13  ;;  %v1539_v35 = vpack.c.bf16 %v6901_v0, %v6830_v45  ;;  %v7641_v13 = vld [vmem:[#allocation51_spill] sm:$0xff] }
 0x2be   : > { %v6914_v50 = vadd.f32 %v2618_v18, %v2617_v9  ;;  %v6916_v4 = vadd.f32 %v2622_v17, %v2456_v34  ;;  %5282 = vpow.bf16 %v4413_v26  ;;  %v1541_v62 = vpack.c.bf16 %v6905_v48, %v6834_v7 }
 0x2bf   : > { %v2612_v24 = vrot.slane %v6909_v54, 2  ;;  %v4428_v44 = vmul.bf16 3216621497, %v1539_v35  ;;  %v6923_v47 = vadd.f32 %v7640_v14, %v6662_v56  ;;  %v6927_v6 = vadd.f32 %v7641_v13, %v6673_v5 }
 0x2c0   : > { %v5269_v30 = vpop.eup %5268  ;;  %v2624_v60 = vrot.slane %v6916_v4, 2  ;;  %v4430_v11 = vmul.bf16 3216621497, %v1541_v62  ;;  %v7643_v52 = vrot.slane %v7642_v2, 2  ;;  %v7645_v19 = vrot.slane %v7644_v41, 2 }
 0x2c1   : > { %v5271_v61 = vpop.eup %5270  ;;  %v1948_v22 = vmul.bf16 1065369472, %v5269_v30  ;;  %5284 = vpow.bf16 %v4428_v44  ;;  %v1540_v31 = vpack.c.bf16 %v6923_v47, %v6850_v8  ;;  %v1542_v32 = vpack.c.bf16 %v6927_v6, %v6897_v39 }
 0x2c2   : > { %v2589_v28 = vadd.f32 %v7643_v52, %v7642_v2  ;;  %v2601_v15 = vadd.f32 %v7645_v19, %v7644_v41  ;;  %v1952_v58 = vmul.bf16 1065369472, %v5271_v61  ;;  %5286 = vpow.bf16 %v4430_v11 }
 0x2c3   : > { %v2079_v25 = vunpack.c.l.bf16 %v1948_v22  ;;  %v2097_v21 = vunpack.c.h.bf16 %v1948_v22  ;;  %v4429_v46 = vmul.bf16 3216621497, %v1540_v31  ;;  %v4431_v43 = vmul.bf16 3216621497, %v1542_v32 }
 0x2c4   : > { %v2590_v3 = vrot.slane %v2589_v28, 1  ;;  %v2602_v27 = vrot.slane %v2601_v15, 1  ;;  %v5273_v55 = vpop.eup %5272  ;;  %v2081_v1 = vunpack.c.l.bf16 %v1952_v58  ;;  %v2099_v63 = vunpack.c.h.bf16 %v1952_v58  ;;  %v7646_v58 = vld [vmem:[#allocation26_spill] sm:$0xff] }
 0x2c5   : > { %v5275_v26 = vpop.eup %5274  ;;  %v2223_v9 = vmul.f32 %v2079_v25, %v6669_v42  ;;  %v2241_v34 = vmul.f32 %v2097_v21, %v6743_v16  ;;  %v1950_v29 = vmul.bf16 1065369472, %v5273_v55  ;;  %5288 = vpow.bf16 %v4429_v46  ;;  %v7649_v55 = vld [vmem:[#allocation30_spill] sm:$0xff] }
 0x2c6   : > { %v2591_v57 = vadd.f32 %v2590_v3, %v2589_v28  ;;  %v2603_v37 = vadd.f32 %v2602_v27, %v2601_v15  ;;  %v5277_v49 = vpop.eup %5276  ;;  %v2225_v18 = vmul.f32 %v2081_v1, %v6683_v40  ;;  %v2243_v17 = vmul.f32 %v2099_v63, %v6747_v23  ;;  %v7647_v27 = vld [vmem:[#allocation8_spill] sm:$0xff] }
 0x2c7   : > { %v1954_v35 = vmul.bf16 1065369472, %v5275_v26  ;;  %5290 = vpow.bf16 %v4431_v43  ;;  %v5279_v62 = vpop.eup %5278  ;;  %v2457_v44 = vadd.f32 %v2241_v34, %v2223_v9  ;;  %v2080_v14 = vunpack.c.l.bf16 %v1950_v29 }
 0x2c8   : > { %v2098_v13 = vunpack.c.h.bf16 %v1950_v29  ;;  %v1984_v30 = vmul.bf16 1065369472, %v5277_v49  ;;  %v5281_v11 = vpop.eup %5280  ;;  %v2471_v2 = vadd.f32 %v2243_v17, %v2225_v18  ;;  %v1988_v28 = vmul.bf16 1065369472, %v5279_v62 }
 0x2c9   : > { %v2082_v52 = vunpack.c.l.bf16 %v1954_v35  ;;  %v2100_v42 = vunpack.c.h.bf16 %v1954_v35  ;;  %v5283_v16 = vpop.eup %5282  ;;  %v2224_v41 = vmul.f32 %v2080_v14, %v6693_v36  ;;  %v1882_v21 = vadd.bf16 1065369472, %v5281_v11  ;;  %v7648_v36 = vld [vmem:[#allocation27_spill] sm:$0xff]  ;;  %v7650_v35 = vld [vmem:[#allocation65_spill] sm:$0xff]  ;;  %v7651_v11 = vld [vmem:[#allocation24_spill] sm:$0xff] }
 0x2ca   : > { %v2242_v19 = vmul.f32 %v2098_v13, %v6756_v59  ;;  %v2115_v40 = vunpack.c.l.bf16 %v1984_v30  ;;  %v2133_v15 = vunpack.c.h.bf16 %v1984_v30  ;;  %v2117_v22 = vunpack.c.l.bf16 %v1988_v28 }
 0x2cb   : > { %v2226_v23 = vmul.f32 %v2082_v52, %v6697_v20  ;;  %v2244_v61 = vmul.f32 %v2100_v42, %v6760_v51  ;;  %v2135_v31 = vunpack.c.h.bf16 %v1988_v28  ;;  %v1884_v63 = vadd.bf16 1065369472, %v5283_v16  ;;  %v7653_v28 = vld [vmem:[#allocation53_spill] sm:$0xff] }
 0x2cc   : > { %v6948_v32 = vadd.f32 %v2242_v19, %v2224_v41  ;;  %v2259_v3 = vmul.f32 %v2115_v40, %v7646_v58  ;;  %v2277_v25 = vmul.f32 %v2133_v15, %v7647_v27  ;;  %v5285_v46 = vpop.eup %5284  ;;  %v2261_v59 = vmul.f32 %v2117_v22, %v7648_v36  ;;  %v7654_v40 = vld [vmem:[#allocation54_spill] sm:$0xff]  ;;  %v548_v22 = vld [vmem:[%s7413_s4 + $0x10] sm:$0x3]  ;;  %v7656_v58 = vld [vmem:[#allocation56_spill] sm:$0xff] }
 0x2cd   : > { %v6952_v43 = vadd.f32 %v2244_v61, %v2226_v23  ;;  %v2279_v1 = vmul.f32 %v2135_v31, %v7649_v55  ;;  %v5287_v20 = vpop.eup %5286  ;;  %5292 = vrcp.bf16 %v1882_v21  ;;  %v1899_v51 = vadd.bf16 1065369472, %v5285_v46  ;;  %v7655_v23 = vld [vmem:[#allocation55_spill] sm:$0xff]  ;;  %v7657_v27 = vld [vmem:[#allocation57_spill] sm:$0xff]  ;;  %v7658_v36 = vld [vmem:[#allocation58_spill] sm:$0xff] }
 0x2ce   : > { %v2458_v26 = vadd.f32 %v2457_v44, %v2259_v3  ;;  %v2669_v9 = vmul.f32 0.015625, %v2591_v57  ;;  %v2472_v34 = vadd.f32 %v2471_v2, %v2261_v59  ;;  %5294 = vrcp.bf16 %v1884_v63  ;;  %v4970_v46 = vld [vmem:[%s7414_s5 + $0x200] sm:$0xff]  }
 0x2cf   : > { %v1901_v29 = vadd.bf16 1065369472, %v5287_v20  ;;  %v2671_v49 = vmul.f32 0.015625, %v2603_v37  ;;  %5296 = vrcp.bf16 %v1899_v51  ;;  %v2584_v62 = vrot.slane %v7650_v35, 1  ;;  %v7652_v37 = vld [vmem:[#allocation52_spill] sm:$0xff]  ;;  %v7659_v55 = vld [vmem:[#allocation59_spill] sm:$0xff] }
 0x2d0   : > { %v6956_v18 = vadd.f32 %v2458_v26, %v2277_v25  ;;  %v2687_v17 = vpack.c.bf16 %v2669_v9, %v2669_v9  ;;  %v5289_v14 = vpop.eup %5288  ;;  %v6959_v13 = vadd.f32 %v2472_v34, %v2279_v1  ;;  %v2596_v44 = vrot.slane %v7651_v11, 1  ;;  %v7660_v26 = vld [vmem:[#allocation4_spill] sm:$0xff] }
 0x2d1   : > { %5298 = vrcp.bf16 %v1901_v29  ;;  %v2689_v30 = vpack.c.bf16 %v2671_v49, %v2671_v49  ;;  %v1900_v42 = vadd.bf16 1065369472, %v5289_v14  ;;  %v2585_v57 = vadd.f32 %v2584_v62, %v7650_v35  ;;  %v4973_v29 = vld [vmem:[%s7414_s5 + $0x2c8] sm:$0xff]   ;;  %v7661_v49 = vld [vmem:[#allocation5_spill] sm:$0xff] }
 0x2d2   : > { %v5291_v52 = vpop.eup %5290  ;;  %3965 = vmatprep.mubr.bf16.mxu0 %v2687_v17  ;;  %v6965_v2 = vadd.f32 %v7652_v37, %v6649_v33  ;;  %v6969_v16 = vadd.f32 %v7653_v28, %v6658_v12  ;;  %v2597_v19 = vadd.f32 %v2596_v44, %v7651_v11  ;;  %v6974_v15 = vadd.f32 %v7654_v40, %v6662_v56  ;;  %v7662_v14 = vld [vmem:[#allocation60_spill] sm:$0xff]  ;;  %v7663_v11 = vld [vmem:[#allocation62_spill] sm:$0xff]  ;;  %v7664_v28 = vld [vmem:[#allocation61_spill] sm:$0xff] }
 0x2d3   : > { %v1902_v41 = vadd.bf16 1065369472, %v5291_v52  ;;  %4005 = vmatprep.mubr.bf16.mxu1 %v2689_v30  ;;  %v6978_v61 = vadd.f32 %v7655_v23, %v6673_v5  ;;  %5300 = vrcp.bf16 %v1900_v42  ;;  %v2668_v31 = vmul.f32 0.015625, %v2585_v57  ;;  %v4974_v37 = vld [vmem:[%s7414_s5 + $0x208] sm:$0xff]  }
 0x2d4   : > { %v6985_v3 = vadd.f32 %v7656_v58, %v6649_v33  ;;  %v6989_v25 = vadd.f32 %v7657_v27, %v6658_v12  ;;  %v2670_v21 = vmul.f32 0.015625, %v2597_v19  ;;  %v6996_v59 = vadd.f32 %v7658_v36, %v6662_v56  ;;  %v4971_v12 = vld [vmem:[%s7414_s5 + $0x280] sm:$0xff]   ;;  %v4972_v56 = vld [vmem:[%s7414_s5 + $0x248] sm:$0xff]   ;;  %v7665_v19 = vld [vmem:[#allocation10_spill] sm:$0xff] }
 0x2d5   : > { %5302 = vrcp.bf16 %v1902_v41  ;;  %v7000_v1 = vadd.f32 %v7659_v55, %v6673_v5  ;;  %v2686_v33 = vpack.c.bf16 %v2668_v31, %v2668_v31  ;;  %v7013_v51 = vrot.slane %v548_v22, %v7660_v26  ;;  %v4975_v31 = vld [vmem:[%s7414_s5 + $0x288] sm:$0xff]   ;;  %v4976_v58 = vld [vmem:[%s7414_s5 + $0x250] sm:$0xff]  }
 0x2d6   : > { %v1557_v63 = vpack.c.bf16 %v6985_v3, %v6965_v2  ;;  %v1559_v20 = vpack.c.bf16 %v6989_v25, %v6969_v16  ;;  %v2688_v5 = vpack.c.bf16 %v2670_v21, %v2670_v21  ;;  %v1558_v9 = vpack.c.bf16 %v6996_v59, %v6974_v15  ;;  %v7666_v21 = vld [vmem:[#allocation13_spill] sm:$0xff] }
 0x2d7   : > { %v1560_v34 = vpack.c.bf16 %v7000_v1, %v6978_v61  ;;  %v7023_v17 = vrot.slane %v548_v22, %v7661_v49  ;;  %3966 = vmatmul.mubr.bf16.vlgmr.msra.gmra.mrb[72].mxu0 %v2686_v33  ;;  %v7027_v30 = vadd.f32 %v7662_v14, %v7013_v51  ;;  %v7031_v44 = vadd.f32 %v7663_v11, %v7013_v51  ;;  %v4977_v33 = vld [vmem:[%s7414_s5 + $0x2d0] sm:$0xff]  }
 0x2d8   : > { %v4446_v35 = vmul.bf16 3216621497, %v1557_v63  ;;  %v4448_v62 = vmul.bf16 3216621497, %v1559_v20  ;;  %v5293_v52 = vpop.eup %5292  ;;  %4006 = vmatmul.mubr.bf16.vlgmr.msra.gmra.mrb[88].mxu1 %v2688_v5  ;;  %4694 = vmatpush3.bf16.msra.mxu0 %v4970_v46  ;;  %v4447_v42 = vmul.bf16 3216621497, %v1558_v9  ;;  %v7054_v46 = vadd.f32 %v7666_v21, %v7013_v51 }
 0x2d9   : > { %v4449_v57 = vmul.bf16 3216621497, %v1560_v34  ;;  %v7038_v41 = vadd.f32 %v7664_v28, %v7023_v17  ;;  %v7042_v40 = vadd.f32 %v7665_v19, %v7023_v17  ;;  %v5295_v23 = vpop.eup %5294  ;;  %v1986_v22 = vmul.bf16 1065369472, %v5293_v52  ;;  %4716 = vmatpush3.bf16.msra.mxu1 %v4971_v12  ;;  %4695 = vmatprep.subr.bf16.mxu0 %v4972_v56  ;;  %v7667_v63 = vld [vmem:[#allocation63_spill] sm:$0xff]  ;;  %v7668_v14 = vld [vmem:[#allocation9_spill] sm:$0xff] }
 0x2da   : > { %5304 = vpow.bf16 %v4446_v35  ;;  %v1507_v27 = vpack.c.bf16 %v7031_v44, %v7027_v30  ;;  %v5297_v36 = vpop.eup %5296  ;;  %v1990_v55 = vmul.bf16 1065369472, %v5295_v23  ;;  %4717 = vmatprep.subr.bf16.mxu1 %v4973_v29  ;;  %v7063_v20 = vadd.f32 %v7667_v63, %v7023_v17  ;;  %v4978_v29 = vld [vmem:[%s7414_s5 + $0x210] sm:$0xff]   ;;  %v7669_v52 = vld [vmem:[#allocation31_spill] sm:$0xff] }
 0x2db   : > { %5306 = vpow.bf16 %v4448_v62  ;;  %v1508_v12 = vpack.c.bf16 %v7042_v40, %v7038_v41  ;;  %v2116_v5 = vunpack.c.l.bf16 %v1986_v22  ;;  %v2134_v9 = vunpack.c.h.bf16 %v1986_v22 }
 0x2dc   : > { %v5299_v56 = vpop.eup %5298  ;;  %v2020_v34 = vmul.bf16 1065369472, %v5297_v36  ;;  %5308 = vpow.bf16 %v4447_v42  ;;  %v2118_v49 = vunpack.c.l.bf16 %v1990_v55  ;;  %v2136_v35 = vunpack.c.h.bf16 %v1990_v55  ;;  %4696 = vmatpush3.bf16.msra.mxu0 %v4974_v37  ;;  %v4979_v42 = vld [vmem:[%s7414_s5 + $0x290] sm:$0xff]  }
 0x2dd   : > { %v2024_v62 = vmul.bf16 1065369472, %v5299_v56  ;;  %5310 = vpow.bf16 %v4449_v57  ;;  %v2260_v11 = vmul.f32 %v2116_v5, %v7668_v14  ;;  %v2278_v28 = vmul.f32 %v2134_v9, %v7669_v52  ;;  %4718 = vmatpush3.bf16.msra.mxu1 %v4975_v31  ;;  %4697 = vmatprep.subr.bf16.mxu0 %v4976_v58  ;;  %v4980_v57 = vld [vmem:[%s7414_s5 + $0x258] sm:$0xff]  }
 0x2de   : > { %v2151_v19 = vunpack.c.l.bf16 %v2020_v34  ;;  %v2169_v23 = vunpack.c.h.bf16 %v2020_v34  ;;  %v5301_v37 = vpop.eup %5300  ;;  %v2262_v22 = vmul.f32 %v2118_v49, %v6796_v10  ;;  %v2280_v21 = vmul.f32 %v2136_v35, %v6815_v38  ;;  %4719 = vmatprep.subr.bf16.mxu1 %v4977_v33  ;;  %v4981_v31 = vld [vmem:[%s7414_s5 + $0x2d8] sm:$0xff]  }
 0x2df   : > { %v2153_v36 = vunpack.c.l.bf16 %v2024_v62  ;;  %v2171_v55 = vunpack.c.h.bf16 %v2024_v62  ;;  %v2465_v63 = vadd.f32 %v6948_v32, %v2260_v11  ;;  %v2022_v9 = vmul.bf16 1065369472, %v5301_v37  ;;  %v4982_v33 = vld [vmem:[%s7414_s5 + $0x218] sm:$0xff]  }
 0x2e0   : > { %v5303_v58 = vpop.eup %5302  ;;  %v2295_v56 = vmul.f32 %v2151_v19, %v6830_v45  ;;  %v2313_v5 = vmul.f32 %v2169_v23, %v6901_v0  ;;  %v2479_v34 = vadd.f32 %v6952_v43, %v2262_v22  ;;  %4698 = vmatpush3.bf16.msra.mxu0 %v4978_v29  ;;  %v4983_v0 = vld [vmem:[%s7414_s5 + $0x298] sm:$0xff]   ;;  %v4396_v19 = vmul.bf16 3216621497, %v1507_v27  ;;  %v4986_v22 = vld [vmem:[%s7414_s5 + $0x220] sm:$0xff]  }
 0x2e1   : > { %v2297_v10 = vmul.f32 %v2153_v36, %v6834_v7  ;;  %v2315_v38 = vmul.f32 %v2171_v55, %v6905_v48  ;;  %v2026_v49 = vmul.bf16 1065369472, %v5303_v58  ;;  %v2466_v35 = vadd.f32 %v2465_v63, %v2278_v28  ;;  %4720 = vmatpush3.bf16.msra.mxu1 %v4979_v42  ;;  %4699 = vmatprep.subr.bf16.mxu0 %v4980_v57  ;;  %v4984_v7 = vld [vmem:[%s7414_s5 + $0x260] sm:$0xff]   ;;  %v7671_v58 = vld [vmem:[#allocation21_spill] sm:$0xff] }
 0x2e2   : > { %v2460_v32 = vadd.f32 %v6956_v18, %v2295_v56  ;;  %v2152_v62 = vunpack.c.l.bf16 %v2022_v9  ;;  %v2170_v45 = vunpack.c.h.bf16 %v2022_v9  ;;  %v2480_v48 = vadd.f32 %v2479_v34, %v2280_v21  ;;  %4721 = vmatprep.subr.bf16.mxu1 %v4981_v31  ;;  %v4985_v18 = vld [vmem:[%s7414_s5 + $0x2e0] sm:$0xff]   ;;  %v4989_v56 = vld [vmem:[%s7414_s5 + $0x2e8] sm:$0xff]  }
 0x2e3   : > { %v2474_v43 = vadd.f32 %v6959_v13, %v2297_v10  ;;  %v2154_v29 = vunpack.c.l.bf16 %v2026_v49  ;;  %v2172_v14 = vunpack.c.h.bf16 %v2026_v49  ;;  %v4397_v37 = vmul.bf16 3216621497, %v1508_v12  ;;  %v4987_v27 = vld [vmem:[%s7414_s5 + $0x2a0] sm:$0xff]  }
 0x2e4   : > { %v7101_v11 = vadd.f32 %v2460_v32, %v2313_v5  ;;  %v2296_v52 = vmul.f32 %v2152_v62, %v6850_v8  ;;  %v2314_v28 = vmul.f32 %v2170_v45, %v6923_v47  ;;  %4700 = vmatpush3.bf16.msra.mxu0 %v4982_v33  ;;  %5312 = vpow.bf16 %v4396_v19  ;;  %v4991_v62 = vld [vmem:[%s7414_s5 + $0x2a8] sm:$0xff]   ;;  %v4992_v45 = vld [vmem:[%s7414_s5 + $0x270] sm:$0xff]  }
 0x2e5   : > { %v5305_v23 = vpop.eup %5304  ;;  %v7108_v42 = vadd.f32 %v2474_v43, %v2315_v38  ;;  %v2298_v13 = vmul.f32 %v2154_v29, %v6897_v39  ;;  %v2316_v57 = vmul.f32 %v2172_v14, %v6927_v6  ;;  %4722 = vmatpush3.bf16.msra.mxu1 %v4983_v0  ;;  %4701 = vmatprep.subr.bf16.mxu0 %v4984_v7  ;;  %v7670_v39 = vld [vmem:[#allocation18_spill] sm:$0xff]  ;;  %v4988_v6 = vld [vmem:[%s7414_s5 + $0x268] sm:$0xff]   ;;  %5314 = vpow.bf16 %v4397_v37  ;;  %v4993_v14 = vld [vmem:[%s7414_s5 + $0x2f0] sm:$0xff]  }
 0x2e6   : > { %v5307_v8 = vpop.eup %5306  ;;  %v2467_v21 = vadd.f32 %v2466_v35, %v2296_v52  ;;  %v1917_v47 = vadd.bf16 1065369472, %v5305_v23  ;;  %v7120_v36 = vadd.f32 %v7670_v39, %v7013_v51  ;;  %4723 = vmatprep.subr.bf16.mxu1 %v4985_v18  ;;  %v7127_v63 = vadd.f32 %v7671_v58, %v7023_v17  ;;  %v4990_v35 = vld [vmem:[%s7414_s5 + $0x228] sm:$0xff]   ;;  %v7672_v0 = vld [vmem:[#allocation6_spill] sm:$0xff]  ;;  %v4994_v37 = vld [vmem:[%s7414_s5 + $0x230] sm:$0xff]  }
 0x2e7   : > { %v5309_v12 = vpop.eup %5308  ;;  %v2481_v55 = vadd.f32 %v2480_v48, %v2298_v13  ;;  %v1919_v31 = vadd.bf16 1065369472, %v5307_v8  ;;  %v7151_v7 = vadd.f32 %v7672_v0, %v7013_v51  ;;  %v7673_v48 = vld [vmem:[#allocation7_spill] sm:$0xff]  ;;  %v7674_v18 = vld [vmem:[#allocation64_spill] sm:$0xff]  ;;  %v2613_v23 = vadd.f32 %v2612_v24, %v6909_v54  ;;  %v4996_v24 = vld [vmem:[%s7414_s5 + $0x278] sm:$0xff]  }
 0x2e8   : > { %v5311_v5 = vpop.eup %5310  ;;  %v7132_v9 = vadd.f32 %v2467_v21, %v2314_v28  ;;  %5316 = vrcp.bf16 %v1917_v47  ;;  %v1918_v34 = vadd.bf16 1065369472, %v5309_v12  ;;  %v1525_v10 = vpack.c.bf16 %v7120_v36, %v7054_v46  ;;  %4702 = vmatpush3.bf16.msra.mxu0 %v4986_v22  ;;  %v7675_v28 = vld [vmem:[#allocation11_spill] sm:$0xff] }
 0x2e9   : > { %v7136_v38 = vadd.f32 %v2481_v55, %v2316_v57  ;;  %5318 = vrcp.bf16 %v1919_v31  ;;  %v1920_v49 = vadd.bf16 1065369472, %v5311_v5  ;;  %v1526_v33 = vpack.c.bf16 %v7127_v63, %v7063_v20  ;;  %4724 = vmatpush3.bf16.msra.mxu1 %v4987_v27  ;;  %4703 = vmatprep.subr.bf16.mxu0 %v4988_v6  ;;  %v4997_v6 = vld [vmem:[%s7414_s5 + $0x2f8] sm:$0xff]  }
 0x2ea   : > { %5320 = vrcp.bf16 %v1918_v34  ;;  %v4414_v32 = vmul.bf16 3216621497, %v1525_v10  ;;  %v7155_v43 = vadd.f32 %v7673_v48, %v7023_v17  ;;  %4725 = vmatprep.subr.bf16.mxu1 %v4989_v56  ;;  %v7162_v52 = vadd.f32 %v7674_v18, %v7013_v51  ;;  %v7676_v56 = vld [vmem:[#allocation14_spill] sm:$0xff]  ;;  %v5000_v18 = vld [vmem:[%s7414_s5 + $0x340] sm:$0xff]  }
 0x2eb   : > { %5322 = vrcp.bf16 %v1920_v49  ;;  %v4415_v29 = vmul.bf16 3216621497, %v1526_v33  ;;  %v7166_v19 = vadd.f32 %v7675_v28, %v7023_v17  ;;  %v2625_v13 = vadd.f32 %v2624_v60, %v6916_v4  ;;  %v4995_v4 = vld [vmem:[%s7414_s5 + $0x2b0] sm:$0xff]   ;;  %v7677_v49 = vld [vmem:[#allocation12_spill] sm:$0xff] }
 0x2ec   : > { %5324 = vpow.bf16 %v4414_v32  ;;  %v2608_v57 = vrot.slane %v6907_v53, 1  ;;  %4704 = vmatpush3.bf16.msra.mxu0 %v4990_v35  ;;  %v1543_v22 = vpack.c.bf16 %v7162_v52, %v7151_v7  ;;  %v2620_v54 = vrot.slane %v6914_v50, 1  ;;  %v7679_v28 = vld [vmem:[#allocation25_spill] sm:$0xff] }
 0x2ed   : > { %5326 = vpow.bf16 %v4415_v29  ;;  %v1544_v8 = vpack.c.bf16 %v7166_v19, %v7155_v43  ;;  %4726 = vmatpush3.bf16.msra.mxu1 %v4991_v62  ;;  %4705 = vmatprep.subr.bf16.mxu0 %v4992_v45  ;;  %v2614_v60 = vrot.slane %v2613_v23, 1  ;;  %v2626_v21 = vrot.slane %v2625_v13, 1  ;;  %v4999_v45 = vld [vmem:[%s7414_s5 + $0x2b8] sm:$0xff]  }
 0x2ee   : > { %v2609_v47 = vadd.f32 %v2608_v57, %v6907_v53  ;;  %4727 = vmatprep.subr.bf16.mxu1 %v4993_v14  ;;  %v4432_v27 = vmul.bf16 3216621497, %v1543_v22  ;;  %v2621_v12 = vadd.f32 %v2620_v54, %v6914_v50  ;;  %v7196_v5 = vadd.f32 %v7676_v56, %v7013_v51  ;;  %v4998_v53 = vld [vmem:[%s7414_s5 + $0x238] sm:$0xff]   ;;  %v7678_v50 = vld [vmem:[#allocation15_spill] sm:$0xff] }
 0x2ef   : > { %v4433_v39 = vmul.bf16 3216621497, %v1544_v8  ;;  %v2615_v55 = vadd.f32 %v2614_v60, %v2613_v23  ;;  %v2627_v31 = vadd.f32 %v2626_v21, %v2625_v13  ;;  %v5313_v34 = vpop.eup %5312  ;;  %v7203_v33 = vadd.f32 %v7677_v49, %v7013_v51  ;;  %v5001_v54 = vld [vmem:[%s7414_s5 + $0x3c0] sm:$0xff]   ;;  %v5005_v49 = vld [vmem:[%s7414_s5 + $0x3c8] sm:$0xff]  }
 0x2f0   : > { %v2672_v58 = vmul.f32 0.015625, %v2609_v47  ;;  %4706 = vmatpush3.bf16.msra.mxu0 %v4994_v37  ;;  %5328 = vpow.bf16 %v4432_v27  ;;  %v2674_v10 = vmul.f32 0.015625, %v2621_v12  ;;  %v7207_v35 = vadd.f32 %v7678_v50, %v7023_v17  ;;  %v5315_v32 = vpop.eup %5314 }
 0x2f1   : > { %v1867_v62 = vadd.bf16 1065369472, %v5313_v34  ;;  %4728 = vmatpush3.bf16.msra.mxu1 %v4995_v4  ;;  %5330 = vpow.bf16 %v4433_v39  ;;  %4707 = vmatprep.subr.bf16.mxu0 %v4996_v24  ;;  %v2673_v0 = vmul.f32 0.015625, %v2615_v55  ;;  %v2675_v48 = vmul.f32 0.015625, %v2627_v31  ;;  %v5003_v55 = vld [vmem:[%s7414_s5 + $0x380] sm:$0xff]   ;;  %v5004_v31 = vld [vmem:[%s7414_s5 + $0x348] sm:$0xff]  }
 0x2f2   : > { %v1868_v14 = vadd.bf16 1065369472, %v5315_v32  ;;  %4729 = vmatprep.subr.bf16.mxu1 %v4997_v6  ;;  %v2690_v51 = vpack.c.bf16 %v2672_v58, %v2672_v58  ;;  %v7217_v23 = vadd.f32 %v7679_v28, %v7023_v17  ;;  %v1561_v13 = vpack.c.bf16 %v7196_v5, %v7203_v33  ;;  %v5002_v17 = vld [vmem:[%s7414_s5 + $0x300] sm:$0xff]  }
 0x2f3   : > { %v5317_v29 = vpop.eup %5316  ;;  %5332 = vrcp.bf16 %v1867_v62  ;;  %v2691_v22 = vpack.c.bf16 %v2673_v0, %v2673_v0  ;;  %v2693_v8 = vpack.c.bf16 %v2675_v48, %v2675_v48  ;;  %v2692_v12 = vpack.c.bf16 %v2674_v10, %v2674_v10 }
 0x2f4   : > { %v5319_v57 = vpop.eup %5318  ;;  %v2056_v37 = vmul.bf16 1065369472, %v5317_v29  ;;  %5334 = vrcp.bf16 %v1868_v14  ;;  %4708 = vmatpush3.bf16.msra.mxu0 %v4998_v53  ;;  %v4450_v60 = vmul.bf16 3216621497, %v1561_v13  ;;  %v1562_v21 = vpack.c.bf16 %v7207_v35, %v7217_v23 }
 0x2f5   : > { %v5321_v4 = vpop.eup %5320  ;;  %v2060_v24 = vmul.bf16 1065369472, %v5319_v57  ;;  %4730 = vmatpush3.bf16.msra.mxu1 %v4999_v45  ;;  %4045 = vmatprep.mubr.bf16.mxu0 %v2691_v22 }
 0x2f6   : > { %v5323_v47 = vpop.eup %5322  ;;  %v2187_v27 = vunpack.c.l.bf16 %v2056_v37  ;;  %v2205_v39 = vunpack.c.h.bf16 %v2056_v37  ;;  %v2058_v6 = vmul.bf16 1065369472, %v5321_v4  ;;  %4085 = vmatprep.mubr.bf16.mxu1 %v2693_v8  ;;  %4737 = vmatprep.subr.bf16.mxu0 %v5000_v18  ;;  %5336 = vpow.bf16 %v4450_v60  ;;  %v5006_v18 = vld [vmem:[%s7414_s5 + $0x308] sm:$0xff]  }
 0x2f7   : > { %v5325_v58 = vpop.eup %5324  ;;  %v2189_v56 = vunpack.c.l.bf16 %v2060_v24  ;;  %v2207_v34 = vunpack.c.h.bf16 %v2060_v24  ;;  %v2062_v53 = vmul.bf16 1065369472, %v5323_v47  ;;  %4046 = vmatmul.mubr.bf16.vlgmr.msra.gmra.mrb[76].mxu0 %v2690_v51  ;;  %4759 = vmatprep.subr.bf16.mxu1 %v5001_v54  ;;  %v4451_v54 = vmul.bf16 3216621497, %v1562_v21 }
 0x2f8   : > { %v5327_v10 = vpop.eup %5326  ;;  %v2331_v50 = vmul.f32 %v2187_v27, %v6965_v2  ;;  %v2349_v32 = vmul.f32 %v2205_v39, %v6985_v3  ;;  %v2188_v62 = vunpack.c.l.bf16 %v2058_v6  ;;  %v2206_v45 = vunpack.c.h.bf16 %v2058_v6  ;;  %4086 = vmatmul.mubr.bf16.vlgmr.msra.gmra.mrb[92].mxu1 %v2692_v12  ;;  %4738 = vmatpush3.bf16.msra.mxu0 %v5002_v17  ;;  %v5013_v6 = vld [vmem:[%s7414_s5 + $0x3d8] sm:$0xff]  }
 0x2f9   : > { %v2333_v0 = vmul.f32 %v2189_v56, %v6969_v16  ;;  %v2351_v48 = vmul.f32 %v2207_v34, %v6989_v25  ;;  %v2190_v29 = vunpack.c.l.bf16 %v2062_v53  ;;  %v2208_v14 = vunpack.c.h.bf16 %v2062_v53  ;;  %4760 = vmatpush3.bf16.msra.mxu1 %v5003_v55  ;;  %4739 = vmatprep.subr.bf16.mxu0 %v5004_v31  ;;  %v5007_v16 = vld [vmem:[%s7414_s5 + $0x388] sm:$0xff]   ;;  %v5008_v25 = vld [vmem:[%s7414_s5 + $0x350] sm:$0xff]  }
 0x2fa   : > { %v2462_v2 = vadd.f32 %v7101_v11, %v2331_v50  ;;  %v2332_v3 = vmul.f32 %v2188_v62, %v6974_v15  ;;  %v2350_v28 = vmul.f32 %v2206_v45, %v6996_v59  ;;  %v1885_v51 = vadd.bf16 1065369472, %v5325_v58  ;;  %4761 = vmatprep.subr.bf16.mxu1 %v5005_v49  ;;  %v5009_v59 = vld [vmem:[%s7414_s5 + $0x3d0] sm:$0xff]   ;;  %v5014_v49 = vld [vmem:[%s7414_s5 + $0x318] sm:$0xff]  }
 0x2fb   : > { %v2476_v13 = vadd.f32 %v7108_v42, %v2333_v0  ;;  %v2334_v57 = vmul.f32 %v2190_v29, %v6978_v61  ;;  %v2352_v11 = vmul.f32 %v2208_v14, %v7000_v1  ;;  %v1886_v15 = vadd.bf16 1065369472, %v5327_v10  ;;  %v5329_v37 = vpop.eup %5328  ;;  %v5010_v1 = vld [vmem:[%s7414_s5 + $0x310] sm:$0xff]   ;;  %v5015_v0 = vld [vmem:[%s7414_s5 + $0x398] sm:$0xff]  }
 0x2fc   : > { %v2463_v22 = vadd.f32 %v2462_v2, %v2349_v32  ;;  %v2469_v8 = vadd.f32 %v7132_v9, %v2332_v3  ;;  %5338 = vrcp.bf16 %v1885_v51  ;;  %v5331_v4 = vpop.eup %5330  ;;  %v1903_v61 = vadd.bf16 1065369472, %v5329_v37  ;;  %4740 = vmatpush3.bf16.msra.mxu0 %v5006_v18  ;;  %v5011_v9 = vld [vmem:[%s7414_s5 + $0x390] sm:$0xff]   ;;  %v5017_v3 = vld [vmem:[%s7414_s5 + $0x3e0] sm:$0xff]  }
 0x2fd   : > { %v2477_v24 = vadd.f32 %v2476_v13, %v2351_v48  ;;  %v2483_v42 = vadd.f32 %v7136_v38, %v2334_v57  ;;  %5340 = vrcp.bf16 %v1886_v15  ;;  %v1904_v47 = vadd.bf16 1065369472, %v5331_v4  ;;  %4762 = vmatpush3.bf16.msra.mxu1 %v5007_v16  ;;  %4741 = vmatprep.subr.bf16.mxu0 %v5008_v25  ;;  %v5012_v38 = vld [vmem:[%s7414_s5 + $0x358] sm:$0xff]   ;;  %v5016_v48 = vld [vmem:[%s7414_s5 + $0x360] sm:$0xff]   ;;  %v5021_v4 = vld [vmem:[%s7414_s5 + $0x3e8] sm:$0xff]  }
 0x2fe   : > { %v2628_v17 = vrot.slane %v2463_v22, 4  ;;  %v2470_v60 = vadd.f32 %v2469_v8, %v2350_v28  ;;  %5342 = vpow.bf16 %v4451_v54  ;;  %v5333_v21 = vpop.eup %5332  ;;  %4763 = vmatprep.subr.bf16.mxu1 %v5009_v59  ;;  %v5018_v59 = vld [vmem:[%s7414_s5 + $0x320] sm:$0xff]  }
 0x2ff   : > { %v2640_v27 = vrot.slane %v2477_v24, 4  ;;  %v2484_v39 = vadd.f32 %v2483_v42, %v2352_v11  ;;  %5344 = vrcp.bf16 %v1903_v61  ;;  %v5335_v12 = vpop.eup %5334  ;;  %v1956_v58 = vmul.bf16 1065369472, %v5333_v21 }
 0x300   : > { %v2629_v55 = vadd.f32 %v2628_v17, %v2463_v22  ;;  %v2634_v31 = vrot.slane %v2470_v60, 4  ;;  %5346 = vrcp.bf16 %v1904_v47  ;;  %v1958_v53 = vmul.bf16 1065369472, %v5335_v12  ;;  %4742 = vmatpush3.bf16.msra.mxu0 %v5010_v1 }
 0x301   : > { %v2641_v56 = vadd.f32 %v2640_v27, %v2477_v24  ;;  %v2646_v34 = vrot.slane %v2484_v39, 4  ;;  %v5337_v10 = vpop.eup %5336  ;;  %v2083_v62 = vunpack.c.l.bf16 %v1956_v58  ;;  %v2101_v45 = vunpack.c.h.bf16 %v1956_v58  ;;  %4764 = vmatpush3.bf16.msra.mxu1 %v5011_v9  ;;  %4743 = vmatprep.subr.bf16.mxu0 %v5012_v38  ;;  %v5022_v9 = vld [vmem:[%s7414_s5 + $0x328] sm:$0xff]   ;;  %v5024_v58 = vld [vmem:[%s7414_s5 + $0x370] sm:$0xff]  }
 0x302   : > { %v2630_v50 = vrot.slane %v2629_v55, 2  ;;  %v2635_v32 = vadd.f32 %v2634_v31, %v2470_v60  ;;  %v2084_v18 = vunpack.c.l.bf16 %v1958_v53  ;;  %v2102_v2 = vunpack.c.h.bf16 %v1958_v53  ;;  %4765 = vmatprep.subr.bf16.mxu1 %v5013_v6  ;;  %v5023_v31 = vld [vmem:[%s7414_s5 + $0x3a8] sm:$0xff]  }
 0x303   : > { %v2642_v29 = vrot.slane %v2641_v56, 2  ;;  %v2647_v14 = vadd.f32 %v2646_v34, %v2484_v39  ;;  %v2227_v16 = vmul.f32 %v2083_v62, %v7027_v30  ;;  %v2245_v25 = vmul.f32 %v2101_v45, %v7031_v44  ;;  %v5019_v30 = vld [vmem:[%s7414_s5 + $0x3a0] sm:$0xff]   ;;  %v5020_v44 = vld [vmem:[%s7414_s5 + $0x368] sm:$0xff]  }
 0x304   : > { %v2631_v28 = vadd.f32 %v2630_v50, %v2629_v55  ;;  %v2636_v51 = vrot.slane %v2635_v32, 2  ;;  %v2228_v11 = vmul.f32 %v2084_v18, %v7038_v41  ;;  %v2246_v15 = vmul.f32 %v2102_v2, %v7042_v40  ;;  %4744 = vmatpush3.bf16.msra.mxu0 %v5014_v49  ;;  %v5025_v50 = vld [vmem:[%s7414_s5 + $0x3f0] sm:$0xff]  }
 0x305   : > { %v2643_v13 = vadd.f32 %v2642_v29, %v2641_v56  ;;  %v2648_v57 = vrot.slane %v2647_v14, 2  ;;  %v2485_v37 = vadd.f32 %v2245_v25, %v2227_v16  ;;  %v1921_v22 = vadd.bf16 1065369472, %v5337_v10  ;;  %4766 = vmatpush3.bf16.msra.mxu1 %v5015_v0  ;;  %4745 = vmatprep.subr.bf16.mxu0 %v5016_v48  ;;  %v5026_v2 = vld [vmem:[%s7414_s5 + $0x330] sm:$0xff]  }
 0x306   : > { %v2637_v41 = vadd.f32 %v2636_v51, %v2635_v32  ;;  %v2632_v8 = vrot.slane %v2631_v28, 1  ;;  %v2492_v54 = vadd.f32 %v2246_v15, %v2228_v11  ;;  %4767 = vmatprep.subr.bf16.mxu1 %v5017_v3 }
 0x307   : > { %v5339_v40 = vpop.eup %5338  ;;  %v2649_v24 = vadd.f32 %v2648_v57, %v2647_v14  ;;  %v2644_v42 = vrot.slane %v2643_v13, 1  ;;  %5348 = vrcp.bf16 %v1921_v22 }
 0x308   : > { %v5341_v61 = vpop.eup %5340  ;;  %v1992_v1 = vmul.bf16 1065369472, %v5339_v40  ;;  %v2638_v17 = vrot.slane %v2637_v41, 1  ;;  %4746 = vmatpush3.bf16.msra.mxu0 %v5018_v59  ;;  %v2633_v21 = vadd.f32 %v2632_v8, %v2631_v28 }
 0x309   : > { %v5343_v60 = vpop.eup %5342  ;;  %v1994_v47 = vmul.bf16 1065369472, %v5341_v61  ;;  %v2650_v38 = vrot.slane %v2649_v24, 1  ;;  %v2645_v27 = vadd.f32 %v2644_v42, %v2643_v13  ;;  %4768 = vmatpush3.bf16.msra.mxu1 %v5019_v30  ;;  %4747 = vmatprep.subr.bf16.mxu0 %v5020_v44  ;;  %v5029_v13 = vld [vmem:[%s7414_s5 + $0x3f8] sm:$0xff]   ;;  %v5033_v42 = vld [vmem:[%s7414_s5 + $0x400] sm:$0xff]  }
 0x30a   : > { %v5345_v39 = vpop.eup %5344  ;;  %v2119_v6 = vunpack.c.l.bf16 %v1992_v1  ;;  %v2137_v12 = vunpack.c.h.bf16 %v1992_v1  ;;  %v1922_v55 = vadd.bf16 1065369472, %v5343_v60  ;;  %v2639_v56 = vadd.f32 %v2638_v17, %v2637_v41  ;;  %4769 = vmatprep.subr.bf16.mxu1 %v5021_v4  ;;  %v5031_v44 = vld [vmem:[%s7414_s5 + $0x3b8] sm:$0xff]   ;;  %v5034_v60 = vld [vmem:[%s7414_s5 + $0x448] sm:$0xff]  }
 0x30b   : > { %v5347_v34 = vpop.eup %5346  ;;  %v2120_v53 = vunpack.c.l.bf16 %v1994_v47  ;;  %v2138_v49 = vunpack.c.h.bf16 %v1994_v47  ;;  %v2028_v10 = vmul.bf16 1065369472, %v5345_v39  ;;  %v2651_v32 = vadd.f32 %v2650_v38, %v2649_v24  ;;  %v5035_v39 = vld [vmem:[%s7414_s5 + $0x408] sm:$0xff]  }
 0x30c   : > { %v2263_v62 = vmul.f32 %v2119_v6, %v7054_v46  ;;  %v2281_v45 = vmul.f32 %v2137_v12, %v7120_v36  ;;  %v2030_v0 = vmul.bf16 1065369472, %v5347_v34  ;;  %5350 = vrcp.bf16 %v1922_v55  ;;  %4748 = vmatpush3.bf16.msra.mxu0 %v5022_v9  ;;  %v5027_v46 = vld [vmem:[%s7414_s5 + $0x3b0] sm:$0xff]  }
 0x30d   : > { %v2264_v48 = vmul.f32 %v2120_v53, %v7063_v20  ;;  %v2282_v29 = vmul.f32 %v2138_v49, %v7127_v63  ;;  %v2155_v14 = vunpack.c.l.bf16 %v2028_v10  ;;  %v2173_v18 = vunpack.c.h.bf16 %v2028_v10  ;;  %4770 = vmatpush3.bf16.msra.mxu1 %v5023_v31  ;;  %4749 = vmatprep.subr.bf16.mxu0 %v5024_v58  ;;  %v5028_v20 = vld [vmem:[%s7414_s5 + $0x378] sm:$0xff]   ;;  %v5036_v31 = vld [vmem:[%s7414_s5 + $0x450] sm:$0xff]  }
 0x30e   : > { %v2486_v3 = vadd.f32 %v2485_v37, %v2263_v62  ;;  %v2156_v28 = vunpack.c.l.bf16 %v2030_v0  ;;  %v2174_v51 = vunpack.c.h.bf16 %v2030_v0  ;;  %v2677_v36 = vmul.f32 0.015625, %v2639_v56  ;;  %4771 = vmatprep.subr.bf16.mxu1 %v5025_v50  ;;  %v5037_v56 = vld [vmem:[%s7414_s5 + $0x410] sm:$0xff]   ;;  %v5038_v49 = vld [vmem:[%s7414_s5 + $0x458] sm:$0xff]   ;;  %v5040_v62 = vld [vmem:[%s7414_s5 + $0x460] sm:$0xff]  }
 0x30f   : > { %v2493_v63 = vadd.f32 %v2492_v54, %v2264_v48  ;;  %v2299_v16 = vmul.f32 %v2155_v14, %v7151_v7  ;;  %v2317_v25 = vmul.f32 %v2173_v18, %v7162_v52  ;;  %v2679_v57 = vmul.f32 0.015625, %v2651_v32  ;;  %v5030_v7 = vld [vmem:[%s7414_s5 + $0x338] sm:$0xff]   ;;  %v5041_v0 = vld [vmem:[%s7414_s5 + $0x420] sm:$0xff]   ;;  %v5042_v14 = vld [vmem:[%s7414_s5 + $0x468] sm:$0xff]  }
 0x310   : > { %v2487_v11 = vadd.f32 %v2486_v3, %v2281_v45  ;;  %v2300_v15 = vmul.f32 %v2156_v28, %v7155_v43  ;;  %v2318_v59 = vmul.f32 %v2174_v51, %v7166_v19  ;;  %v2695_v37 = vpack.c.bf16 %v2677_v36, %v2677_v36  ;;  %4750 = vmatpush3.bf16.msra.mxu0 %v5026_v2  ;;  %v5032_v43 = vld [vmem:[%s7414_s5 + $0x440] sm:$0xff]   ;;  %v5043_v2 = vld [vmem:[%s7414_s5 + $0x428] sm:$0xff]   ;;  %v5044_v3 = vld [vmem:[%s7414_s5 + $0x470] sm:$0xff]  }
 0x311   : > { %v2494_v22 = vadd.f32 %v2493_v63, %v2282_v29  ;;  %v2697_v30 = vpack.c.bf16 %v2679_v57, %v2679_v57  ;;  %4772 = vmatpush3.bf16.msra.mxu1 %v5027_v46  ;;  %4751 = vmatprep.subr.bf16.mxu0 %v5028_v20  ;;  %v2676_v41 = vmul.f32 0.015625, %v2633_v21  ;;  %v2678_v40 = vmul.f32 0.015625, %v2645_v27  ;;  %v5045_v20 = vld [vmem:[%s7414_s5 + $0x430] sm:$0xff]   ;;  %v5046_v36 = vld [vmem:[%s7414_s5 + $0x478] sm:$0xff]  }
 0x312   : > { %v2488_v52 = vadd.f32 %v2487_v11, %v2299_v16  ;;  %v5349_v19 = vpop.eup %5348  ;;  %4773 = vmatprep.subr.bf16.mxu1 %v5029_v13  ;;  %4125 = vmatprep.mubr.bf16.mxu0 %v2695_v37  ;;  %v5047_v13 = vld [vmem:[%s7414_s5 + $0x438] sm:$0xff]   ;;  %v2988_v37 = vld [vmem:[%s7415_s6] sm:$0x1] }
 0x313   : > { %v2495_v8 = vadd.f32 %v2494_v22, %v2300_v15  ;;  %v2064_v4 = vmul.bf16 1065369472, %v5349_v19  ;;  %4165 = vmatprep.mubr.bf16.mxu1 %v2697_v30  ;;  %v2694_v17 = vpack.c.bf16 %v2676_v41, %v2676_v41  ;;  %v2696_v9 = vpack.c.bf16 %v2678_v40, %v2678_v40 }
 0x314   : > { %v2489_v54 = vadd.f32 %v2488_v52, %v2317_v25  ;;  %4752 = vmatpush3.bf16.msra.mxu0 %v5030_v7 }
 0x315   : > { %v2496_v24 = vadd.f32 %v2495_v8, %v2318_v59  ;;  %v2191_v61 = vunpack.c.l.bf16 %v2064_v4  ;;  %v2209_v1 = vunpack.c.h.bf16 %v2064_v4  ;;  %4774 = vmatpush3.bf16.msra.mxu1 %v5031_v44  ;;  %4781 = vmatprep.subr.bf16.mxu0 %v5032_v43 }
 0x317   : > { %v5351_v47 = vpop.eup %5350  ;;  %v2335_v38 = vmul.f32 %v2191_v61, %v7203_v33  ;;  %v2353_v21 = vmul.f32 %v2209_v1, %v7196_v5  ;;  %4126 = vmatmul.mubr.bf16.vlgmr.msra.gmra.mrb[80].mxu0 %v2694_v17 }
 0x318   : > { %v2066_v27 = vmul.bf16 1065369472, %v5351_v47  ;;  %4166 = vmatmul.mubr.bf16.vlgmr.msra.gmra.mrb[96].mxu1 %v2696_v9  ;;  %4782 = vmatpush3.bf16.msra.mxu0 %v5033_v42 }
 0x319   : > { %v2490_v6 = vadd.f32 %v2489_v54, %v2335_v38  ;;  %4783 = vmatprep.subr.bf16.mxu0 %v5034_v60 }
 0x31a   : > { %v2192_v12 = vunpack.c.l.bf16 %v2066_v27  ;;  %v2210_v55 = vunpack.c.h.bf16 %v2066_v27 }
 0x31b   : > { %v2491_v58 = vadd.f32 %v2490_v6, %v2353_v21 }
 0x31c   : > { %v2336_v33 = vmul.f32 %v2192_v12, %v7217_v23  ;;  %v2354_v5 = vmul.f32 %v2210_v55, %v7207_v35  ;;  %4784 = vmatpush3.bf16.msra.mxu0 %v5035_v39  ;;  %v5039_v23 = vld [vmem:[%s7414_s5 + $0x418] sm:$0xff]  }
 0x31d   : > { %v2652_v34 = vrot.slane %v2491_v58, 4  ;;  %4785 = vmatprep.subr.bf16.mxu0 %v5036_v31 }
 0x31e   : > { %v2497_v53 = vadd.f32 %v2496_v24, %v2336_v33 }
 0x31f   : > { %v2653_v10 = vadd.f32 %v2652_v34, %v2491_v58 }
 0x320   : > { %v2498_v50 = vadd.f32 %v2497_v53, %v2354_v5  ;;  %4786 = vmatpush3.bf16.msra.mxu0 %v5037_v56 }
 0x321   : > { %v2654_v35 = vrot.slane %v2653_v10, 2  ;;  %4787 = vmatprep.subr.bf16.mxu0 %v5038_v49 }
 0x322   : > { %v2658_v32 = vrot.slane %v2498_v50, 4 }
 0x323   : > { %v2655_v48 = vadd.f32 %v2654_v35, %v2653_v10 }
 0x324   : > { %v2659_v45 = vadd.f32 %v2658_v32, %v2498_v50  ;;  %4788 = vmatpush3.bf16.msra.mxu0 %v5039_v23 }
 0x325   : > { %4789 = vmatprep.subr.bf16.mxu0 %v5040_v62  ;;  %v2656_v51 = vrot.slane %v2655_v48, 1 }
 0x326   : > { %v2660_v29 = vrot.slane %v2659_v45, 2 }
 0x327   : > { %v2657_v16 = vadd.f32 %v2656_v51, %v2655_v48 }
 0x328   : > { %v2661_v18 = vadd.f32 %v2660_v29, %v2659_v45  ;;  %4790 = vmatpush3.bf16.msra.mxu0 %v5041_v0 }
 0x329   : > { %4791 = vmatprep.subr.bf16.mxu0 %v5042_v14  ;;  %v2680_v57 = vmul.f32 0.015625, %v2657_v16 }
 0x32a   : > { %v2662_v28 = vrot.slane %v2661_v18, 1 }
 0x32b   : > { %v2698_v11 = vpack.c.bf16 %v2680_v57, %v2680_v57 }
 0x32c   : > { %v2663_v46 = vadd.f32 %v2662_v28, %v2661_v18  ;;  %4792 = vmatpush3.bf16.msra.mxu0 %v5043_v2 }
 0x32d   : > { %4793 = vmatprep.subr.bf16.mxu0 %v5044_v3 }
 0x32e   : > { %v2681_v63 = vmul.f32 0.015625, %v2663_v46 }
 0x330   : > { %v2699_v25 = vpack.c.bf16 %v2681_v63, %v2681_v63  ;;  %4794 = vmatpush3.bf16.msra.mxu0 %v5045_v20 }
 0x331   : > { %4795 = vmatprep.subr.bf16.mxu0 %v5046_v36 }
 0x332   : > { %4205 = vmatprep.mubr.bf16.mxu0 %v2699_v25 }
 0x334   : > { %4796 = vmatpush3.bf16.msra.mxu0 %v5047_v13 }
 0x337   : > { %4206 = vmatmul.mubr.bf16.vlgmr.msra.gmra.mrb[84].mxu0 %v2698_v11 }
 0x366   : > { %v4621_v15 = vpop.f32.mrb[68].mxu0 }
 0x367   : > { %v4643_v59 = vpop.f32.mrb[84].mxu1  ;;  %v4622_v22 = vpop.f32.mrb[69].mxu0 }
 0x368   : > { %v4623_v7 = vadd.f32 %v4622_v22, %v4621_v15  ;;  %v4644_v30 = vpop.f32.mrb[85].mxu1  ;;  %v4624_v52 = vpop.f32.mrb[70].mxu0 }
 0x369   : > { %v4645_v44 = vadd.f32 %v4644_v30, %v4643_v59  ;;  %v4646_v41 = vpop.f32.mrb[86].mxu1  ;;  %v4625_v43 = vpop.f32.mrb[71].mxu0 }
 0x36a   : > { %v3888_v19 = vadd.f32 %v4623_v7, %v2988_v37  ;;  %v4647_v8 = vpop.f32.mrb[87].mxu1 }
 0x36c   : > { %v3928_v40 = vadd.f32 %v4645_v44, %v3888_v19 }
 0x3aa   : > { %v4665_v54 = vpop.f32.mrb[72].mxu0 }
 0x3ab   : > { %v4687_v4 = vpop.f32.mrb[88].mxu1  ;;  %v4666_v24 = vpop.f32.mrb[73].mxu0 }
 0x3ac   : > { %v4667_v42 = vadd.f32 %v4666_v24, %v4665_v54  ;;  %v4688_v61 = vpop.f32.mrb[89].mxu1  ;;  %v4668_v1 = vpop.f32.mrb[74].mxu0 }
 0x3ad   : > { %v4689_v17 = vadd.f32 %v4688_v61, %v4687_v4  ;;  %v4690_v60 = vpop.f32.mrb[90].mxu1  ;;  %v4669_v47 = vpop.f32.mrb[75].mxu0 }
 0x3ae   : > { %v3968_v9 = vadd.f32 %v4667_v42, %v3928_v40  ;;  %v4691_v38 = vpop.f32.mrb[91].mxu1 }
 0x3b0   : > { %v4008_v21 = vadd.f32 %v4689_v17, %v3968_v9 }
 0x3ca   : > { %v4709_v27 = vpop.f32.mrb[76].mxu0 }
 0x3cb   : > { %v4731_v39 = vpop.f32.mrb[92].mxu1  ;;  %v4710_v6 = vpop.f32.mrb[77].mxu0 }
 0x3cc   : > { %v4711_v12 = vadd.f32 %v4710_v6, %v4709_v27  ;;  %v4732_v55 = vpop.f32.mrb[93].mxu1  ;;  %v4712_v31 = vpop.f32.mrb[78].mxu0 }
 0x3cd   : > { %v4733_v58 = vadd.f32 %v4732_v55, %v4731_v39  ;;  %v4734_v33 = vpop.f32.mrb[94].mxu1  ;;  %v4713_v5 = vpop.f32.mrb[79].mxu0 }
 0x3ce   : > { %v4048_v56 = vadd.f32 %v4711_v12, %v4008_v21  ;;  %v4735_v34 = vpop.f32.mrb[95].mxu1 }
 0x3d0   : > { %v4088_v53 = vadd.f32 %v4733_v58, %v4048_v56 }
 0x3ea   : > { %v4753_v49 = vpop.f32.mrb[80].mxu0 }
 0x3eb   : > { %v4775_v10 = vpop.f32.mrb[96].mxu1  ;;  %v4754_v50 = vpop.f32.mrb[81].mxu0 }
 0x3ec   : > { %v4755_v23 = vadd.f32 %v4754_v50, %v4753_v49  ;;  %v4776_v35 = vpop.f32.mrb[97].mxu1  ;;  %v4756_v32 = vpop.f32.mrb[82].mxu0 }
 0x3ed   : > { %v4777_v62 = vadd.f32 %v4776_v35, %v4775_v10  ;;  %v4778_v45 = vpop.f32.mrb[98].mxu1  ;;  %v4757_v0 = vpop.f32.mrb[83].mxu0 }
 0x3ee   : > { %v4128_v48 = vadd.f32 %v4755_v23, %v4088_v53  ;;  %v4779_v29 = vpop.f32.mrb[99].mxu1 }
 0x3f0   : > { %v4168_v14 = vadd.f32 %v4777_v62, %v4128_v48 }
 0x40a   : > { %v4797_v18 = vpop.f32.mrb[84].mxu0 }
 0x40b   : > { %v4798_v2 = vpop.f32.mrb[85].mxu0 }
 0x40c   : > { %v4799_v3 = vadd.f32 %v4798_v2, %v4797_v18  ;;  %v4800_v28 = vpop.f32.mrb[86].mxu0 }
 0x40d   : > { %v4801_v51 = vpop.f32.mrb[87].mxu0 }
 0x40e   : > { %v4208_v46 = vadd.f32 %v4799_v3, %v4168_v14 }
 0x410   : > { %v4216_v20 = vrot.slane %v4208_v46, %v7660_v26 }
 0x412   : > { %4217 = vst [vmem:[%s304_s8] sm:$0xff] %v4216_v20 }
 0x413 PF: > { %s17_s26 = sadd.s32 1, %s5375_s26   ;;  %s7680_s24 = smov %s5371_s25 }
 0x414   : > { %p14_p5 = scmp.ge.s32.totalorder %s17_s26, 4   ;;  %s7681_s25 = smov %s7683_s27 }
 0x416   :  { %16 = sbr.rel (!%p14_p5) target bundleno = 2 (0x2), region = 86 }

</bundles_post_ra>
